<compile_context>
chip_gen: v6e
topology: v6e:2x2x1
jax: 0.10.0
libtpu: 0.0.40
codegen_flags: <defaults>
</compile_context>

<pallas_src>
import functools

import jax
import jax.numpy as jnp
from jax.experimental import pallas as pl
from jax.experimental.pallas import tpu as pltpu  # noqa: F401  (TPU backend)

# ---------------- model hyper-parameters (small synthetic config) -------------
E = 32            # embed_dim
NHEAD = 4         # num heads
DH = E // NHEAD   # head_dim
DFF = 64          # dim_feedforward
NUM_LAYERS = 2
TGT_LEN = 8
SRC_LEN = 8
BATCH = 2
EPS = 1e-5        # LayerNorm eps (PyTorch default)
NEG_INF = -1e30   # finite masked value (avoids exp(-inf - (-inf)) NaNs)
MXU_DTYPE = jnp.bfloat16   # operand dtype for projection / FFN matmuls

_PARAM_ORDER = (
    "w_sa_qkv", "b_sa_qkv", "w_sa_o", "b_sa_o",
    "w_ca_q", "b_ca_q", "w_ca_kv", "b_ca_kv", "w_ca_o", "b_ca_o",
    "w_ff1", "b_ff1", "w_ff2", "b_ff2",
    "ln1_g", "ln1_b", "ln2_g", "ln2_b", "ln3_g", "ln3_b",
    "fn_g", "fn_b",
)


# ---------------- fused decoder-stack kernel -----------------------------------
def _decoder_stack_kernel(
    x_ref, mem_ref,
    w_sa_qkv_ref, b_sa_qkv_ref, w_sa_o_ref, b_sa_o_ref,
    w_ca_q_ref, b_ca_q_ref, w_ca_kv_ref, b_ca_kv_ref, w_ca_o_ref, b_ca_o_ref,
    w_ff1_ref, b_ff1_ref, w_ff2_ref, b_ff2_ref,
    ln1_g_ref, ln1_b_ref, ln2_g_ref, ln2_b_ref, ln3_g_ref, ln3_b_ref,
    fn_g_ref, fn_b_ref,
    out_ref,
    *, num_layers, L, S, B, nhead, dh, causal, use_final_norm):
  emb = nhead * dh
  scale = 1.0 / (dh ** 0.5)

  def dense(x, w, b, act=None):
    # bf16 MXU operands, f32 accumulation; bias/activation in f32.
    y = jnp.dot(x.astype(MXU_DTYPE), w.astype(MXU_DTYPE),
                preferred_element_type=jnp.float32) + b
    if act == "relu":
      y = jnp.maximum(y, 0.0)
    return y

  def layer_norm(y, g, b):
    mu = jnp.mean(y, axis=-1, keepdims=True)
    var = jnp.mean(jnp.square(y - mu), axis=-1, keepdims=True)
    return (y - mu) * jax.lax.rsqrt(var + EPS) * g + b

  def mha(q2, k2, v2, w_o, b_o, Lq, Lk, bias):
    # q2: [B*Lq, E]; k2/v2: [B*Lk, E]; w_o: [E, E]; b_o: [1, E].
    # Heads and batches are statically unrolled inside this single kernel;
    # the output projection is fused per head: concat_h(ctx_h) @ Wo
    #   == sum_h ctx_h @ Wo[h*dh:(h+1)*dh, :].
    outs = []
    for b in range(B):
      qb = q2[b * Lq:(b + 1) * Lq, :]
      kb = k2[b * Lk:(b + 1) * Lk, :]
      vb = v2[b * Lk:(b + 1) * Lk, :]
      acc = None
      for h in range(nhead):
        c0, c1 = h * dh, (h + 1) * dh
        qh = qb[:, c0:c1]                                   # [Lq, dh]
        kh = kb[:, c0:c1]                                   # [Lk, dh]
        vh = vb[:, c0:c1]                                   # [Lk, dh]
        s = jnp.dot(qh, kh.T, preferred_element_type=jnp.float32) * scale
        if bias is not None:
          s = s + bias
        m = jnp.max(s, axis=-1, keepdims=True)
        p = jnp.exp(s - m)
        inv = pl.reciprocal(jnp.sum(p, axis=-1, keepdims=True), approx=True)
        ctx = jnp.dot(p * inv, vh, preferred_element_type=jnp.float32)  # [Lq, dh]
        contrib = jnp.dot(ctx.astype(MXU_DTYPE),
                          w_o[c0:c1, :].astype(MXU_DTYPE),
                          preferred_element_type=jnp.float32)           # [Lq, E]
        acc = contrib if acc is None else acc + contrib
      outs.append(acc)
    return jnp.concatenate(outs, axis=0) + b_o              # [B*Lq, E]

  # Causal mask generated in-kernel (no HBM mask input).
  if causal:
    row = jax.lax.broadcasted_iota(jnp.int32, (L, L), 0)
    col = jax.lax.broadcasted_iota(jnp.int32, (L, L), 1)
    causal_bias = jnp.where(col > row, NEG_INF, 0.0).astype(jnp.float32)
  else:
    causal_bias = None

  x = x_ref[...]        # [B*L, E] f32, batch-major rows
  mem = mem_ref[...]    # [B*S, E]

  for li in range(num_layers):
    # ---- self attention (fused QKV projection) + add & LayerNorm ----
    qkv = dense(x, w_sa_qkv_ref[li], b_sa_qkv_ref[li])      # [B*L, 3E]
    sa = mha(qkv[:, 0:emb], qkv[:, emb:2 * emb], qkv[:, 2 * emb:3 * emb],
             w_sa_o_ref[li], b_sa_o_ref[li], L, L, causal_bias)
    x = layer_norm(x + sa, ln1_g_ref[li], ln1_b_ref[li])

    # ---- cross attention (fused K||V projection) + add & LayerNorm ----
    q2 = dense(x, w_ca_q_ref[li], b_ca_q_ref[li])           # [B*L, E]
    kv = dense(mem, w_ca_kv_ref[li], b_ca_kv_ref[li])       # [B*S, 2E]
    ca = mha(q2, kv[:, 0:emb], kv[:, emb:2 * emb],
             w_ca_o_ref[li], b_ca_o_ref[li], L, S, None)    # memory_mask = None
    x = layer_norm(x + ca, ln2_g_ref[li], ln2_b_ref[li])

    # ---- feed-forward (relu) + add & LayerNorm ----
    h1 = dense(x, w_ff1_ref[li], b_ff1_ref[li], act="relu")
    ff = dense(h1, w_ff2_ref[li], b_ff2_ref[li])
    x = layer_norm(x + ff, ln3_g_ref[li], ln3_b_ref[li])

  if use_final_norm:
    x = layer_norm(x, fn_g_ref[...], fn_b_ref[...])         # no zero residual

  out_ref[...] = x.astype(out_ref.dtype)


# ---------------- wrapper -------------------------------------------------------
def my_transformer_decoder(tgt, memory, params, causal_tgt_mask=True,
                           use_final_norm=True):
  """Pallas equivalent of MyTransformerDecoder.forward (eval mode).

  tgt:    [tgt_len, batch, embed_dim]
  memory: [src_len, batch, embed_dim]
  tgt_mask is the standard causal mask, generated inside the kernel when
  causal_tgt_mask=True; memory_mask is None (no masking) in this config.
  """
  # TODO(synk): tgt/memory key_padding_mask handling omitted (reference passes None).
  L, B_, E_ = tgt.shape
  S = memory.shape[0]
  # one boundary transpose each way; inside the kernel everything stays in VMEM
  x2 = jnp.transpose(tgt, (1, 0, 2)).reshape(B_ * L, E_)      # [B*L, E]
  m2 = jnp.transpose(memory, (1, 0, 2)).reshape(B_ * S, E_)   # [B*S, E]

  kernel = functools.partial(
      _decoder_stack_kernel, num_layers=NUM_LAYERS, L=L, S=S, B=B_,
      nhead=NHEAD, dh=DH, causal=bool(causal_tgt_mask),
      use_final_norm=bool(use_final_norm))

  out2 = pl.pallas_call(
      kernel,
      out_shape=jax.ShapeDtypeStruct((B_ * L, E_), jnp.float32),
  )(x2, m2, *[params[k] for k in _PARAM_ORDER])

  return out2.reshape(B_, L, E_).transpose(1, 0, 2)           # [L, B, E]


# ---------------- deterministic parameter init ----------------------------------
def _xavier(key, shape):
  fan_in, fan_out = shape[-2], shape[-1]
  lim = (6.0 / (fan_in + fan_out)) ** 0.5
  return jax.random.uniform(key, shape, jnp.float32, -lim, lim)


def init_params(key):
  ks = jax.random.split(key, 10)
  nl = NUM_LAYERS
  params = {
      # self attention: fused QKV weight [E, 3E], output proj [E, E]
      "w_sa_qkv": _xavier(ks[0], (nl, E, 3 * E)),
      "b_sa_qkv": jnp.zeros((nl, 1, 3 * E), jnp.float32),
      "w_sa_o":   _xavier(ks[1], (nl, E, E)),
      "b_sa_o":   jnp.zeros((nl, 1, E), jnp.float32),
      # cross attention: Q [E, E], fused K||V [E, 2E], output proj [E, E]
      "w_ca_q":   _xavier(ks[2], (nl, E, E)),
      "b_ca_q":   jnp.zeros((nl, 1, E), jnp.float32),
      "w_ca_kv":  _xavier(ks[3], (nl, E, 2 * E)),
      "b_ca_kv":  jnp.zeros((nl, 1, 2 * E), jnp.float32),
      "w_ca_o":   _xavier(ks[4], (nl, E, E)),
      "b_ca_o":   jnp.zeros((nl, 1, E), jnp.float32),
      # feed-forward
      "w_ff1":    _xavier(ks[5], (nl, E, DFF)),
      "b_ff1":    0.01 * jax.random.normal(ks[6], (nl, 1, DFF), jnp.float32),
      "w_ff2":    _xavier(ks[7], (nl, DFF, E)),
      "b_ff2":    0.01 * jax.random.normal(ks[8], (nl, 1, E), jnp.float32),
      # per-layer LayerNorms (post-norm, three per layer)
      "ln1_g": jnp.ones((nl, 1, E), jnp.float32),
      "ln1_b": jnp.zeros((nl, 1, E), jnp.float32),
      "ln2_g": jnp.ones((nl, 1, E), jnp.float32),
      "ln2_b": jnp.zeros((nl, 1, E), jnp.float32),
      "ln3_g": jnp.ones((nl, 1, E), jnp.float32),
      "ln3_b": jnp.zeros((nl, 1, E), jnp.float32),
      # final norm (the `norm=` argument of MyTransformerDecoder)
      "fn_g": jnp.ones((1, E), jnp.float32),
      "fn_b": jnp.zeros((1, E), jnp.float32),
  }
  return params


# ---------------- main -----------------------------------------------------------
if __name__ == "__main__":
  key = jax.random.PRNGKey(0)
  k_tgt, k_mem, k_par = jax.random.split(key, 3)

  tgt = jax.random.normal(k_tgt, (TGT_LEN, BATCH, E), jnp.float32)
  memory = jax.random.normal(k_mem, (SRC_LEN, BATCH, E), jnp.float32)
  params = init_params(k_par)

  fwd = jax.jit(my_transformer_decoder,
                static_argnames=("causal_tgt_mask", "use_final_norm"))
  out = fwd(tgt, memory, params)
  out = jax.block_until_ready(out)

  assert out.shape == (TGT_LEN, BATCH, E)
  assert bool(jnp.all(jnp.isfinite(out)))
  print("KERNEL_OK")
</pallas_src>

<mosaic_0001>
module attributes {stable_mosaic.version = 11 : i64} {
  func.func @_decoder_stack_kernel(%arg0: memref<16x32xf32, #tpu.memory_space<vmem>>, %arg1: memref<16x32xf32, #tpu.memory_space<vmem>>, %arg2: memref<2x32x96xf32, #tpu.memory_space<vmem>>, %arg3: memref<2x1x96xf32, #tpu.memory_space<vmem>>, %arg4: memref<2x32x32xf32, #tpu.memory_space<vmem>>, %arg5: memref<2x1x32xf32, #tpu.memory_space<vmem>>, %arg6: memref<2x32x32xf32, #tpu.memory_space<vmem>>, %arg7: memref<2x1x32xf32, #tpu.memory_space<vmem>>, %arg8: memref<2x32x64xf32, #tpu.memory_space<vmem>>, %arg9: memref<2x1x64xf32, #tpu.memory_space<vmem>>, %arg10: memref<2x32x32xf32, #tpu.memory_space<vmem>>, %arg11: memref<2x1x32xf32, #tpu.memory_space<vmem>>, %arg12: memref<2x32x64xf32, #tpu.memory_space<vmem>>, %arg13: memref<2x1x64xf32, #tpu.memory_space<vmem>>, %arg14: memref<2x64x32xf32, #tpu.memory_space<vmem>>, %arg15: memref<2x1x32xf32, #tpu.memory_space<vmem>>, %arg16: memref<2x1x32xf32, #tpu.memory_space<vmem>>, %arg17: memref<2x1x32xf32, #tpu.memory_space<vmem>>, %arg18: memref<2x1x32xf32, #tpu.memory_space<vmem>>, %arg19: memref<2x1x32xf32, #tpu.memory_space<vmem>>, %arg20: memref<2x1x32xf32, #tpu.memory_space<vmem>>, %arg21: memref<2x1x32xf32, #tpu.memory_space<vmem>>, %arg22: memref<1x32xf32, #tpu.memory_space<vmem>>, %arg23: memref<1x32xf32, #tpu.memory_space<vmem>>, %arg24: memref<16x32xf32, #tpu.memory_space<vmem>>) attributes {dimension_semantics = [], scalar_prefetch = 0 : i64, scratch_operands = 0 : i64, tpu.core_type = #tpu.core_type<tc>} {
    %0 = tpu.iota {dimensions = array<i32: 0>} : vector<8x8xi32>
    %1 = tpu.iota {dimensions = array<i32: 1>} : vector<8x8xi32>
    %2 = arith.cmpi sgt, %1, %0 : vector<8x8xi32>
    %cst = arith.constant -1.000000e+30 : f32
    %cst_0 = arith.constant 0.000000e+00 : f32
    %3 = vector.broadcast %cst : f32 to vector<8x8xf32>
    %4 = vector.broadcast %cst_0 : f32 to vector<8x8xf32>
    %5 = arith.select %2, %3, %4 : vector<8x8xi1>, vector<8x8xf32>
    %c0 = arith.constant 0 : index
    %c0_1 = arith.constant 0 : index
    %6 = vector.load %arg0[%c0, %c0_1] : memref<16x32xf32, #tpu.memory_space<vmem>>, vector<16x32xf32>
    %c0_2 = arith.constant 0 : index
    %c0_3 = arith.constant 0 : index
    %7 = vector.load %arg1[%c0_2, %c0_3] : memref<16x32xf32, #tpu.memory_space<vmem>>, vector<16x32xf32>
    %c0_4 = arith.constant 0 : index
    %c0_5 = arith.constant 0 : index
    %c0_6 = arith.constant 0 : index
    %8 = vector.load %arg2[%c0_4, %c0_5, %c0_6] : memref<2x32x96xf32, #tpu.memory_space<vmem>>, vector<1x32x96xf32>
    %9 = vector.shape_cast %8 : vector<1x32x96xf32> to vector<32x96xf32>
    %c0_7 = arith.constant 0 : index
    %c0_8 = arith.constant 0 : index
    %c0_9 = arith.constant 0 : index
    %10 = vector.load %arg3[%c0_7, %c0_8, %c0_9] : memref<2x1x96xf32, #tpu.memory_space<vmem>>, vector<1x1x96xf32>
    %11 = vector.shape_cast %10 : vector<1x1x96xf32> to vector<1x96xf32>
    %12 = arith.truncf %6 : vector<16x32xf32> to vector<16x32xbf16>
    %13 = arith.truncf %9 : vector<32x96xf32> to vector<32x96xbf16>
    %cst_10 = arith.constant dense<0.000000e+00> : vector<16x96xf32>
    %14 = tpu.matmul %12, %13, %cst_10 {dimension_numbers = #tpu.dot_dimension_numbers<[1], [0], [0], [1], [0, 0, 1, 1], [], []>} : vector<16x32xbf16>, vector<32x96xbf16>, vector<16x96xf32> -> vector<16x96xf32>
    %15 = vector.broadcast %11 : vector<1x96xf32> to vector<16x96xf32>
    %16 = arith.addf %14, %15 : vector<16x96xf32>
    %17 = vector.extract_strided_slice %16 {offsets = [0, 0], sizes = [16, 32], strides = [1, 1]} : vector<16x96xf32> to vector<16x32xf32>
    %18 = vector.extract_strided_slice %16 {offsets = [0, 32], sizes = [16, 32], strides = [1, 1]} : vector<16x96xf32> to vector<16x32xf32>
    %19 = vector.extract_strided_slice %16 {offsets = [0, 64], sizes = [16, 32], strides = [1, 1]} : vector<16x96xf32> to vector<16x32xf32>
    %c0_11 = arith.constant 0 : index
    %c0_12 = arith.constant 0 : index
    %c0_13 = arith.constant 0 : index
    %20 = vector.load %arg4[%c0_11, %c0_12, %c0_13] : memref<2x32x32xf32, #tpu.memory_space<vmem>>, vector<1x32x32xf32>
    %21 = vector.shape_cast %20 : vector<1x32x32xf32> to vector<32x32xf32>
    %c0_14 = arith.constant 0 : index
    %c0_15 = arith.constant 0 : index
    %c0_16 = arith.constant 0 : index
    %22 = vector.load %arg5[%c0_14, %c0_15, %c0_16] : memref<2x1x32xf32, #tpu.memory_space<vmem>>, vector<1x1x32xf32>
    %23 = vector.shape_cast %22 : vector<1x1x32xf32> to vector<1x32xf32>
    %24 = vector.extract_strided_slice %17 {offsets = [0, 0], sizes = [8, 32], strides = [1, 1]} : vector<16x32xf32> to vector<8x32xf32>
    %25 = vector.extract_strided_slice %18 {offsets = [0, 0], sizes = [8, 32], strides = [1, 1]} : vector<16x32xf32> to vector<8x32xf32>
    %26 = vector.extract_strided_slice %19 {offsets = [0, 0], sizes = [8, 32], strides = [1, 1]} : vector<16x32xf32> to vector<8x32xf32>
    %27 = vector.extract_strided_slice %24 {offsets = [0, 0], sizes = [8, 8], strides = [1, 1]} : vector<8x32xf32> to vector<8x8xf32>
    %28 = vector.extract_strided_slice %25 {offsets = [0, 0], sizes = [8, 8], strides = [1, 1]} : vector<8x32xf32> to vector<8x8xf32>
    %29 = vector.extract_strided_slice %26 {offsets = [0, 0], sizes = [8, 8], strides = [1, 1]} : vector<8x32xf32> to vector<8x8xf32>
    %30 = tpu.transpose %28, [1, 0] : vector<8x8xf32> -> vector<8x8xf32>
    %cst_17 = arith.constant dense<0.000000e+00> : vector<8x8xf32>
    %31 = tpu.matmul %27, %30, %cst_17 {dimension_numbers = #tpu.dot_dimension_numbers<[1], [0], [0], [1], [0, 0, 1, 1], [], []>} : vector<8x8xf32>, vector<8x8xf32>, vector<8x8xf32> -> vector<8x8xf32>
    %cst_18 = arith.constant 0.353553385 : f32
    %32 = vector.broadcast %cst_18 : f32 to vector<8x8xf32>
    %33 = arith.mulf %31, %32 : vector<8x8xf32>
    %34 = arith.addf %33, %5 : vector<8x8xf32>
    %cst_19 = arith.constant dense<0xFF800000> : vector<8xf32>
    %35 = vector.multi_reduction <maximumf>, %34, %cst_19 [1] : vector<8x8xf32> to vector<8xf32>
    %36 = vector.shape_cast %35 : vector<8xf32> to vector<8x1xf32>
    %37 = vector.broadcast %36 : vector<8x1xf32> to vector<8x8xf32>
    %38 = arith.subf %34, %37 : vector<8x8xf32>
    %39 = math.exp %38 : vector<8x8xf32>
    %cst_20 = arith.constant dense<0.000000e+00> : vector<8xf32>
    %40 = vector.multi_reduction <add>, %39, %cst_20 [1] : vector<8x8xf32> to vector<8xf32>
    %41 = vector.shape_cast %40 : vector<8xf32> to vector<8x1xf32>
    %42 = tpu.reciprocal %41 {approx = true} : vector<8x1xf32> -> vector<8x1xf32>
    %43 = vector.broadcast %42 : vector<8x1xf32> to vector<8x8xf32>
    %44 = arith.mulf %39, %43 : vector<8x8xf32>
    %cst_21 = arith.constant dense<0.000000e+00> : vector<8x8xf32>
    %45 = tpu.matmul %44, %29, %cst_21 {dimension_numbers = #tpu.dot_dimension_numbers<[1], [0], [0], [1], [0, 0, 1, 1], [], []>} : vector<8x8xf32>, vector<8x8xf32>, vector<8x8xf32> -> vector<8x8xf32>
    %46 = arith.truncf %45 : vector<8x8xf32> to vector<8x8xbf16>
    %47 = vector.extract_strided_slice %21 {offsets = [0, 0], sizes = [8, 32], strides = [1, 1]} : vector<32x32xf32> to vector<8x32xf32>
    %48 = arith.truncf %47 : vector<8x32xf32> to vector<8x32xbf16>
    %cst_22 = arith.constant dense<0.000000e+00> : vector<8x32xf32>
    %49 = tpu.matmul %46, %48, %cst_22 {dimension_numbers = #tpu.dot_dimension_numbers<[1], [0], [0], [1], [0, 0, 1, 1], [], []>} : vector<8x8xbf16>, vector<8x32xbf16>, vector<8x32xf32> -> vector<8x32xf32>
    %50 = vector.extract_strided_slice %24 {offsets = [0, 8], sizes = [8, 8], strides = [1, 1]} : vector<8x32xf32> to vector<8x8xf32>
    %51 = vector.extract_strided_slice %25 {offsets = [0, 8], sizes = [8, 8], strides = [1, 1]} : vector<8x32xf32> to vector<8x8xf32>
    %52 = vector.extract_strided_slice %26 {offsets = [0, 8], sizes = [8, 8], strides = [1, 1]} : vector<8x32xf32> to vector<8x8xf32>
    %53 = tpu.transpose %51, [1, 0] : vector<8x8xf32> -> vector<8x8xf32>
    %cst_23 = arith.constant dense<0.000000e+00> : vector<8x8xf32>
    %54 = tpu.matmul %50, %53, %cst_23 {dimension_numbers = #tpu.dot_dimension_numbers<[1], [0], [0], [1], [0, 0, 1, 1], [], []>} : vector<8x8xf32>, vector<8x8xf32>, vector<8x8xf32> -> vector<8x8xf32>
    %cst_24 = arith.constant 0.353553385 : f32
    %55 = vector.broadcast %cst_24 : f32 to vector<8x8xf32>
    %56 = arith.mulf %54, %55 : vector<8x8xf32>
    %57 = arith.addf %56, %5 : vector<8x8xf32>
    %cst_25 = arith.constant dense<0xFF800000> : vector<8xf32>
    %58 = vector.multi_reduction <maximumf>, %57, %cst_25 [1] : vector<8x8xf32> to vector<8xf32>
    %59 = vector.shape_cast %58 : vector<8xf32> to vector<8x1xf32>
    %60 = vector.broadcast %59 : vector<8x1xf32> to vector<8x8xf32>
    %61 = arith.subf %57, %60 : vector<8x8xf32>
    %62 = math.exp %61 : vector<8x8xf32>
    %cst_26 = arith.constant dense<0.000000e+00> : vector<8xf32>
    %63 = vector.multi_reduction <add>, %62, %cst_26 [1] : vector<8x8xf32> to vector<8xf32>
    %64 = vector.shape_cast %63 : vector<8xf32> to vector<8x1xf32>
    %65 = tpu.reciprocal %64 {approx = true} : vector<8x1xf32> -> vector<8x1xf32>
    %66 = vector.broadcast %65 : vector<8x1xf32> to vector<8x8xf32>
    %67 = arith.mulf %62, %66 : vector<8x8xf32>
    %cst_27 = arith.constant dense<0.000000e+00> : vector<8x8xf32>
    %68 = tpu.matmul %67, %52, %cst_27 {dimension_numbers = #tpu.dot_dimension_numbers<[1], [0], [0], [1], [0, 0, 1, 1], [], []>} : vector<8x8xf32>, vector<8x8xf32>, vector<8x8xf32> -> vector<8x8xf32>
    %69 = arith.truncf %68 : vector<8x8xf32> to vector<8x8xbf16>
    %70 = vector.extract_strided_slice %21 {offsets = [8, 0], sizes = [8, 32], strides = [1, 1]} : vector<32x32xf32> to vector<8x32xf32>
    %71 = arith.truncf %70 : vector<8x32xf32> to vector<8x32xbf16>
    %cst_28 = arith.constant dense<0.000000e+00> : vector<8x32xf32>
    %72 = tpu.matmul %69, %71, %cst_28 {dimension_numbers = #tpu.dot_dimension_numbers<[1], [0], [0], [1], [0, 0, 1, 1], [], []>} : vector<8x8xbf16>, vector<8x32xbf16>, vector<8x32xf32> -> vector<8x32xf32>
    %73 = arith.addf %49, %72 : vector<8x32xf32>
    %74 = vector.extract_strided_slice %24 {offsets = [0, 16], sizes = [8, 8], strides = [1, 1]} : vector<8x32xf32> to vector<8x8xf32>
    %75 = vector.extract_strided_slice %25 {offsets = [0, 16], sizes = [8, 8], strides = [1, 1]} : vector<8x32xf32> to vector<8x8xf32>
    %76 = vector.extract_strided_slice %26 {offsets = [0, 16], sizes = [8, 8], strides = [1, 1]} : vector<8x32xf32> to vector<8x8xf32>
    %77 = tpu.transpose %75, [1, 0] : vector<8x8xf32> -> vector<8x8xf32>
    %cst_29 = arith.constant dense<0.000000e+00> : vector<8x8xf32>
    %78 = tpu.matmul %74, %77, %cst_29 {dimension_numbers = #tpu.dot_dimension_numbers<[1], [0], [0], [1], [0, 0, 1, 1], [], []>} : vector<8x8xf32>, vector<8x8xf32>, vector<8x8xf32> -> vector<8x8xf32>
    %cst_30 = arith.constant 0.353553385 : f32
    %79 = vector.broadcast %cst_30 : f32 to vector<8x8xf32>
    %80 = arith.mulf %78, %79 : vector<8x8xf32>
    %81 = arith.addf %80, %5 : vector<8x8xf32>
    %cst_31 = arith.constant dense<0xFF800000> : vector<8xf32>
    %82 = vector.multi_reduction <maximumf>, %81, %cst_31 [1] : vector<8x8xf32> to vector<8xf32>
    %83 = vector.shape_cast %82 : vector<8xf32> to vector<8x1xf32>
    %84 = vector.broadcast %83 : vector<8x1xf32> to vector<8x8xf32>
    %85 = arith.subf %81, %84 : vector<8x8xf32>
    %86 = math.exp %85 : vector<8x8xf32>
    %cst_32 = arith.constant dense<0.000000e+00> : vector<8xf32>
    %87 = vector.multi_reduction <add>, %86, %cst_32 [1] : vector<8x8xf32> to vector<8xf32>
    %88 = vector.shape_cast %87 : vector<8xf32> to vector<8x1xf32>
    %89 = tpu.reciprocal %88 {approx = true} : vector<8x1xf32> -> vector<8x1xf32>
    %90 = vector.broadcast %89 : vector<8x1xf32> to vector<8x8xf32>
    %91 = arith.mulf %86, %90 : vector<8x8xf32>
    %cst_33 = arith.constant dense<0.000000e+00> : vector<8x8xf32>
    %92 = tpu.matmul %91, %76, %cst_33 {dimension_numbers = #tpu.dot_dimension_numbers<[1], [0], [0], [1], [0, 0, 1, 1], [], []>} : vector<8x8xf32>, vector<8x8xf32>, vector<8x8xf32> -> vector<8x8xf32>
    %93 = arith.truncf %92 : vector<8x8xf32> to vector<8x8xbf16>
    %94 = vector.extract_strided_slice %21 {offsets = [16, 0], sizes = [8, 32], strides = [1, 1]} : vector<32x32xf32> to vector<8x32xf32>
    %95 = arith.truncf %94 : vector<8x32xf32> to vector<8x32xbf16>
    %cst_34 = arith.constant dense<0.000000e+00> : vector<8x32xf32>
    %96 = tpu.matmul %93, %95, %cst_34 {dimension_numbers = #tpu.dot_dimension_numbers<[1], [0], [0], [1], [0, 0, 1, 1], [], []>} : vector<8x8xbf16>, vector<8x32xbf16>, vector<8x32xf32> -> vector<8x32xf32>
    %97 = arith.addf %73, %96 : vector<8x32xf32>
    %98 = vector.extract_strided_slice %24 {offsets = [0, 24], sizes = [8, 8], strides = [1, 1]} : vector<8x32xf32> to vector<8x8xf32>
    %99 = vector.extract_strided_slice %25 {offsets = [0, 24], sizes = [8, 8], strides = [1, 1]} : vector<8x32xf32> to vector<8x8xf32>
    %100 = vector.extract_strided_slice %26 {offsets = [0, 24], sizes = [8, 8], strides = [1, 1]} : vector<8x32xf32> to vector<8x8xf32>
    %101 = tpu.transpose %99, [1, 0] : vector<8x8xf32> -> vector<8x8xf32>
    %cst_35 = arith.constant dense<0.000000e+00> : vector<8x8xf32>
    %102 = tpu.matmul %98, %101, %cst_35 {dimension_numbers = #tpu.dot_dimension_numbers<[1], [0], [0], [1], [0, 0, 1, 1], [], []>} : vector<8x8xf32>, vector<8x8xf32>, vector<8x8xf32> -> vector<8x8xf32>
    %cst_36 = arith.constant 0.353553385 : f32
    %103 = vector.broadcast %cst_36 : f32 to vector<8x8xf32>
    %104 = arith.mulf %102, %103 : vector<8x8xf32>
    %105 = arith.addf %104, %5 : vector<8x8xf32>
    %cst_37 = arith.constant dense<0xFF800000> : vector<8xf32>
    %106 = vector.multi_reduction <maximumf>, %105, %cst_37 [1] : vector<8x8xf32> to vector<8xf32>
    %107 = vector.shape_cast %106 : vector<8xf32> to vector<8x1xf32>
    %108 = vector.broadcast %107 : vector<8x1xf32> to vector<8x8xf32>
    %109 = arith.subf %105, %108 : vector<8x8xf32>
    %110 = math.exp %109 : vector<8x8xf32>
    %cst_38 = arith.constant dense<0.000000e+00> : vector<8xf32>
    %111 = vector.multi_reduction <add>, %110, %cst_38 [1] : vector<8x8xf32> to vector<8xf32>
    %112 = vector.shape_cast %111 : vector<8xf32> to vector<8x1xf32>
    %113 = tpu.reciprocal %112 {approx = true} : vector<8x1xf32> -> vector<8x1xf32>
    %114 = vector.broadcast %113 : vector<8x1xf32> to vector<8x8xf32>
    %115 = arith.mulf %110, %114 : vector<8x8xf32>
    %cst_39 = arith.constant dense<0.000000e+00> : vector<8x8xf32>
    %116 = tpu.matmul %115, %100, %cst_39 {dimension_numbers = #tpu.dot_dimension_numbers<[1], [0], [0], [1], [0, 0, 1, 1], [], []>} : vector<8x8xf32>, vector<8x8xf32>, vector<8x8xf32> -> vector<8x8xf32>
    %117 = arith.truncf %116 : vector<8x8xf32> to vector<8x8xbf16>
    %118 = vector.extract_strided_slice %21 {offsets = [24, 0], sizes = [8, 32], strides = [1, 1]} : vector<32x32xf32> to vector<8x32xf32>
    %119 = arith.truncf %118 : vector<8x32xf32> to vector<8x32xbf16>
    %cst_40 = arith.constant dense<0.000000e+00> : vector<8x32xf32>
    %120 = tpu.matmul %117, %119, %cst_40 {dimension_numbers = #tpu.dot_dimension_numbers<[1], [0], [0], [1], [0, 0, 1, 1], [], []>} : vector<8x8xbf16>, vector<8x32xbf16>, vector<8x32xf32> -> vector<8x32xf32>
    %121 = arith.addf %97, %120 : vector<8x32xf32>
    %122 = vector.extract_strided_slice %17 {offsets = [8, 0], sizes = [8, 32], strides = [1, 1]} : vector<16x32xf32> to vector<8x32xf32>
    %123 = vector.extract_strided_slice %18 {offsets = [8, 0], sizes = [8, 32], strides = [1, 1]} : vector<16x32xf32> to vector<8x32xf32>
    %124 = vector.extract_strided_slice %19 {offsets = [8, 0], sizes = [8, 32], strides = [1, 1]} : vector<16x32xf32> to vector<8x32xf32>
    %125 = vector.extract_strided_slice %122 {offsets = [0, 0], sizes = [8, 8], strides = [1, 1]} : vector<8x32xf32> to vector<8x8xf32>
    %126 = vector.extract_strided_slice %123 {offsets = [0, 0], sizes = [8, 8], strides = [1, 1]} : vector<8x32xf32> to vector<8x8xf32>
    %127 = vector.extract_strided_slice %124 {offsets = [0, 0], sizes = [8, 8], strides = [1, 1]} : vector<8x32xf32> to vector<8x8xf32>
    %128 = tpu.transpose %126, [1, 0] : vector<8x8xf32> -> vector<8x8xf32>
    %cst_41 = arith.constant dense<0.000000e+00> : vector<8x8xf32>
    %129 = tpu.matmul %125, %128, %cst_41 {dimension_numbers = #tpu.dot_dimension_numbers<[1], [0], [0], [1], [0, 0, 1, 1], [], []>} : vector<8x8xf32>, vector<8x8xf32>, vector<8x8xf32> -> vector<8x8xf32>
    %cst_42 = arith.constant 0.353553385 : f32
    %130 = vector.broadcast %cst_42 : f32 to vector<8x8xf32>
    %131 = arith.mulf %129, %130 : vector<8x8xf32>
    %132 = arith.addf %131, %5 : vector<8x8xf32>
    %cst_43 = arith.constant dense<0xFF800000> : vector<8xf32>
    %133 = vector.multi_reduction <maximumf>, %132, %cst_43 [1] : vector<8x8xf32> to vector<8xf32>
    %134 = vector.shape_cast %133 : vector<8xf32> to vector<8x1xf32>
    %135 = vector.broadcast %134 : vector<8x1xf32> to vector<8x8xf32>
    %136 = arith.subf %132, %135 : vector<8x8xf32>
    %137 = math.exp %136 : vector<8x8xf32>
    %cst_44 = arith.constant dense<0.000000e+00> : vector<8xf32>
    %138 = vector.multi_reduction <add>, %137, %cst_44 [1] : vector<8x8xf32> to vector<8xf32>
    %139 = vector.shape_cast %138 : vector<8xf32> to vector<8x1xf32>
    %140 = tpu.reciprocal %139 {approx = true} : vector<8x1xf32> -> vector<8x1xf32>
    %141 = vector.broadcast %140 : vector<8x1xf32> to vector<8x8xf32>
    %142 = arith.mulf %137, %141 : vector<8x8xf32>
    %cst_45 = arith.constant dense<0.000000e+00> : vector<8x8xf32>
    %143 = tpu.matmul %142, %127, %cst_45 {dimension_numbers = #tpu.dot_dimension_numbers<[1], [0], [0], [1], [0, 0, 1, 1], [], []>} : vector<8x8xf32>, vector<8x8xf32>, vector<8x8xf32> -> vector<8x8xf32>
    %144 = arith.truncf %143 : vector<8x8xf32> to vector<8x8xbf16>
    %145 = vector.extract_strided_slice %21 {offsets = [0, 0], sizes = [8, 32], strides = [1, 1]} : vector<32x32xf32> to vector<8x32xf32>
    %146 = arith.truncf %145 : vector<8x32xf32> to vector<8x32xbf16>
    %cst_46 = arith.constant dense<0.000000e+00> : vector<8x32xf32>
    %147 = tpu.matmul %144, %146, %cst_46 {dimension_numbers = #tpu.dot_dimension_numbers<[1], [0], [0], [1], [0, 0, 1, 1], [], []>} : vector<8x8xbf16>, vector<8x32xbf16>, vector<8x32xf32> -> vector<8x32xf32>
    %148 = vector.extract_strided_slice %122 {offsets = [0, 8], sizes = [8, 8], strides = [1, 1]} : vector<8x32xf32> to vector<8x8xf32>
    %149 = vector.extract_strided_slice %123 {offsets = [0, 8], sizes = [8, 8], strides = [1, 1]} : vector<8x32xf32> to vector<8x8xf32>
    %150 = vector.extract_strided_slice %124 {offsets = [0, 8], sizes = [8, 8], strides = [1, 1]} : vector<8x32xf32> to vector<8x8xf32>
    %151 = tpu.transpose %149, [1, 0] : vector<8x8xf32> -> vector<8x8xf32>
    %cst_47 = arith.constant dense<0.000000e+00> : vector<8x8xf32>
    %152 = tpu.matmul %148, %151, %cst_47 {dimension_numbers = #tpu.dot_dimension_numbers<[1], [0], [0], [1], [0, 0, 1, 1], [], []>} : vector<8x8xf32>, vector<8x8xf32>, vector<8x8xf32> -> vector<8x8xf32>
    %cst_48 = arith.constant 0.353553385 : f32
    %153 = vector.broadcast %cst_48 : f32 to vector<8x8xf32>
    %154 = arith.mulf %152, %153 : vector<8x8xf32>
    %155 = arith.addf %154, %5 : vector<8x8xf32>
    %cst_49 = arith.constant dense<0xFF800000> : vector<8xf32>
    %156 = vector.multi_reduction <maximumf>, %155, %cst_49 [1] : vector<8x8xf32> to vector<8xf32>
    %157 = vector.shape_cast %156 : vector<8xf32> to vector<8x1xf32>
    %158 = vector.broadcast %157 : vector<8x1xf32> to vector<8x8xf32>
    %159 = arith.subf %155, %158 : vector<8x8xf32>
    %160 = math.exp %159 : vector<8x8xf32>
    %cst_50 = arith.constant dense<0.000000e+00> : vector<8xf32>
    %161 = vector.multi_reduction <add>, %160, %cst_50 [1] : vector<8x8xf32> to vector<8xf32>
    %162 = vector.shape_cast %161 : vector<8xf32> to vector<8x1xf32>
    %163 = tpu.reciprocal %162 {approx = true} : vector<8x1xf32> -> vector<8x1xf32>
    %164 = vector.broadcast %163 : vector<8x1xf32> to vector<8x8xf32>
    %165 = arith.mulf %160, %164 : vector<8x8xf32>
    %cst_51 = arith.constant dense<0.000000e+00> : vector<8x8xf32>
    %166 = tpu.matmul %165, %150, %cst_51 {dimension_numbers = #tpu.dot_dimension_numbers<[1], [0], [0], [1], [0, 0, 1, 1], [], []>} : vector<8x8xf32>, vector<8x8xf32>, vector<8x8xf32> -> vector<8x8xf32>
    %167 = arith.truncf %166 : vector<8x8xf32> to vector<8x8xbf16>
    %168 = vector.extract_strided_slice %21 {offsets = [8, 0], sizes = [8, 32], strides = [1, 1]} : vector<32x32xf32> to vector<8x32xf32>
    %169 = arith.truncf %168 : vector<8x32xf32> to vector<8x32xbf16>
    %cst_52 = arith.constant dense<0.000000e+00> : vector<8x32xf32>
    %170 = tpu.matmul %167, %169, %cst_52 {dimension_numbers = #tpu.dot_dimension_numbers<[1], [0], [0], [1], [0, 0, 1, 1], [], []>} : vector<8x8xbf16>, vector<8x32xbf16>, vector<8x32xf32> -> vector<8x32xf32>
    %171 = arith.addf %147, %170 : vector<8x32xf32>
    %172 = vector.extract_strided_slice %122 {offsets = [0, 16], sizes = [8, 8], strides = [1, 1]} : vector<8x32xf32> to vector<8x8xf32>
    %173 = vector.extract_strided_slice %123 {offsets = [0, 16], sizes = [8, 8], strides = [1, 1]} : vector<8x32xf32> to vector<8x8xf32>
    %174 = vector.extract_strided_slice %124 {offsets = [0, 16], sizes = [8, 8], strides = [1, 1]} : vector<8x32xf32> to vector<8x8xf32>
    %175 = tpu.transpose %173, [1, 0] : vector<8x8xf32> -> vector<8x8xf32>
    %cst_53 = arith.constant dense<0.000000e+00> : vector<8x8xf32>
    %176 = tpu.matmul %172, %175, %cst_53 {dimension_numbers = #tpu.dot_dimension_numbers<[1], [0], [0], [1], [0, 0, 1, 1], [], []>} : vector<8x8xf32>, vector<8x8xf32>, vector<8x8xf32> -> vector<8x8xf32>
    %cst_54 = arith.constant 0.353553385 : f32
    %177 = vector.broadcast %cst_54 : f32 to vector<8x8xf32>
    %178 = arith.mulf %176, %177 : vector<8x8xf32>
    %179 = arith.addf %178, %5 : vector<8x8xf32>
    %cst_55 = arith.constant dense<0xFF800000> : vector<8xf32>
    %180 = vector.multi_reduction <maximumf>, %179, %cst_55 [1] : vector<8x8xf32> to vector<8xf32>
    %181 = vector.shape_cast %180 : vector<8xf32> to vector<8x1xf32>
    %182 = vector.broadcast %181 : vector<8x1xf32> to vector<8x8xf32>
    %183 = arith.subf %179, %182 : vector<8x8xf32>
    %184 = math.exp %183 : vector<8x8xf32>
    %cst_56 = arith.constant dense<0.000000e+00> : vector<8xf32>
    %185 = vector.multi_reduction <add>, %184, %cst_56 [1] : vector<8x8xf32> to vector<8xf32>
    %186 = vector.shape_cast %185 : vector<8xf32> to vector<8x1xf32>
    %187 = tpu.reciprocal %186 {approx = true} : vector<8x1xf32> -> vector<8x1xf32>
    %188 = vector.broadcast %187 : vector<8x1xf32> to vector<8x8xf32>
    %189 = arith.mulf %184, %188 : vector<8x8xf32>
    %cst_57 = arith.constant dense<0.000000e+00> : vector<8x8xf32>
    %190 = tpu.matmul %189, %174, %cst_57 {dimension_numbers = #tpu.dot_dimension_numbers<[1], [0], [0], [1], [0, 0, 1, 1], [], []>} : vector<8x8xf32>, vector<8x8xf32>, vector<8x8xf32> -> vector<8x8xf32>
    %191 = arith.truncf %190 : vector<8x8xf32> to vector<8x8xbf16>
    %192 = vector.extract_strided_slice %21 {offsets = [16, 0], sizes = [8, 32], strides = [1, 1]} : vector<32x32xf32> to vector<8x32xf32>
    %193 = arith.truncf %192 : vector<8x32xf32> to vector<8x32xbf16>
    %cst_58 = arith.constant dense<0.000000e+00> : vector<8x32xf32>
    %194 = tpu.matmul %191, %193, %cst_58 {dimension_numbers = #tpu.dot_dimension_numbers<[1], [0], [0], [1], [0, 0, 1, 1], [], []>} : vector<8x8xbf16>, vector<8x32xbf16>, vector<8x32xf32> -> vector<8x32xf32>
    %195 = arith.addf %171, %194 : vector<8x32xf32>
    %196 = vector.extract_strided_slice %122 {offsets = [0, 24], sizes = [8, 8], strides = [1, 1]} : vector<8x32xf32> to vector<8x8xf32>
    %197 = vector.extract_strided_slice %123 {offsets = [0, 24], sizes = [8, 8], strides = [1, 1]} : vector<8x32xf32> to vector<8x8xf32>
    %198 = vector.extract_strided_slice %124 {offsets = [0, 24], sizes = [8, 8], strides = [1, 1]} : vector<8x32xf32> to vector<8x8xf32>
    %199 = tpu.transpose %197, [1, 0] : vector<8x8xf32> -> vector<8x8xf32>
    %cst_59 = arith.constant dense<0.000000e+00> : vector<8x8xf32>
    %200 = tpu.matmul %196, %199, %cst_59 {dimension_numbers = #tpu.dot_dimension_numbers<[1], [0], [0], [1], [0, 0, 1, 1], [], []>} : vector<8x8xf32>, vector<8x8xf32>, vector<8x8xf32> -> vector<8x8xf32>
    %cst_60 = arith.constant 0.353553385 : f32
    %201 = vector.broadcast %cst_60 : f32 to vector<8x8xf32>
    %202 = arith.mulf %200, %201 : vector<8x8xf32>
    %203 = arith.addf %202, %5 : vector<8x8xf32>
    %cst_61 = arith.constant dense<0xFF800000> : vector<8xf32>
    %204 = vector.multi_reduction <maximumf>, %203, %cst_61 [1] : vector<8x8xf32> to vector<8xf32>
    %205 = vector.shape_cast %204 : vector<8xf32> to vector<8x1xf32>
    %206 = vector.broadcast %205 : vector<8x1xf32> to vector<8x8xf32>
    %207 = arith.subf %203, %206 : vector<8x8xf32>
    %208 = math.exp %207 : vector<8x8xf32>
    %cst_62 = arith.constant dense<0.000000e+00> : vector<8xf32>
    %209 = vector.multi_reduction <add>, %208, %cst_62 [1] : vector<8x8xf32> to vector<8xf32>
    %210 = vector.shape_cast %209 : vector<8xf32> to vector<8x1xf32>
    %211 = tpu.reciprocal %210 {approx = true} : vector<8x1xf32> -> vector<8x1xf32>
    %212 = vector.broadcast %211 : vector<8x1xf32> to vector<8x8xf32>
    %213 = arith.mulf %208, %212 : vector<8x8xf32>
    %cst_63 = arith.constant dense<0.000000e+00> : vector<8x8xf32>
    %214 = tpu.matmul %213, %198, %cst_63 {dimension_numbers = #tpu.dot_dimension_numbers<[1], [0], [0], [1], [0, 0, 1, 1], [], []>} : vector<8x8xf32>, vector<8x8xf32>, vector<8x8xf32> -> vector<8x8xf32>
    %215 = arith.truncf %214 : vector<8x8xf32> to vector<8x8xbf16>
    %216 = vector.extract_strided_slice %21 {offsets = [24, 0], sizes = [8, 32], strides = [1, 1]} : vector<32x32xf32> to vector<8x32xf32>
    %217 = arith.truncf %216 : vector<8x32xf32> to vector<8x32xbf16>
    %cst_64 = arith.constant dense<0.000000e+00> : vector<8x32xf32>
    %218 = tpu.matmul %215, %217, %cst_64 {dimension_numbers = #tpu.dot_dimension_numbers<[1], [0], [0], [1], [0, 0, 1, 1], [], []>} : vector<8x8xbf16>, vector<8x32xbf16>, vector<8x32xf32> -> vector<8x32xf32>
    %219 = arith.addf %195, %218 : vector<8x32xf32>
    %220 = tpu.concatenate %121, %219 in 0 : vector<8x32xf32>, vector<8x32xf32> -> vector<16x32xf32>
    %221 = vector.broadcast %23 : vector<1x32xf32> to vector<16x32xf32>
    %222 = arith.addf %220, %221 : vector<16x32xf32>
    %223 = arith.addf %6, %222 : vector<16x32xf32>
    %c0_65 = arith.constant 0 : index
    %c0_66 = arith.constant 0 : index
    %c0_67 = arith.constant 0 : index
    %224 = vector.load %arg16[%c0_65, %c0_66, %c0_67] : memref<2x1x32xf32, #tpu.memory_space<vmem>>, vector<1x1x32xf32>
    %225 = vector.shape_cast %224 : vector<1x1x32xf32> to vector<1x32xf32>
    %c0_68 = arith.constant 0 : index
    %c0_69 = arith.constant 0 : index
    %c0_70 = arith.constant 0 : index
    %226 = vector.load %arg17[%c0_68, %c0_69, %c0_70] : memref<2x1x32xf32, #tpu.memory_space<vmem>>, vector<1x1x32xf32>
    %227 = vector.shape_cast %226 : vector<1x1x32xf32> to vector<1x32xf32>
    %cst_71 = arith.constant dense<0.000000e+00> : vector<16xf32>
    %228 = vector.multi_reduction <add>, %223, %cst_71 [1] : vector<16x32xf32> to vector<16xf32>
    %229 = vector.shape_cast %228 : vector<16xf32> to vector<16x1xf32>
    %cst_72 = arith.constant 3.200000e+01 : f32
    %230 = vector.broadcast %cst_72 : f32 to vector<16x1xf32>
    %231 = arith.divf %229, %230 : vector<16x1xf32>
    %232 = vector.broadcast %231 : vector<16x1xf32> to vector<16x32xf32>
    %233 = arith.subf %223, %232 : vector<16x32xf32>
    %234 = arith.mulf %233, %233 : vector<16x32xf32>
    %cst_73 = arith.constant dense<0.000000e+00> : vector<16xf32>
    %235 = vector.multi_reduction <add>, %234, %cst_73 [1] : vector<16x32xf32> to vector<16xf32>
    %236 = vector.shape_cast %235 : vector<16xf32> to vector<16x1xf32>
    %cst_74 = arith.constant 3.200000e+01 : f32
    %237 = vector.broadcast %cst_74 : f32 to vector<16x1xf32>
    %238 = arith.divf %236, %237 : vector<16x1xf32>
    %239 = vector.broadcast %231 : vector<16x1xf32> to vector<16x32xf32>
    %240 = arith.subf %223, %239 : vector<16x32xf32>
    %cst_75 = arith.constant 9.99999974E-6 : f32
    %241 = vector.broadcast %cst_75 : f32 to vector<16x1xf32>
    %242 = arith.addf %238, %241 : vector<16x1xf32>
    %243 = math.rsqrt %242 : vector<16x1xf32>
    %244 = vector.broadcast %243 : vector<16x1xf32> to vector<16x32xf32>
    %245 = arith.mulf %240, %244 : vector<16x32xf32>
    %246 = vector.broadcast %225 : vector<1x32xf32> to vector<16x32xf32>
    %247 = arith.mulf %245, %246 : vector<16x32xf32>
    %248 = vector.broadcast %227 : vector<1x32xf32> to vector<16x32xf32>
    %249 = arith.addf %247, %248 : vector<16x32xf32>
    %c0_76 = arith.constant 0 : index
    %c0_77 = arith.constant 0 : index
    %c0_78 = arith.constant 0 : index
    %250 = vector.load %arg6[%c0_76, %c0_77, %c0_78] : memref<2x32x32xf32, #tpu.memory_space<vmem>>, vector<1x32x32xf32>
    %251 = vector.shape_cast %250 : vector<1x32x32xf32> to vector<32x32xf32>
    %c0_79 = arith.constant 0 : index
    %c0_80 = arith.constant 0 : index
    %c0_81 = arith.constant 0 : index
    %252 = vector.load %arg7[%c0_79, %c0_80, %c0_81] : memref<2x1x32xf32, #tpu.memory_space<vmem>>, vector<1x1x32xf32>
    %253 = vector.shape_cast %252 : vector<1x1x32xf32> to vector<1x32xf32>
    %254 = arith.truncf %249 : vector<16x32xf32> to vector<16x32xbf16>
    %255 = arith.truncf %251 : vector<32x32xf32> to vector<32x32xbf16>
    %cst_82 = arith.constant dense<0.000000e+00> : vector<16x32xf32>
    %256 = tpu.matmul %254, %255, %cst_82 {dimension_numbers = #tpu.dot_dimension_numbers<[1], [0], [0], [1], [0, 0, 1, 1], [], []>} : vector<16x32xbf16>, vector<32x32xbf16>, vector<16x32xf32> -> vector<16x32xf32>
    %257 = vector.broadcast %253 : vector<1x32xf32> to vector<16x32xf32>
    %258 = arith.addf %256, %257 : vector<16x32xf32>
    %c0_83 = arith.constant 0 : index
    %c0_84 = arith.constant 0 : index
    %c0_85 = arith.constant 0 : index
    %259 = vector.load %arg8[%c0_83, %c0_84, %c0_85] : memref<2x32x64xf32, #tpu.memory_space<vmem>>, vector<1x32x64xf32>
    %260 = vector.shape_cast %259 : vector<1x32x64xf32> to vector<32x64xf32>
    %c0_86 = arith.constant 0 : index
    %c0_87 = arith.constant 0 : index
    %c0_88 = arith.constant 0 : index
    %261 = vector.load %arg9[%c0_86, %c0_87, %c0_88] : memref<2x1x64xf32, #tpu.memory_space<vmem>>, vector<1x1x64xf32>
    %262 = vector.shape_cast %261 : vector<1x1x64xf32> to vector<1x64xf32>
    %263 = arith.truncf %7 : vector<16x32xf32> to vector<16x32xbf16>
    %264 = arith.truncf %260 : vector<32x64xf32> to vector<32x64xbf16>
    %cst_89 = arith.constant dense<0.000000e+00> : vector<16x64xf32>
    %265 = tpu.matmul %263, %264, %cst_89 {dimension_numbers = #tpu.dot_dimension_numbers<[1], [0], [0], [1], [0, 0, 1, 1], [], []>} : vector<16x32xbf16>, vector<32x64xbf16>, vector<16x64xf32> -> vector<16x64xf32>
    %266 = vector.broadcast %262 : vector<1x64xf32> to vector<16x64xf32>
    %267 = arith.addf %265, %266 : vector<16x64xf32>
    %268 = vector.extract_strided_slice %267 {offsets = [0, 0], sizes = [16, 32], strides = [1, 1]} : vector<16x64xf32> to vector<16x32xf32>
    %269 = vector.extract_strided_slice %267 {offsets = [0, 32], sizes = [16, 32], strides = [1, 1]} : vector<16x64xf32> to vector<16x32xf32>
    %c0_90 = arith.constant 0 : index
    %c0_91 = arith.constant 0 : index
    %c0_92 = arith.constant 0 : index
    %270 = vector.load %arg10[%c0_90, %c0_91, %c0_92] : memref<2x32x32xf32, #tpu.memory_space<vmem>>, vector<1x32x32xf32>
    %271 = vector.shape_cast %270 : vector<1x32x32xf32> to vector<32x32xf32>
    %c0_93 = arith.constant 0 : index
    %c0_94 = arith.constant 0 : index
    %c0_95 = arith.constant 0 : index
    %272 = vector.load %arg11[%c0_93, %c0_94, %c0_95] : memref<2x1x32xf32, #tpu.memory_space<vmem>>, vector<1x1x32xf32>
    %273 = vector.shape_cast %272 : vector<1x1x32xf32> to vector<1x32xf32>
    %274 = vector.extract_strided_slice %258 {offsets = [0, 0], sizes = [8, 32], strides = [1, 1]} : vector<16x32xf32> to vector<8x32xf32>
    %275 = vector.extract_strided_slice %268 {offsets = [0, 0], sizes = [8, 32], strides = [1, 1]} : vector<16x32xf32> to vector<8x32xf32>
    %276 = vector.extract_strided_slice %269 {offsets = [0, 0], sizes = [8, 32], strides = [1, 1]} : vector<16x32xf32> to vector<8x32xf32>
    %277 = vector.extract_strided_slice %274 {offsets = [0, 0], sizes = [8, 8], strides = [1, 1]} : vector<8x32xf32> to vector<8x8xf32>
    %278 = vector.extract_strided_slice %275 {offsets = [0, 0], sizes = [8, 8], strides = [1, 1]} : vector<8x32xf32> to vector<8x8xf32>
    %279 = vector.extract_strided_slice %276 {offsets = [0, 0], sizes = [8, 8], strides = [1, 1]} : vector<8x32xf32> to vector<8x8xf32>
    %280 = tpu.transpose %278, [1, 0] : vector<8x8xf32> -> vector<8x8xf32>
    %cst_96 = arith.constant dense<0.000000e+00> : vector<8x8xf32>
    %281 = tpu.matmul %277, %280, %cst_96 {dimension_numbers = #tpu.dot_dimension_numbers<[1], [0], [0], [1], [0, 0, 1, 1], [], []>} : vector<8x8xf32>, vector<8x8xf32>, vector<8x8xf32> -> vector<8x8xf32>
    %cst_97 = arith.constant 0.353553385 : f32
    %282 = vector.broadcast %cst_97 : f32 to vector<8x8xf32>
    %283 = arith.mulf %281, %282 : vector<8x8xf32>
    %cst_98 = arith.constant dense<0xFF800000> : vector<8xf32>
    %284 = vector.multi_reduction <maximumf>, %283, %cst_98 [1] : vector<8x8xf32> to vector<8xf32>
    %285 = vector.shape_cast %284 : vector<8xf32> to vector<8x1xf32>
    %286 = vector.broadcast %285 : vector<8x1xf32> to vector<8x8xf32>
    %287 = arith.subf %283, %286 : vector<8x8xf32>
    %288 = math.exp %287 : vector<8x8xf32>
    %cst_99 = arith.constant dense<0.000000e+00> : vector<8xf32>
    %289 = vector.multi_reduction <add>, %288, %cst_99 [1] : vector<8x8xf32> to vector<8xf32>
    %290 = vector.shape_cast %289 : vector<8xf32> to vector<8x1xf32>
    %291 = tpu.reciprocal %290 {approx = true} : vector<8x1xf32> -> vector<8x1xf32>
    %292 = vector.broadcast %291 : vector<8x1xf32> to vector<8x8xf32>
    %293 = arith.mulf %288, %292 : vector<8x8xf32>
    %cst_100 = arith.constant dense<0.000000e+00> : vector<8x8xf32>
    %294 = tpu.matmul %293, %279, %cst_100 {dimension_numbers = #tpu.dot_dimension_numbers<[1], [0], [0], [1], [0, 0, 1, 1], [], []>} : vector<8x8xf32>, vector<8x8xf32>, vector<8x8xf32> -> vector<8x8xf32>
    %295 = arith.truncf %294 : vector<8x8xf32> to vector<8x8xbf16>
    %296 = vector.extract_strided_slice %271 {offsets = [0, 0], sizes = [8, 32], strides = [1, 1]} : vector<32x32xf32> to vector<8x32xf32>
    %297 = arith.truncf %296 : vector<8x32xf32> to vector<8x32xbf16>
    %cst_101 = arith.constant dense<0.000000e+00> : vector<8x32xf32>
    %298 = tpu.matmul %295, %297, %cst_101 {dimension_numbers = #tpu.dot_dimension_numbers<[1], [0], [0], [1], [0, 0, 1, 1], [], []>} : vector<8x8xbf16>, vector<8x32xbf16>, vector<8x32xf32> -> vector<8x32xf32>
    %299 = vector.extract_strided_slice %274 {offsets = [0, 8], sizes = [8, 8], strides = [1, 1]} : vector<8x32xf32> to vector<8x8xf32>
    %300 = vector.extract_strided_slice %275 {offsets = [0, 8], sizes = [8, 8], strides = [1, 1]} : vector<8x32xf32> to vector<8x8xf32>
    %301 = vector.extract_strided_slice %276 {offsets = [0, 8], sizes = [8, 8], strides = [1, 1]} : vector<8x32xf32> to vector<8x8xf32>
    %302 = tpu.transpose %300, [1, 0] : vector<8x8xf32> -> vector<8x8xf32>
    %cst_102 = arith.constant dense<0.000000e+00> : vector<8x8xf32>
    %303 = tpu.matmul %299, %302, %cst_102 {dimension_numbers = #tpu.dot_dimension_numbers<[1], [0], [0], [1], [0, 0, 1, 1], [], []>} : vector<8x8xf32>, vector<8x8xf32>, vector<8x8xf32> -> vector<8x8xf32>
    %cst_103 = arith.constant 0.353553385 : f32
    %304 = vector.broadcast %cst_103 : f32 to vector<8x8xf32>
    %305 = arith.mulf %303, %304 : vector<8x8xf32>
    %cst_104 = arith.constant dense<0xFF800000> : vector<8xf32>
    %306 = vector.multi_reduction <maximumf>, %305, %cst_104 [1] : vector<8x8xf32> to vector<8xf32>
    %307 = vector.shape_cast %306 : vector<8xf32> to vector<8x1xf32>
    %308 = vector.broadcast %307 : vector<8x1xf32> to vector<8x8xf32>
    %309 = arith.subf %305, %308 : vector<8x8xf32>
    %310 = math.exp %309 : vector<8x8xf32>
    %cst_105 = arith.constant dense<0.000000e+00> : vector<8xf32>
    %311 = vector.multi_reduction <add>, %310, %cst_105 [1] : vector<8x8xf32> to vector<8xf32>
    %312 = vector.shape_cast %311 : vector<8xf32> to vector<8x1xf32>
    %313 = tpu.reciprocal %312 {approx = true} : vector<8x1xf32> -> vector<8x1xf32>
    %314 = vector.broadcast %313 : vector<8x1xf32> to vector<8x8xf32>
    %315 = arith.mulf %310, %314 : vector<8x8xf32>
    %cst_106 = arith.constant dense<0.000000e+00> : vector<8x8xf32>
    %316 = tpu.matmul %315, %301, %cst_106 {dimension_numbers = #tpu.dot_dimension_numbers<[1], [0], [0], [1], [0, 0, 1, 1], [], []>} : vector<8x8xf32>, vector<8x8xf32>, vector<8x8xf32> -> vector<8x8xf32>
    %317 = arith.truncf %316 : vector<8x8xf32> to vector<8x8xbf16>
    %318 = vector.extract_strided_slice %271 {offsets = [8, 0], sizes = [8, 32], strides = [1, 1]} : vector<32x32xf32> to vector<8x32xf32>
    %319 = arith.truncf %318 : vector<8x32xf32> to vector<8x32xbf16>
    %cst_107 = arith.constant dense<0.000000e+00> : vector<8x32xf32>
    %320 = tpu.matmul %317, %319, %cst_107 {dimension_numbers = #tpu.dot_dimension_numbers<[1], [0], [0], [1], [0, 0, 1, 1], [], []>} : vector<8x8xbf16>, vector<8x32xbf16>, vector<8x32xf32> -> vector<8x32xf32>
    %321 = arith.addf %298, %320 : vector<8x32xf32>
    %322 = vector.extract_strided_slice %274 {offsets = [0, 16], sizes = [8, 8], strides = [1, 1]} : vector<8x32xf32> to vector<8x8xf32>
    %323 = vector.extract_strided_slice %275 {offsets = [0, 16], sizes = [8, 8], strides = [1, 1]} : vector<8x32xf32> to vector<8x8xf32>
    %324 = vector.extract_strided_slice %276 {offsets = [0, 16], sizes = [8, 8], strides = [1, 1]} : vector<8x32xf32> to vector<8x8xf32>
    %325 = tpu.transpose %323, [1, 0] : vector<8x8xf32> -> vector<8x8xf32>
    %cst_108 = arith.constant dense<0.000000e+00> : vector<8x8xf32>
    %326 = tpu.matmul %322, %325, %cst_108 {dimension_numbers = #tpu.dot_dimension_numbers<[1], [0], [0], [1], [0, 0, 1, 1], [], []>} : vector<8x8xf32>, vector<8x8xf32>, vector<8x8xf32> -> vector<8x8xf32>
    %cst_109 = arith.constant 0.353553385 : f32
    %327 = vector.broadcast %cst_109 : f32 to vector<8x8xf32>
    %328 = arith.mulf %326, %327 : vector<8x8xf32>
    %cst_110 = arith.constant dense<0xFF800000> : vector<8xf32>
    %329 = vector.multi_reduction <maximumf>, %328, %cst_110 [1] : vector<8x8xf32> to vector<8xf32>
    %330 = vector.shape_cast %329 : vector<8xf32> to vector<8x1xf32>
    %331 = vector.broadcast %330 : vector<8x1xf32> to vector<8x8xf32>
    %332 = arith.subf %328, %331 : vector<8x8xf32>
    %333 = math.exp %332 : vector<8x8xf32>
    %cst_111 = arith.constant dense<0.000000e+00> : vector<8xf32>
    %334 = vector.multi_reduction <add>, %333, %cst_111 [1] : vector<8x8xf32> to vector<8xf32>
    %335 = vector.shape_cast %334 : vector<8xf32> to vector<8x1xf32>
    %336 = tpu.reciprocal %335 {approx = true} : vector<8x1xf32> -> vector<8x1xf32>
    %337 = vector.broadcast %336 : vector<8x1xf32> to vector<8x8xf32>
    %338 = arith.mulf %333, %337 : vector<8x8xf32>
    %cst_112 = arith.constant dense<0.000000e+00> : vector<8x8xf32>
    %339 = tpu.matmul %338, %324, %cst_112 {dimension_numbers = #tpu.dot_dimension_numbers<[1], [0], [0], [1], [0, 0, 1, 1], [], []>} : vector<8x8xf32>, vector<8x8xf32>, vector<8x8xf32> -> vector<8x8xf32>
    %340 = arith.truncf %339 : vector<8x8xf32> to vector<8x8xbf16>
    %341 = vector.extract_strided_slice %271 {offsets = [16, 0], sizes = [8, 32], strides = [1, 1]} : vector<32x32xf32> to vector<8x32xf32>
    %342 = arith.truncf %341 : vector<8x32xf32> to vector<8x32xbf16>
    %cst_113 = arith.constant dense<0.000000e+00> : vector<8x32xf32>
    %343 = tpu.matmul %340, %342, %cst_113 {dimension_numbers = #tpu.dot_dimension_numbers<[1], [0], [0], [1], [0, 0, 1, 1], [], []>} : vector<8x8xbf16>, vector<8x32xbf16>, vector<8x32xf32> -> vector<8x32xf32>
    %344 = arith.addf %321, %343 : vector<8x32xf32>
    %345 = vector.extract_strided_slice %274 {offsets = [0, 24], sizes = [8, 8], strides = [1, 1]} : vector<8x32xf32> to vector<8x8xf32>
    %346 = vector.extract_strided_slice %275 {offsets = [0, 24], sizes = [8, 8], strides = [1, 1]} : vector<8x32xf32> to vector<8x8xf32>
    %347 = vector.extract_strided_slice %276 {offsets = [0, 24], sizes = [8, 8], strides = [1, 1]} : vector<8x32xf32> to vector<8x8xf32>
    %348 = tpu.transpose %346, [1, 0] : vector<8x8xf32> -> vector<8x8xf32>
    %cst_114 = arith.constant dense<0.000000e+00> : vector<8x8xf32>
    %349 = tpu.matmul %345, %348, %cst_114 {dimension_numbers = #tpu.dot_dimension_numbers<[1], [0], [0], [1], [0, 0, 1, 1], [], []>} : vector<8x8xf32>, vector<8x8xf32>, vector<8x8xf32> -> vector<8x8xf32>
    %cst_115 = arith.constant 0.353553385 : f32
    %350 = vector.broadcast %cst_115 : f32 to vector<8x8xf32>
    %351 = arith.mulf %349, %350 : vector<8x8xf32>
    %cst_116 = arith.constant dense<0xFF800000> : vector<8xf32>
    %352 = vector.multi_reduction <maximumf>, %351, %cst_116 [1] : vector<8x8xf32> to vector<8xf32>
    %353 = vector.shape_cast %352 : vector<8xf32> to vector<8x1xf32>
    %354 = vector.broadcast %353 : vector<8x1xf32> to vector<8x8xf32>
    %355 = arith.subf %351, %354 : vector<8x8xf32>
    %356 = math.exp %355 : vector<8x8xf32>
    %cst_117 = arith.constant dense<0.000000e+00> : vector<8xf32>
    %357 = vector.multi_reduction <add>, %356, %cst_117 [1] : vector<8x8xf32> to vector<8xf32>
    %358 = vector.shape_cast %357 : vector<8xf32> to vector<8x1xf32>
    %359 = tpu.reciprocal %358 {approx = true} : vector<8x1xf32> -> vector<8x1xf32>
    %360 = vector.broadcast %359 : vector<8x1xf32> to vector<8x8xf32>
    %361 = arith.mulf %356, %360 : vector<8x8xf32>
    %cst_118 = arith.constant dense<0.000000e+00> : vector<8x8xf32>
    %362 = tpu.matmul %361, %347, %cst_118 {dimension_numbers = #tpu.dot_dimension_numbers<[1], [0], [0], [1], [0, 0, 1, 1], [], []>} : vector<8x8xf32>, vector<8x8xf32>, vector<8x8xf32> -> vector<8x8xf32>
    %363 = arith.truncf %362 : vector<8x8xf32> to vector<8x8xbf16>
    %364 = vector.extract_strided_slice %271 {offsets = [24, 0], sizes = [8, 32], strides = [1, 1]} : vector<32x32xf32> to vector<8x32xf32>
    %365 = arith.truncf %364 : vector<8x32xf32> to vector<8x32xbf16>
    %cst_119 = arith.constant dense<0.000000e+00> : vector<8x32xf32>
    %366 = tpu.matmul %363, %365, %cst_119 {dimension_numbers = #tpu.dot_dimension_numbers<[1], [0], [0], [1], [0, 0, 1, 1], [], []>} : vector<8x8xbf16>, vector<8x32xbf16>, vector<8x32xf32> -> vector<8x32xf32>
    %367 = arith.addf %344, %366 : vector<8x32xf32>
    %368 = vector.extract_strided_slice %258 {offsets = [8, 0], sizes = [8, 32], strides = [1, 1]} : vector<16x32xf32> to vector<8x32xf32>
    %369 = vector.extract_strided_slice %268 {offsets = [8, 0], sizes = [8, 32], strides = [1, 1]} : vector<16x32xf32> to vector<8x32xf32>
    %370 = vector.extract_strided_slice %269 {offsets = [8, 0], sizes = [8, 32], strides = [1, 1]} : vector<16x32xf32> to vector<8x32xf32>
    %371 = vector.extract_strided_slice %368 {offsets = [0, 0], sizes = [8, 8], strides = [1, 1]} : vector<8x32xf32> to vector<8x8xf32>
    %372 = vector.extract_strided_slice %369 {offsets = [0, 0], sizes = [8, 8], strides = [1, 1]} : vector<8x32xf32> to vector<8x8xf32>
    %373 = vector.extract_strided_slice %370 {offsets = [0, 0], sizes = [8, 8], strides = [1, 1]} : vector<8x32xf32> to vector<8x8xf32>
    %374 = tpu.transpose %372, [1, 0] : vector<8x8xf32> -> vector<8x8xf32>
    %cst_120 = arith.constant dense<0.000000e+00> : vector<8x8xf32>
    %375 = tpu.matmul %371, %374, %cst_120 {dimension_numbers = #tpu.dot_dimension_numbers<[1], [0], [0], [1], [0, 0, 1, 1], [], []>} : vector<8x8xf32>, vector<8x8xf32>, vector<8x8xf32> -> vector<8x8xf32>
    %cst_121 = arith.constant 0.353553385 : f32
    %376 = vector.broadcast %cst_121 : f32 to vector<8x8xf32>
    %377 = arith.mulf %375, %376 : vector<8x8xf32>
    %cst_122 = arith.constant dense<0xFF800000> : vector<8xf32>
    %378 = vector.multi_reduction <maximumf>, %377, %cst_122 [1] : vector<8x8xf32> to vector<8xf32>
    %379 = vector.shape_cast %378 : vector<8xf32> to vector<8x1xf32>
    %380 = vector.broadcast %379 : vector<8x1xf32> to vector<8x8xf32>
    %381 = arith.subf %377, %380 : vector<8x8xf32>
    %382 = math.exp %381 : vector<8x8xf32>
    %cst_123 = arith.constant dense<0.000000e+00> : vector<8xf32>
    %383 = vector.multi_reduction <add>, %382, %cst_123 [1] : vector<8x8xf32> to vector<8xf32>
    %384 = vector.shape_cast %383 : vector<8xf32> to vector<8x1xf32>
    %385 = tpu.reciprocal %384 {approx = true} : vector<8x1xf32> -> vector<8x1xf32>
    %386 = vector.broadcast %385 : vector<8x1xf32> to vector<8x8xf32>
    %387 = arith.mulf %382, %386 : vector<8x8xf32>
    %cst_124 = arith.constant dense<0.000000e+00> : vector<8x8xf32>
    %388 = tpu.matmul %387, %373, %cst_124 {dimension_numbers = #tpu.dot_dimension_numbers<[1], [0], [0], [1], [0, 0, 1, 1], [], []>} : vector<8x8xf32>, vector<8x8xf32>, vector<8x8xf32> -> vector<8x8xf32>
    %389 = arith.truncf %388 : vector<8x8xf32> to vector<8x8xbf16>
    %390 = vector.extract_strided_slice %271 {offsets = [0, 0], sizes = [8, 32], strides = [1, 1]} : vector<32x32xf32> to vector<8x32xf32>
    %391 = arith.truncf %390 : vector<8x32xf32> to vector<8x32xbf16>
    %cst_125 = arith.constant dense<0.000000e+00> : vector<8x32xf32>
    %392 = tpu.matmul %389, %391, %cst_125 {dimension_numbers = #tpu.dot_dimension_numbers<[1], [0], [0], [1], [0, 0, 1, 1], [], []>} : vector<8x8xbf16>, vector<8x32xbf16>, vector<8x32xf32> -> vector<8x32xf32>
    %393 = vector.extract_strided_slice %368 {offsets = [0, 8], sizes = [8, 8], strides = [1, 1]} : vector<8x32xf32> to vector<8x8xf32>
    %394 = vector.extract_strided_slice %369 {offsets = [0, 8], sizes = [8, 8], strides = [1, 1]} : vector<8x32xf32> to vector<8x8xf32>
    %395 = vector.extract_strided_slice %370 {offsets = [0, 8], sizes = [8, 8], strides = [1, 1]} : vector<8x32xf32> to vector<8x8xf32>
    %396 = tpu.transpose %394, [1, 0] : vector<8x8xf32> -> vector<8x8xf32>
    %cst_126 = arith.constant dense<0.000000e+00> : vector<8x8xf32>
    %397 = tpu.matmul %393, %396, %cst_126 {dimension_numbers = #tpu.dot_dimension_numbers<[1], [0], [0], [1], [0, 0, 1, 1], [], []>} : vector<8x8xf32>, vector<8x8xf32>, vector<8x8xf32> -> vector<8x8xf32>
    %cst_127 = arith.constant 0.353553385 : f32
    %398 = vector.broadcast %cst_127 : f32 to vector<8x8xf32>
    %399 = arith.mulf %397, %398 : vector<8x8xf32>
    %cst_128 = arith.constant dense<0xFF800000> : vector<8xf32>
    %400 = vector.multi_reduction <maximumf>, %399, %cst_128 [1] : vector<8x8xf32> to vector<8xf32>
    %401 = vector.shape_cast %400 : vector<8xf32> to vector<8x1xf32>
    %402 = vector.broadcast %401 : vector<8x1xf32> to vector<8x8xf32>
    %403 = arith.subf %399, %402 : vector<8x8xf32>
    %404 = math.exp %403 : vector<8x8xf32>
    %cst_129 = arith.constant dense<0.000000e+00> : vector<8xf32>
    %405 = vector.multi_reduction <add>, %404, %cst_129 [1] : vector<8x8xf32> to vector<8xf32>
    %406 = vector.shape_cast %405 : vector<8xf32> to vector<8x1xf32>
    %407 = tpu.reciprocal %406 {approx = true} : vector<8x1xf32> -> vector<8x1xf32>
    %408 = vector.broadcast %407 : vector<8x1xf32> to vector<8x8xf32>
    %409 = arith.mulf %404, %408 : vector<8x8xf32>
    %cst_130 = arith.constant dense<0.000000e+00> : vector<8x8xf32>
    %410 = tpu.matmul %409, %395, %cst_130 {dimension_numbers = #tpu.dot_dimension_numbers<[1], [0], [0], [1], [0, 0, 1, 1], [], []>} : vector<8x8xf32>, vector<8x8xf32>, vector<8x8xf32> -> vector<8x8xf32>
    %411 = arith.truncf %410 : vector<8x8xf32> to vector<8x8xbf16>
    %412 = vector.extract_strided_slice %271 {offsets = [8, 0], sizes = [8, 32], strides = [1, 1]} : vector<32x32xf32> to vector<8x32xf32>
    %413 = arith.truncf %412 : vector<8x32xf32> to vector<8x32xbf16>
    %cst_131 = arith.constant dense<0.000000e+00> : vector<8x32xf32>
    %414 = tpu.matmul %411, %413, %cst_131 {dimension_numbers = #tpu.dot_dimension_numbers<[1], [0], [0], [1], [0, 0, 1, 1], [], []>} : vector<8x8xbf16>, vector<8x32xbf16>, vector<8x32xf32> -> vector<8x32xf32>
    %415 = arith.addf %392, %414 : vector<8x32xf32>
    %416 = vector.extract_strided_slice %368 {offsets = [0, 16], sizes = [8, 8], strides = [1, 1]} : vector<8x32xf32> to vector<8x8xf32>
    %417 = vector.extract_strided_slice %369 {offsets = [0, 16], sizes = [8, 8], strides = [1, 1]} : vector<8x32xf32> to vector<8x8xf32>
    %418 = vector.extract_strided_slice %370 {offsets = [0, 16], sizes = [8, 8], strides = [1, 1]} : vector<8x32xf32> to vector<8x8xf32>
    %419 = tpu.transpose %417, [1, 0] : vector<8x8xf32> -> vector<8x8xf32>
    %cst_132 = arith.constant dense<0.000000e+00> : vector<8x8xf32>
    %420 = tpu.matmul %416, %419, %cst_132 {dimension_numbers = #tpu.dot_dimension_numbers<[1], [0], [0], [1], [0, 0, 1, 1], [], []>} : vector<8x8xf32>, vector<8x8xf32>, vector<8x8xf32> -> vector<8x8xf32>
    %cst_133 = arith.constant 0.353553385 : f32
    %421 = vector.broadcast %cst_133 : f32 to vector<8x8xf32>
    %422 = arith.mulf %420, %421 : vector<8x8xf32>
    %cst_134 = arith.constant dense<0xFF800000> : vector<8xf32>
    %423 = vector.multi_reduction <maximumf>, %422, %cst_134 [1] : vector<8x8xf32> to vector<8xf32>
    %424 = vector.shape_cast %423 : vector<8xf32> to vector<8x1xf32>
    %425 = vector.broadcast %424 : vector<8x1xf32> to vector<8x8xf32>
    %426 = arith.subf %422, %425 : vector<8x8xf32>
    %427 = math.exp %426 : vector<8x8xf32>
    %cst_135 = arith.constant dense<0.000000e+00> : vector<8xf32>
    %428 = vector.multi_reduction <add>, %427, %cst_135 [1] : vector<8x8xf32> to vector<8xf32>
    %429 = vector.shape_cast %428 : vector<8xf32> to vector<8x1xf32>
    %430 = tpu.reciprocal %429 {approx = true} : vector<8x1xf32> -> vector<8x1xf32>
    %431 = vector.broadcast %430 : vector<8x1xf32> to vector<8x8xf32>
    %432 = arith.mulf %427, %431 : vector<8x8xf32>
    %cst_136 = arith.constant dense<0.000000e+00> : vector<8x8xf32>
    %433 = tpu.matmul %432, %418, %cst_136 {dimension_numbers = #tpu.dot_dimension_numbers<[1], [0], [0], [1], [0, 0, 1, 1], [], []>} : vector<8x8xf32>, vector<8x8xf32>, vector<8x8xf32> -> vector<8x8xf32>
    %434 = arith.truncf %433 : vector<8x8xf32> to vector<8x8xbf16>
    %435 = vector.extract_strided_slice %271 {offsets = [16, 0], sizes = [8, 32], strides = [1, 1]} : vector<32x32xf32> to vector<8x32xf32>
    %436 = arith.truncf %435 : vector<8x32xf32> to vector<8x32xbf16>
    %cst_137 = arith.constant dense<0.000000e+00> : vector<8x32xf32>
    %437 = tpu.matmul %434, %436, %cst_137 {dimension_numbers = #tpu.dot_dimension_numbers<[1], [0], [0], [1], [0, 0, 1, 1], [], []>} : vector<8x8xbf16>, vector<8x32xbf16>, vector<8x32xf32> -> vector<8x32xf32>
    %438 = arith.addf %415, %437 : vector<8x32xf32>
    %439 = vector.extract_strided_slice %368 {offsets = [0, 24], sizes = [8, 8], strides = [1, 1]} : vector<8x32xf32> to vector<8x8xf32>
    %440 = vector.extract_strided_slice %369 {offsets = [0, 24], sizes = [8, 8], strides = [1, 1]} : vector<8x32xf32> to vector<8x8xf32>
    %441 = vector.extract_strided_slice %370 {offsets = [0, 24], sizes = [8, 8], strides = [1, 1]} : vector<8x32xf32> to vector<8x8xf32>
    %442 = tpu.transpose %440, [1, 0] : vector<8x8xf32> -> vector<8x8xf32>
    %cst_138 = arith.constant dense<0.000000e+00> : vector<8x8xf32>
    %443 = tpu.matmul %439, %442, %cst_138 {dimension_numbers = #tpu.dot_dimension_numbers<[1], [0], [0], [1], [0, 0, 1, 1], [], []>} : vector<8x8xf32>, vector<8x8xf32>, vector<8x8xf32> -> vector<8x8xf32>
    %cst_139 = arith.constant 0.353553385 : f32
    %444 = vector.broadcast %cst_139 : f32 to vector<8x8xf32>
    %445 = arith.mulf %443, %444 : vector<8x8xf32>
    %cst_140 = arith.constant dense<0xFF800000> : vector<8xf32>
    %446 = vector.multi_reduction <maximumf>, %445, %cst_140 [1] : vector<8x8xf32> to vector<8xf32>
    %447 = vector.shape_cast %446 : vector<8xf32> to vector<8x1xf32>
    %448 = vector.broadcast %447 : vector<8x1xf32> to vector<8x8xf32>
    %449 = arith.subf %445, %448 : vector<8x8xf32>
    %450 = math.exp %449 : vector<8x8xf32>
    %cst_141 = arith.constant dense<0.000000e+00> : vector<8xf32>
    %451 = vector.multi_reduction <add>, %450, %cst_141 [1] : vector<8x8xf32> to vector<8xf32>
    %452 = vector.shape_cast %451 : vector<8xf32> to vector<8x1xf32>
    %453 = tpu.reciprocal %452 {approx = true} : vector<8x1xf32> -> vector<8x1xf32>
    %454 = vector.broadcast %453 : vector<8x1xf32> to vector<8x8xf32>
    %455 = arith.mulf %450, %454 : vector<8x8xf32>
    %cst_142 = arith.constant dense<0.000000e+00> : vector<8x8xf32>
    %456 = tpu.matmul %455, %441, %cst_142 {dimension_numbers = #tpu.dot_dimension_numbers<[1], [0], [0], [1], [0, 0, 1, 1], [], []>} : vector<8x8xf32>, vector<8x8xf32>, vector<8x8xf32> -> vector<8x8xf32>
    %457 = arith.truncf %456 : vector<8x8xf32> to vector<8x8xbf16>
    %458 = vector.extract_strided_slice %271 {offsets = [24, 0], sizes = [8, 32], strides = [1, 1]} : vector<32x32xf32> to vector<8x32xf32>
    %459 = arith.truncf %458 : vector<8x32xf32> to vector<8x32xbf16>
    %cst_143 = arith.constant dense<0.000000e+00> : vector<8x32xf32>
    %460 = tpu.matmul %457, %459, %cst_143 {dimension_numbers = #tpu.dot_dimension_numbers<[1], [0], [0], [1], [0, 0, 1, 1], [], []>} : vector<8x8xbf16>, vector<8x32xbf16>, vector<8x32xf32> -> vector<8x32xf32>
    %461 = arith.addf %438, %460 : vector<8x32xf32>
    %462 = tpu.concatenate %367, %461 in 0 : vector<8x32xf32>, vector<8x32xf32> -> vector<16x32xf32>
    %463 = vector.broadcast %273 : vector<1x32xf32> to vector<16x32xf32>
    %464 = arith.addf %462, %463 : vector<16x32xf32>
    %465 = arith.addf %249, %464 : vector<16x32xf32>
    %c0_144 = arith.constant 0 : index
    %c0_145 = arith.constant 0 : index
    %c0_146 = arith.constant 0 : index
    %466 = vector.load %arg18[%c0_144, %c0_145, %c0_146] : memref<2x1x32xf32, #tpu.memory_space<vmem>>, vector<1x1x32xf32>
    %467 = vector.shape_cast %466 : vector<1x1x32xf32> to vector<1x32xf32>
    %c0_147 = arith.constant 0 : index
    %c0_148 = arith.constant 0 : index
    %c0_149 = arith.constant 0 : index
    %468 = vector.load %arg19[%c0_147, %c0_148, %c0_149] : memref<2x1x32xf32, #tpu.memory_space<vmem>>, vector<1x1x32xf32>
    %469 = vector.shape_cast %468 : vector<1x1x32xf32> to vector<1x32xf32>
    %cst_150 = arith.constant dense<0.000000e+00> : vector<16xf32>
    %470 = vector.multi_reduction <add>, %465, %cst_150 [1] : vector<16x32xf32> to vector<16xf32>
    %471 = vector.shape_cast %470 : vector<16xf32> to vector<16x1xf32>
    %cst_151 = arith.constant 3.200000e+01 : f32
    %472 = vector.broadcast %cst_151 : f32 to vector<16x1xf32>
    %473 = arith.divf %471, %472 : vector<16x1xf32>
    %474 = vector.broadcast %473 : vector<16x1xf32> to vector<16x32xf32>
    %475 = arith.subf %465, %474 : vector<16x32xf32>
    %476 = arith.mulf %475, %475 : vector<16x32xf32>
    %cst_152 = arith.constant dense<0.000000e+00> : vector<16xf32>
    %477 = vector.multi_reduction <add>, %476, %cst_152 [1] : vector<16x32xf32> to vector<16xf32>
    %478 = vector.shape_cast %477 : vector<16xf32> to vector<16x1xf32>
    %cst_153 = arith.constant 3.200000e+01 : f32
    %479 = vector.broadcast %cst_153 : f32 to vector<16x1xf32>
    %480 = arith.divf %478, %479 : vector<16x1xf32>
    %481 = vector.broadcast %473 : vector<16x1xf32> to vector<16x32xf32>
    %482 = arith.subf %465, %481 : vector<16x32xf32>
    %cst_154 = arith.constant 9.99999974E-6 : f32
    %483 = vector.broadcast %cst_154 : f32 to vector<16x1xf32>
    %484 = arith.addf %480, %483 : vector<16x1xf32>
    %485 = math.rsqrt %484 : vector<16x1xf32>
    %486 = vector.broadcast %485 : vector<16x1xf32> to vector<16x32xf32>
    %487 = arith.mulf %482, %486 : vector<16x32xf32>
    %488 = vector.broadcast %467 : vector<1x32xf32> to vector<16x32xf32>
    %489 = arith.mulf %487, %488 : vector<16x32xf32>
    %490 = vector.broadcast %469 : vector<1x32xf32> to vector<16x32xf32>
    %491 = arith.addf %489, %490 : vector<16x32xf32>
    %c0_155 = arith.constant 0 : index
    %c0_156 = arith.constant 0 : index
    %c0_157 = arith.constant 0 : index
    %492 = vector.load %arg12[%c0_155, %c0_156, %c0_157] : memref<2x32x64xf32, #tpu.memory_space<vmem>>, vector<1x32x64xf32>
    %493 = vector.shape_cast %492 : vector<1x32x64xf32> to vector<32x64xf32>
    %c0_158 = arith.constant 0 : index
    %c0_159 = arith.constant 0 : index
    %c0_160 = arith.constant 0 : index
    %494 = vector.load %arg13[%c0_158, %c0_159, %c0_160] : memref<2x1x64xf32, #tpu.memory_space<vmem>>, vector<1x1x64xf32>
    %495 = vector.shape_cast %494 : vector<1x1x64xf32> to vector<1x64xf32>
    %496 = arith.truncf %491 : vector<16x32xf32> to vector<16x32xbf16>
    %497 = arith.truncf %493 : vector<32x64xf32> to vector<32x64xbf16>
    %cst_161 = arith.constant dense<0.000000e+00> : vector<16x64xf32>
    %498 = tpu.matmul %496, %497, %cst_161 {dimension_numbers = #tpu.dot_dimension_numbers<[1], [0], [0], [1], [0, 0, 1, 1], [], []>} : vector<16x32xbf16>, vector<32x64xbf16>, vector<16x64xf32> -> vector<16x64xf32>
    %499 = vector.broadcast %495 : vector<1x64xf32> to vector<16x64xf32>
    %500 = arith.addf %498, %499 : vector<16x64xf32>
    %cst_162 = arith.constant 0.000000e+00 : f32
    %501 = vector.broadcast %cst_162 : f32 to vector<16x64xf32>
    %502 = arith.maximumf %500, %501 : vector<16x64xf32>
    %c0_163 = arith.constant 0 : index
    %c0_164 = arith.constant 0 : index
    %c0_165 = arith.constant 0 : index
    %503 = vector.load %arg14[%c0_163, %c0_164, %c0_165] : memref<2x64x32xf32, #tpu.memory_space<vmem>>, vector<1x64x32xf32>
    %504 = vector.shape_cast %503 : vector<1x64x32xf32> to vector<64x32xf32>
    %c0_166 = arith.constant 0 : index
    %c0_167 = arith.constant 0 : index
    %c0_168 = arith.constant 0 : index
    %505 = vector.load %arg15[%c0_166, %c0_167, %c0_168] : memref<2x1x32xf32, #tpu.memory_space<vmem>>, vector<1x1x32xf32>
    %506 = vector.shape_cast %505 : vector<1x1x32xf32> to vector<1x32xf32>
    %507 = arith.truncf %502 : vector<16x64xf32> to vector<16x64xbf16>
    %508 = arith.truncf %504 : vector<64x32xf32> to vector<64x32xbf16>
    %cst_169 = arith.constant dense<0.000000e+00> : vector<16x32xf32>
    %509 = tpu.matmul %507, %508, %cst_169 {dimension_numbers = #tpu.dot_dimension_numbers<[1], [0], [0], [1], [0, 0, 1, 1], [], []>} : vector<16x64xbf16>, vector<64x32xbf16>, vector<16x32xf32> -> vector<16x32xf32>
    %510 = vector.broadcast %506 : vector<1x32xf32> to vector<16x32xf32>
    %511 = arith.addf %509, %510 : vector<16x32xf32>
    %512 = arith.addf %491, %511 : vector<16x32xf32>
    %c0_170 = arith.constant 0 : index
    %c0_171 = arith.constant 0 : index
    %c0_172 = arith.constant 0 : index
    %513 = vector.load %arg20[%c0_170, %c0_171, %c0_172] : memref<2x1x32xf32, #tpu.memory_space<vmem>>, vector<1x1x32xf32>
    %514 = vector.shape_cast %513 : vector<1x1x32xf32> to vector<1x32xf32>
    %c0_173 = arith.constant 0 : index
    %c0_174 = arith.constant 0 : index
    %c0_175 = arith.constant 0 : index
    %515 = vector.load %arg21[%c0_173, %c0_174, %c0_175] : memref<2x1x32xf32, #tpu.memory_space<vmem>>, vector<1x1x32xf32>
    %516 = vector.shape_cast %515 : vector<1x1x32xf32> to vector<1x32xf32>
    %cst_176 = arith.constant dense<0.000000e+00> : vector<16xf32>
    %517 = vector.multi_reduction <add>, %512, %cst_176 [1] : vector<16x32xf32> to vector<16xf32>
    %518 = vector.shape_cast %517 : vector<16xf32> to vector<16x1xf32>
    %cst_177 = arith.constant 3.200000e+01 : f32
    %519 = vector.broadcast %cst_177 : f32 to vector<16x1xf32>
    %520 = arith.divf %518, %519 : vector<16x1xf32>
    %521 = vector.broadcast %520 : vector<16x1xf32> to vector<16x32xf32>
    %522 = arith.subf %512, %521 : vector<16x32xf32>
    %523 = arith.mulf %522, %522 : vector<16x32xf32>
    %cst_178 = arith.constant dense<0.000000e+00> : vector<16xf32>
    %524 = vector.multi_reduction <add>, %523, %cst_178 [1] : vector<16x32xf32> to vector<16xf32>
    %525 = vector.shape_cast %524 : vector<16xf32> to vector<16x1xf32>
    %cst_179 = arith.constant 3.200000e+01 : f32
    %526 = vector.broadcast %cst_179 : f32 to vector<16x1xf32>
    %527 = arith.divf %525, %526 : vector<16x1xf32>
    %528 = vector.broadcast %520 : vector<16x1xf32> to vector<16x32xf32>
    %529 = arith.subf %512, %528 : vector<16x32xf32>
    %cst_180 = arith.constant 9.99999974E-6 : f32
    %530 = vector.broadcast %cst_180 : f32 to vector<16x1xf32>
    %531 = arith.addf %527, %530 : vector<16x1xf32>
    %532 = math.rsqrt %531 : vector<16x1xf32>
    %533 = vector.broadcast %532 : vector<16x1xf32> to vector<16x32xf32>
    %534 = arith.mulf %529, %533 : vector<16x32xf32>
    %535 = vector.broadcast %514 : vector<1x32xf32> to vector<16x32xf32>
    %536 = arith.mulf %534, %535 : vector<16x32xf32>
    %537 = vector.broadcast %516 : vector<1x32xf32> to vector<16x32xf32>
    %538 = arith.addf %536, %537 : vector<16x32xf32>
    %c1 = arith.constant 1 : index
    %c0_181 = arith.constant 0 : index
    %c0_182 = arith.constant 0 : index
    %539 = vector.load %arg2[%c1, %c0_181, %c0_182] : memref<2x32x96xf32, #tpu.memory_space<vmem>>, vector<1x32x96xf32>
    %540 = vector.shape_cast %539 : vector<1x32x96xf32> to vector<32x96xf32>
    %c1_183 = arith.constant 1 : index
    %c0_184 = arith.constant 0 : index
    %c0_185 = arith.constant 0 : index
    %541 = vector.load %arg3[%c1_183, %c0_184, %c0_185] : memref<2x1x96xf32, #tpu.memory_space<vmem>>, vector<1x1x96xf32>
    %542 = vector.shape_cast %541 : vector<1x1x96xf32> to vector<1x96xf32>
    %543 = arith.truncf %538 : vector<16x32xf32> to vector<16x32xbf16>
    %544 = arith.truncf %540 : vector<32x96xf32> to vector<32x96xbf16>
    %cst_186 = arith.constant dense<0.000000e+00> : vector<16x96xf32>
    %545 = tpu.matmul %543, %544, %cst_186 {dimension_numbers = #tpu.dot_dimension_numbers<[1], [0], [0], [1], [0, 0, 1, 1], [], []>} : vector<16x32xbf16>, vector<32x96xbf16>, vector<16x96xf32> -> vector<16x96xf32>
    %546 = vector.broadcast %542 : vector<1x96xf32> to vector<16x96xf32>
    %547 = arith.addf %545, %546 : vector<16x96xf32>
    %548 = vector.extract_strided_slice %547 {offsets = [0, 0], sizes = [16, 32], strides = [1, 1]} : vector<16x96xf32> to vector<16x32xf32>
    %549 = vector.extract_strided_slice %547 {offsets = [0, 32], sizes = [16, 32], strides = [1, 1]} : vector<16x96xf32> to vector<16x32xf32>
    %550 = vector.extract_strided_slice %547 {offsets = [0, 64], sizes = [16, 32], strides = [1, 1]} : vector<16x96xf32> to vector<16x32xf32>
    %c1_187 = arith.constant 1 : index
    %c0_188 = arith.constant 0 : index
    %c0_189 = arith.constant 0 : index
    %551 = vector.load %arg4[%c1_187, %c0_188, %c0_189] : memref<2x32x32xf32, #tpu.memory_space<vmem>>, vector<1x32x32xf32>
    %552 = vector.shape_cast %551 : vector<1x32x32xf32> to vector<32x32xf32>
    %c1_190 = arith.constant 1 : index
    %c0_191 = arith.constant 0 : index
    %c0_192 = arith.constant 0 : index
    %553 = vector.load %arg5[%c1_190, %c0_191, %c0_192] : memref<2x1x32xf32, #tpu.memory_space<vmem>>, vector<1x1x32xf32>
    %554 = vector.shape_cast %553 : vector<1x1x32xf32> to vector<1x32xf32>
    %555 = vector.extract_strided_slice %548 {offsets = [0, 0], sizes = [8, 32], strides = [1, 1]} : vector<16x32xf32> to vector<8x32xf32>
    %556 = vector.extract_strided_slice %549 {offsets = [0, 0], sizes = [8, 32], strides = [1, 1]} : vector<16x32xf32> to vector<8x32xf32>
    %557 = vector.extract_strided_slice %550 {offsets = [0, 0], sizes = [8, 32], strides = [1, 1]} : vector<16x32xf32> to vector<8x32xf32>
    %558 = vector.extract_strided_slice %555 {offsets = [0, 0], sizes = [8, 8], strides = [1, 1]} : vector<8x32xf32> to vector<8x8xf32>
    %559 = vector.extract_strided_slice %556 {offsets = [0, 0], sizes = [8, 8], strides = [1, 1]} : vector<8x32xf32> to vector<8x8xf32>
    %560 = vector.extract_strided_slice %557 {offsets = [0, 0], sizes = [8, 8], strides = [1, 1]} : vector<8x32xf32> to vector<8x8xf32>
    %561 = tpu.transpose %559, [1, 0] : vector<8x8xf32> -> vector<8x8xf32>
    %cst_193 = arith.constant dense<0.000000e+00> : vector<8x8xf32>
    %562 = tpu.matmul %558, %561, %cst_193 {dimension_numbers = #tpu.dot_dimension_numbers<[1], [0], [0], [1], [0, 0, 1, 1], [], []>} : vector<8x8xf32>, vector<8x8xf32>, vector<8x8xf32> -> vector<8x8xf32>
    %cst_194 = arith.constant 0.353553385 : f32
    %563 = vector.broadcast %cst_194 : f32 to vector<8x8xf32>
    %564 = arith.mulf %562, %563 : vector<8x8xf32>
    %565 = arith.addf %564, %5 : vector<8x8xf32>
    %cst_195 = arith.constant dense<0xFF800000> : vector<8xf32>
    %566 = vector.multi_reduction <maximumf>, %565, %cst_195 [1] : vector<8x8xf32> to vector<8xf32>
    %567 = vector.shape_cast %566 : vector<8xf32> to vector<8x1xf32>
    %568 = vector.broadcast %567 : vector<8x1xf32> to vector<8x8xf32>
    %569 = arith.subf %565, %568 : vector<8x8xf32>
    %570 = math.exp %569 : vector<8x8xf32>
    %cst_196 = arith.constant dense<0.000000e+00> : vector<8xf32>
    %571 = vector.multi_reduction <add>, %570, %cst_196 [1] : vector<8x8xf32> to vector<8xf32>
    %572 = vector.shape_cast %571 : vector<8xf32> to vector<8x1xf32>
    %573 = tpu.reciprocal %572 {approx = true} : vector<8x1xf32> -> vector<8x1xf32>
    %574 = vector.broadcast %573 : vector<8x1xf32> to vector<8x8xf32>
    %575 = arith.mulf %570, %574 : vector<8x8xf32>
    %cst_197 = arith.constant dense<0.000000e+00> : vector<8x8xf32>
    %576 = tpu.matmul %575, %560, %cst_197 {dimension_numbers = #tpu.dot_dimension_numbers<[1], [0], [0], [1], [0, 0, 1, 1], [], []>} : vector<8x8xf32>, vector<8x8xf32>, vector<8x8xf32> -> vector<8x8xf32>
    %577 = arith.truncf %576 : vector<8x8xf32> to vector<8x8xbf16>
    %578 = vector.extract_strided_slice %552 {offsets = [0, 0], sizes = [8, 32], strides = [1, 1]} : vector<32x32xf32> to vector<8x32xf32>
    %579 = arith.truncf %578 : vector<8x32xf32> to vector<8x32xbf16>
    %cst_198 = arith.constant dense<0.000000e+00> : vector<8x32xf32>
    %580 = tpu.matmul %577, %579, %cst_198 {dimension_numbers = #tpu.dot_dimension_numbers<[1], [0], [0], [1], [0, 0, 1, 1], [], []>} : vector<8x8xbf16>, vector<8x32xbf16>, vector<8x32xf32> -> vector<8x32xf32>
    %581 = vector.extract_strided_slice %555 {offsets = [0, 8], sizes = [8, 8], strides = [1, 1]} : vector<8x32xf32> to vector<8x8xf32>
    %582 = vector.extract_strided_slice %556 {offsets = [0, 8], sizes = [8, 8], strides = [1, 1]} : vector<8x32xf32> to vector<8x8xf32>
    %583 = vector.extract_strided_slice %557 {offsets = [0, 8], sizes = [8, 8], strides = [1, 1]} : vector<8x32xf32> to vector<8x8xf32>
    %584 = tpu.transpose %582, [1, 0] : vector<8x8xf32> -> vector<8x8xf32>
    %cst_199 = arith.constant dense<0.000000e+00> : vector<8x8xf32>
    %585 = tpu.matmul %581, %584, %cst_199 {dimension_numbers = #tpu.dot_dimension_numbers<[1], [0], [0], [1], [0, 0, 1, 1], [], []>} : vector<8x8xf32>, vector<8x8xf32>, vector<8x8xf32> -> vector<8x8xf32>
    %cst_200 = arith.constant 0.353553385 : f32
    %586 = vector.broadcast %cst_200 : f32 to vector<8x8xf32>
    %587 = arith.mulf %585, %586 : vector<8x8xf32>
    %588 = arith.addf %587, %5 : vector<8x8xf32>
    %cst_201 = arith.constant dense<0xFF800000> : vector<8xf32>
    %589 = vector.multi_reduction <maximumf>, %588, %cst_201 [1] : vector<8x8xf32> to vector<8xf32>
    %590 = vector.shape_cast %589 : vector<8xf32> to vector<8x1xf32>
    %591 = vector.broadcast %590 : vector<8x1xf32> to vector<8x8xf32>
    %592 = arith.subf %588, %591 : vector<8x8xf32>
    %593 = math.exp %592 : vector<8x8xf32>
    %cst_202 = arith.constant dense<0.000000e+00> : vector<8xf32>
    %594 = vector.multi_reduction <add>, %593, %cst_202 [1] : vector<8x8xf32> to vector<8xf32>
    %595 = vector.shape_cast %594 : vector<8xf32> to vector<8x1xf32>
    %596 = tpu.reciprocal %595 {approx = true} : vector<8x1xf32> -> vector<8x1xf32>
    %597 = vector.broadcast %596 : vector<8x1xf32> to vector<8x8xf32>
    %598 = arith.mulf %593, %597 : vector<8x8xf32>
    %cst_203 = arith.constant dense<0.000000e+00> : vector<8x8xf32>
    %599 = tpu.matmul %598, %583, %cst_203 {dimension_numbers = #tpu.dot_dimension_numbers<[1], [0], [0], [1], [0, 0, 1, 1], [], []>} : vector<8x8xf32>, vector<8x8xf32>, vector<8x8xf32> -> vector<8x8xf32>
    %600 = arith.truncf %599 : vector<8x8xf32> to vector<8x8xbf16>
    %601 = vector.extract_strided_slice %552 {offsets = [8, 0], sizes = [8, 32], strides = [1, 1]} : vector<32x32xf32> to vector<8x32xf32>
    %602 = arith.truncf %601 : vector<8x32xf32> to vector<8x32xbf16>
    %cst_204 = arith.constant dense<0.000000e+00> : vector<8x32xf32>
    %603 = tpu.matmul %600, %602, %cst_204 {dimension_numbers = #tpu.dot_dimension_numbers<[1], [0], [0], [1], [0, 0, 1, 1], [], []>} : vector<8x8xbf16>, vector<8x32xbf16>, vector<8x32xf32> -> vector<8x32xf32>
    %604 = arith.addf %580, %603 : vector<8x32xf32>
    %605 = vector.extract_strided_slice %555 {offsets = [0, 16], sizes = [8, 8], strides = [1, 1]} : vector<8x32xf32> to vector<8x8xf32>
    %606 = vector.extract_strided_slice %556 {offsets = [0, 16], sizes = [8, 8], strides = [1, 1]} : vector<8x32xf32> to vector<8x8xf32>
    %607 = vector.extract_strided_slice %557 {offsets = [0, 16], sizes = [8, 8], strides = [1, 1]} : vector<8x32xf32> to vector<8x8xf32>
    %608 = tpu.transpose %606, [1, 0] : vector<8x8xf32> -> vector<8x8xf32>
    %cst_205 = arith.constant dense<0.000000e+00> : vector<8x8xf32>
    %609 = tpu.matmul %605, %608, %cst_205 {dimension_numbers = #tpu.dot_dimension_numbers<[1], [0], [0], [1], [0, 0, 1, 1], [], []>} : vector<8x8xf32>, vector<8x8xf32>, vector<8x8xf32> -> vector<8x8xf32>
    %cst_206 = arith.constant 0.353553385 : f32
    %610 = vector.broadcast %cst_206 : f32 to vector<8x8xf32>
    %611 = arith.mulf %609, %610 : vector<8x8xf32>
    %612 = arith.addf %611, %5 : vector<8x8xf32>
    %cst_207 = arith.constant dense<0xFF800000> : vector<8xf32>
    %613 = vector.multi_reduction <maximumf>, %612, %cst_207 [1] : vector<8x8xf32> to vector<8xf32>
    %614 = vector.shape_cast %613 : vector<8xf32> to vector<8x1xf32>
    %615 = vector.broadcast %614 : vector<8x1xf32> to vector<8x8xf32>
    %616 = arith.subf %612, %615 : vector<8x8xf32>
    %617 = math.exp %616 : vector<8x8xf32>
    %cst_208 = arith.constant dense<0.000000e+00> : vector<8xf32>
    %618 = vector.multi_reduction <add>, %617, %cst_208 [1] : vector<8x8xf32> to vector<8xf32>
    %619 = vector.shape_cast %618 : vector<8xf32> to vector<8x1xf32>
    %620 = tpu.reciprocal %619 {approx = true} : vector<8x1xf32> -> vector<8x1xf32>
    %621 = vector.broadcast %620 : vector<8x1xf32> to vector<8x8xf32>
    %622 = arith.mulf %617, %621 : vector<8x8xf32>
    %cst_209 = arith.constant dense<0.000000e+00> : vector<8x8xf32>
    %623 = tpu.matmul %622, %607, %cst_209 {dimension_numbers = #tpu.dot_dimension_numbers<[1], [0], [0], [1], [0, 0, 1, 1], [], []>} : vector<8x8xf32>, vector<8x8xf32>, vector<8x8xf32> -> vector<8x8xf32>
    %624 = arith.truncf %623 : vector<8x8xf32> to vector<8x8xbf16>
    %625 = vector.extract_strided_slice %552 {offsets = [16, 0], sizes = [8, 32], strides = [1, 1]} : vector<32x32xf32> to vector<8x32xf32>
    %626 = arith.truncf %625 : vector<8x32xf32> to vector<8x32xbf16>
    %cst_210 = arith.constant dense<0.000000e+00> : vector<8x32xf32>
    %627 = tpu.matmul %624, %626, %cst_210 {dimension_numbers = #tpu.dot_dimension_numbers<[1], [0], [0], [1], [0, 0, 1, 1], [], []>} : vector<8x8xbf16>, vector<8x32xbf16>, vector<8x32xf32> -> vector<8x32xf32>
    %628 = arith.addf %604, %627 : vector<8x32xf32>
    %629 = vector.extract_strided_slice %555 {offsets = [0, 24], sizes = [8, 8], strides = [1, 1]} : vector<8x32xf32> to vector<8x8xf32>
    %630 = vector.extract_strided_slice %556 {offsets = [0, 24], sizes = [8, 8], strides = [1, 1]} : vector<8x32xf32> to vector<8x8xf32>
    %631 = vector.extract_strided_slice %557 {offsets = [0, 24], sizes = [8, 8], strides = [1, 1]} : vector<8x32xf32> to vector<8x8xf32>
    %632 = tpu.transpose %630, [1, 0] : vector<8x8xf32> -> vector<8x8xf32>
    %cst_211 = arith.constant dense<0.000000e+00> : vector<8x8xf32>
    %633 = tpu.matmul %629, %632, %cst_211 {dimension_numbers = #tpu.dot_dimension_numbers<[1], [0], [0], [1], [0, 0, 1, 1], [], []>} : vector<8x8xf32>, vector<8x8xf32>, vector<8x8xf32> -> vector<8x8xf32>
    %cst_212 = arith.constant 0.353553385 : f32
    %634 = vector.broadcast %cst_212 : f32 to vector<8x8xf32>
    %635 = arith.mulf %633, %634 : vector<8x8xf32>
    %636 = arith.addf %635, %5 : vector<8x8xf32>
    %cst_213 = arith.constant dense<0xFF800000> : vector<8xf32>
    %637 = vector.multi_reduction <maximumf>, %636, %cst_213 [1] : vector<8x8xf32> to vector<8xf32>
    %638 = vector.shape_cast %637 : vector<8xf32> to vector<8x1xf32>
    %639 = vector.broadcast %638 : vector<8x1xf32> to vector<8x8xf32>
    %640 = arith.subf %636, %639 : vector<8x8xf32>
    %641 = math.exp %640 : vector<8x8xf32>
    %cst_214 = arith.constant dense<0.000000e+00> : vector<8xf32>
    %642 = vector.multi_reduction <add>, %641, %cst_214 [1] : vector<8x8xf32> to vector<8xf32>
    %643 = vector.shape_cast %642 : vector<8xf32> to vector<8x1xf32>
    %644 = tpu.reciprocal %643 {approx = true} : vector<8x1xf32> -> vector<8x1xf32>
    %645 = vector.broadcast %644 : vector<8x1xf32> to vector<8x8xf32>
    %646 = arith.mulf %641, %645 : vector<8x8xf32>
    %cst_215 = arith.constant dense<0.000000e+00> : vector<8x8xf32>
    %647 = tpu.matmul %646, %631, %cst_215 {dimension_numbers = #tpu.dot_dimension_numbers<[1], [0], [0], [1], [0, 0, 1, 1], [], []>} : vector<8x8xf32>, vector<8x8xf32>, vector<8x8xf32> -> vector<8x8xf32>
    %648 = arith.truncf %647 : vector<8x8xf32> to vector<8x8xbf16>
    %649 = vector.extract_strided_slice %552 {offsets = [24, 0], sizes = [8, 32], strides = [1, 1]} : vector<32x32xf32> to vector<8x32xf32>
    %650 = arith.truncf %649 : vector<8x32xf32> to vector<8x32xbf16>
    %cst_216 = arith.constant dense<0.000000e+00> : vector<8x32xf32>
    %651 = tpu.matmul %648, %650, %cst_216 {dimension_numbers = #tpu.dot_dimension_numbers<[1], [0], [0], [1], [0, 0, 1, 1], [], []>} : vector<8x8xbf16>, vector<8x32xbf16>, vector<8x32xf32> -> vector<8x32xf32>
    %652 = arith.addf %628, %651 : vector<8x32xf32>
    %653 = vector.extract_strided_slice %548 {offsets = [8, 0], sizes = [8, 32], strides = [1, 1]} : vector<16x32xf32> to vector<8x32xf32>
    %654 = vector.extract_strided_slice %549 {offsets = [8, 0], sizes = [8, 32], strides = [1, 1]} : vector<16x32xf32> to vector<8x32xf32>
    %655 = vector.extract_strided_slice %550 {offsets = [8, 0], sizes = [8, 32], strides = [1, 1]} : vector<16x32xf32> to vector<8x32xf32>
    %656 = vector.extract_strided_slice %653 {offsets = [0, 0], sizes = [8, 8], strides = [1, 1]} : vector<8x32xf32> to vector<8x8xf32>
    %657 = vector.extract_strided_slice %654 {offsets = [0, 0], sizes = [8, 8], strides = [1, 1]} : vector<8x32xf32> to vector<8x8xf32>
    %658 = vector.extract_strided_slice %655 {offsets = [0, 0], sizes = [8, 8], strides = [1, 1]} : vector<8x32xf32> to vector<8x8xf32>
    %659 = tpu.transpose %657, [1, 0] : vector<8x8xf32> -> vector<8x8xf32>
    %cst_217 = arith.constant dense<0.000000e+00> : vector<8x8xf32>
    %660 = tpu.matmul %656, %659, %cst_217 {dimension_numbers = #tpu.dot_dimension_numbers<[1], [0], [0], [1], [0, 0, 1, 1], [], []>} : vector<8x8xf32>, vector<8x8xf32>, vector<8x8xf32> -> vector<8x8xf32>
    %cst_218 = arith.constant 0.353553385 : f32
    %661 = vector.broadcast %cst_218 : f32 to vector<8x8xf32>
    %662 = arith.mulf %660, %661 : vector<8x8xf32>
    %663 = arith.addf %662, %5 : vector<8x8xf32>
    %cst_219 = arith.constant dense<0xFF800000> : vector<8xf32>
    %664 = vector.multi_reduction <maximumf>, %663, %cst_219 [1] : vector<8x8xf32> to vector<8xf32>
    %665 = vector.shape_cast %664 : vector<8xf32> to vector<8x1xf32>
    %666 = vector.broadcast %665 : vector<8x1xf32> to vector<8x8xf32>
    %667 = arith.subf %663, %666 : vector<8x8xf32>
    %668 = math.exp %667 : vector<8x8xf32>
    %cst_220 = arith.constant dense<0.000000e+00> : vector<8xf32>
    %669 = vector.multi_reduction <add>, %668, %cst_220 [1] : vector<8x8xf32> to vector<8xf32>
    %670 = vector.shape_cast %669 : vector<8xf32> to vector<8x1xf32>
    %671 = tpu.reciprocal %670 {approx = true} : vector<8x1xf32> -> vector<8x1xf32>
    %672 = vector.broadcast %671 : vector<8x1xf32> to vector<8x8xf32>
    %673 = arith.mulf %668, %672 : vector<8x8xf32>
    %cst_221 = arith.constant dense<0.000000e+00> : vector<8x8xf32>
    %674 = tpu.matmul %673, %658, %cst_221 {dimension_numbers = #tpu.dot_dimension_numbers<[1], [0], [0], [1], [0, 0, 1, 1], [], []>} : vector<8x8xf32>, vector<8x8xf32>, vector<8x8xf32> -> vector<8x8xf32>
    %675 = arith.truncf %674 : vector<8x8xf32> to vector<8x8xbf16>
    %676 = vector.extract_strided_slice %552 {offsets = [0, 0], sizes = [8, 32], strides = [1, 1]} : vector<32x32xf32> to vector<8x32xf32>
    %677 = arith.truncf %676 : vector<8x32xf32> to vector<8x32xbf16>
    %cst_222 = arith.constant dense<0.000000e+00> : vector<8x32xf32>
    %678 = tpu.matmul %675, %677, %cst_222 {dimension_numbers = #tpu.dot_dimension_numbers<[1], [0], [0], [1], [0, 0, 1, 1], [], []>} : vector<8x8xbf16>, vector<8x32xbf16>, vector<8x32xf32> -> vector<8x32xf32>
    %679 = vector.extract_strided_slice %653 {offsets = [0, 8], sizes = [8, 8], strides = [1, 1]} : vector<8x32xf32> to vector<8x8xf32>
    %680 = vector.extract_strided_slice %654 {offsets = [0, 8], sizes = [8, 8], strides = [1, 1]} : vector<8x32xf32> to vector<8x8xf32>
    %681 = vector.extract_strided_slice %655 {offsets = [0, 8], sizes = [8, 8], strides = [1, 1]} : vector<8x32xf32> to vector<8x8xf32>
    %682 = tpu.transpose %680, [1, 0] : vector<8x8xf32> -> vector<8x8xf32>
    %cst_223 = arith.constant dense<0.000000e+00> : vector<8x8xf32>
    %683 = tpu.matmul %679, %682, %cst_223 {dimension_numbers = #tpu.dot_dimension_numbers<[1], [0], [0], [1], [0, 0, 1, 1], [], []>} : vector<8x8xf32>, vector<8x8xf32>, vector<8x8xf32> -> vector<8x8xf32>
    %cst_224 = arith.constant 0.353553385 : f32
    %684 = vector.broadcast %cst_224 : f32 to vector<8x8xf32>
    %685 = arith.mulf %683, %684 : vector<8x8xf32>
    %686 = arith.addf %685, %5 : vector<8x8xf32>
    %cst_225 = arith.constant dense<0xFF800000> : vector<8xf32>
    %687 = vector.multi_reduction <maximumf>, %686, %cst_225 [1] : vector<8x8xf32> to vector<8xf32>
    %688 = vector.shape_cast %687 : vector<8xf32> to vector<8x1xf32>
    %689 = vector.broadcast %688 : vector<8x1xf32> to vector<8x8xf32>
    %690 = arith.subf %686, %689 : vector<8x8xf32>
    %691 = math.exp %690 : vector<8x8xf32>
    %cst_226 = arith.constant dense<0.000000e+00> : vector<8xf32>
    %692 = vector.multi_reduction <add>, %691, %cst_226 [1] : vector<8x8xf32> to vector<8xf32>
    %693 = vector.shape_cast %692 : vector<8xf32> to vector<8x1xf32>
    %694 = tpu.reciprocal %693 {approx = true} : vector<8x1xf32> -> vector<8x1xf32>
    %695 = vector.broadcast %694 : vector<8x1xf32> to vector<8x8xf32>
    %696 = arith.mulf %691, %695 : vector<8x8xf32>
    %cst_227 = arith.constant dense<0.000000e+00> : vector<8x8xf32>
    %697 = tpu.matmul %696, %681, %cst_227 {dimension_numbers = #tpu.dot_dimension_numbers<[1], [0], [0], [1], [0, 0, 1, 1], [], []>} : vector<8x8xf32>, vector<8x8xf32>, vector<8x8xf32> -> vector<8x8xf32>
    %698 = arith.truncf %697 : vector<8x8xf32> to vector<8x8xbf16>
    %699 = vector.extract_strided_slice %552 {offsets = [8, 0], sizes = [8, 32], strides = [1, 1]} : vector<32x32xf32> to vector<8x32xf32>
    %700 = arith.truncf %699 : vector<8x32xf32> to vector<8x32xbf16>
    %cst_228 = arith.constant dense<0.000000e+00> : vector<8x32xf32>
    %701 = tpu.matmul %698, %700, %cst_228 {dimension_numbers = #tpu.dot_dimension_numbers<[1], [0], [0], [1], [0, 0, 1, 1], [], []>} : vector<8x8xbf16>, vector<8x32xbf16>, vector<8x32xf32> -> vector<8x32xf32>
    %702 = arith.addf %678, %701 : vector<8x32xf32>
    %703 = vector.extract_strided_slice %653 {offsets = [0, 16], sizes = [8, 8], strides = [1, 1]} : vector<8x32xf32> to vector<8x8xf32>
    %704 = vector.extract_strided_slice %654 {offsets = [0, 16], sizes = [8, 8], strides = [1, 1]} : vector<8x32xf32> to vector<8x8xf32>
    %705 = vector.extract_strided_slice %655 {offsets = [0, 16], sizes = [8, 8], strides = [1, 1]} : vector<8x32xf32> to vector<8x8xf32>
    %706 = tpu.transpose %704, [1, 0] : vector<8x8xf32> -> vector<8x8xf32>
    %cst_229 = arith.constant dense<0.000000e+00> : vector<8x8xf32>
    %707 = tpu.matmul %703, %706, %cst_229 {dimension_numbers = #tpu.dot_dimension_numbers<[1], [0], [0], [1], [0, 0, 1, 1], [], []>} : vector<8x8xf32>, vector<8x8xf32>, vector<8x8xf32> -> vector<8x8xf32>
    %cst_230 = arith.constant 0.353553385 : f32
    %708 = vector.broadcast %cst_230 : f32 to vector<8x8xf32>
    %709 = arith.mulf %707, %708 : vector<8x8xf32>
    %710 = arith.addf %709, %5 : vector<8x8xf32>
    %cst_231 = arith.constant dense<0xFF800000> : vector<8xf32>
    %711 = vector.multi_reduction <maximumf>, %710, %cst_231 [1] : vector<8x8xf32> to vector<8xf32>
    %712 = vector.shape_cast %711 : vector<8xf32> to vector<8x1xf32>
    %713 = vector.broadcast %712 : vector<8x1xf32> to vector<8x8xf32>
    %714 = arith.subf %710, %713 : vector<8x8xf32>
    %715 = math.exp %714 : vector<8x8xf32>
    %cst_232 = arith.constant dense<0.000000e+00> : vector<8xf32>
    %716 = vector.multi_reduction <add>, %715, %cst_232 [1] : vector<8x8xf32> to vector<8xf32>
    %717 = vector.shape_cast %716 : vector<8xf32> to vector<8x1xf32>
    %718 = tpu.reciprocal %717 {approx = true} : vector<8x1xf32> -> vector<8x1xf32>
    %719 = vector.broadcast %718 : vector<8x1xf32> to vector<8x8xf32>
    %720 = arith.mulf %715, %719 : vector<8x8xf32>
    %cst_233 = arith.constant dense<0.000000e+00> : vector<8x8xf32>
    %721 = tpu.matmul %720, %705, %cst_233 {dimension_numbers = #tpu.dot_dimension_numbers<[1], [0], [0], [1], [0, 0, 1, 1], [], []>} : vector<8x8xf32>, vector<8x8xf32>, vector<8x8xf32> -> vector<8x8xf32>
    %722 = arith.truncf %721 : vector<8x8xf32> to vector<8x8xbf16>
    %723 = vector.extract_strided_slice %552 {offsets = [16, 0], sizes = [8, 32], strides = [1, 1]} : vector<32x32xf32> to vector<8x32xf32>
    %724 = arith.truncf %723 : vector<8x32xf32> to vector<8x32xbf16>
    %cst_234 = arith.constant dense<0.000000e+00> : vector<8x32xf32>
    %725 = tpu.matmul %722, %724, %cst_234 {dimension_numbers = #tpu.dot_dimension_numbers<[1], [0], [0], [1], [0, 0, 1, 1], [], []>} : vector<8x8xbf16>, vector<8x32xbf16>, vector<8x32xf32> -> vector<8x32xf32>
    %726 = arith.addf %702, %725 : vector<8x32xf32>
    %727 = vector.extract_strided_slice %653 {offsets = [0, 24], sizes = [8, 8], strides = [1, 1]} : vector<8x32xf32> to vector<8x8xf32>
    %728 = vector.extract_strided_slice %654 {offsets = [0, 24], sizes = [8, 8], strides = [1, 1]} : vector<8x32xf32> to vector<8x8xf32>
    %729 = vector.extract_strided_slice %655 {offsets = [0, 24], sizes = [8, 8], strides = [1, 1]} : vector<8x32xf32> to vector<8x8xf32>
    %730 = tpu.transpose %728, [1, 0] : vector<8x8xf32> -> vector<8x8xf32>
    %cst_235 = arith.constant dense<0.000000e+00> : vector<8x8xf32>
    %731 = tpu.matmul %727, %730, %cst_235 {dimension_numbers = #tpu.dot_dimension_numbers<[1], [0], [0], [1], [0, 0, 1, 1], [], []>} : vector<8x8xf32>, vector<8x8xf32>, vector<8x8xf32> -> vector<8x8xf32>
    %cst_236 = arith.constant 0.353553385 : f32
    %732 = vector.broadcast %cst_236 : f32 to vector<8x8xf32>
    %733 = arith.mulf %731, %732 : vector<8x8xf32>
    %734 = arith.addf %733, %5 : vector<8x8xf32>
    %cst_237 = arith.constant dense<0xFF800000> : vector<8xf32>
    %735 = vector.multi_reduction <maximumf>, %734, %cst_237 [1] : vector<8x8xf32> to vector<8xf32>
    %736 = vector.shape_cast %735 : vector<8xf32> to vector<8x1xf32>
    %737 = vector.broadcast %736 : vector<8x1xf32> to vector<8x8xf32>
    %738 = arith.subf %734, %737 : vector<8x8xf32>
    %739 = math.exp %738 : vector<8x8xf32>
    %cst_238 = arith.constant dense<0.000000e+00> : vector<8xf32>
    %740 = vector.multi_reduction <add>, %739, %cst_238 [1] : vector<8x8xf32> to vector<8xf32>
    %741 = vector.shape_cast %740 : vector<8xf32> to vector<8x1xf32>
    %742 = tpu.reciprocal %741 {approx = true} : vector<8x1xf32> -> vector<8x1xf32>
    %743 = vector.broadcast %742 : vector<8x1xf32> to vector<8x8xf32>
    %744 = arith.mulf %739, %743 : vector<8x8xf32>
    %cst_239 = arith.constant dense<0.000000e+00> : vector<8x8xf32>
    %745 = tpu.matmul %744, %729, %cst_239 {dimension_numbers = #tpu.dot_dimension_numbers<[1], [0], [0], [1], [0, 0, 1, 1], [], []>} : vector<8x8xf32>, vector<8x8xf32>, vector<8x8xf32> -> vector<8x8xf32>
    %746 = arith.truncf %745 : vector<8x8xf32> to vector<8x8xbf16>
    %747 = vector.extract_strided_slice %552 {offsets = [24, 0], sizes = [8, 32], strides = [1, 1]} : vector<32x32xf32> to vector<8x32xf32>
    %748 = arith.truncf %747 : vector<8x32xf32> to vector<8x32xbf16>
    %cst_240 = arith.constant dense<0.000000e+00> : vector<8x32xf32>
    %749 = tpu.matmul %746, %748, %cst_240 {dimension_numbers = #tpu.dot_dimension_numbers<[1], [0], [0], [1], [0, 0, 1, 1], [], []>} : vector<8x8xbf16>, vector<8x32xbf16>, vector<8x32xf32> -> vector<8x32xf32>
    %750 = arith.addf %726, %749 : vector<8x32xf32>
    %751 = tpu.concatenate %652, %750 in 0 : vector<8x32xf32>, vector<8x32xf32> -> vector<16x32xf32>
    %752 = vector.broadcast %554 : vector<1x32xf32> to vector<16x32xf32>
    %753 = arith.addf %751, %752 : vector<16x32xf32>
    %754 = arith.addf %538, %753 : vector<16x32xf32>
    %c1_241 = arith.constant 1 : index
    %c0_242 = arith.constant 0 : index
    %c0_243 = arith.constant 0 : index
    %755 = vector.load %arg16[%c1_241, %c0_242, %c0_243] : memref<2x1x32xf32, #tpu.memory_space<vmem>>, vector<1x1x32xf32>
    %756 = vector.shape_cast %755 : vector<1x1x32xf32> to vector<1x32xf32>
    %c1_244 = arith.constant 1 : index
    %c0_245 = arith.constant 0 : index
    %c0_246 = arith.constant 0 : index
    %757 = vector.load %arg17[%c1_244, %c0_245, %c0_246] : memref<2x1x32xf32, #tpu.memory_space<vmem>>, vector<1x1x32xf32>
    %758 = vector.shape_cast %757 : vector<1x1x32xf32> to vector<1x32xf32>
    %cst_247 = arith.constant dense<0.000000e+00> : vector<16xf32>
    %759 = vector.multi_reduction <add>, %754, %cst_247 [1] : vector<16x32xf32> to vector<16xf32>
    %760 = vector.shape_cast %759 : vector<16xf32> to vector<16x1xf32>
    %cst_248 = arith.constant 3.200000e+01 : f32
    %761 = vector.broadcast %cst_248 : f32 to vector<16x1xf32>
    %762 = arith.divf %760, %761 : vector<16x1xf32>
    %763 = vector.broadcast %762 : vector<16x1xf32> to vector<16x32xf32>
    %764 = arith.subf %754, %763 : vector<16x32xf32>
    %765 = arith.mulf %764, %764 : vector<16x32xf32>
    %cst_249 = arith.constant dense<0.000000e+00> : vector<16xf32>
    %766 = vector.multi_reduction <add>, %765, %cst_249 [1] : vector<16x32xf32> to vector<16xf32>
    %767 = vector.shape_cast %766 : vector<16xf32> to vector<16x1xf32>
    %cst_250 = arith.constant 3.200000e+01 : f32
    %768 = vector.broadcast %cst_250 : f32 to vector<16x1xf32>
    %769 = arith.divf %767, %768 : vector<16x1xf32>
    %770 = vector.broadcast %762 : vector<16x1xf32> to vector<16x32xf32>
    %771 = arith.subf %754, %770 : vector<16x32xf32>
    %cst_251 = arith.constant 9.99999974E-6 : f32
    %772 = vector.broadcast %cst_251 : f32 to vector<16x1xf32>
    %773 = arith.addf %769, %772 : vector<16x1xf32>
    %774 = math.rsqrt %773 : vector<16x1xf32>
    %775 = vector.broadcast %774 : vector<16x1xf32> to vector<16x32xf32>
    %776 = arith.mulf %771, %775 : vector<16x32xf32>
    %777 = vector.broadcast %756 : vector<1x32xf32> to vector<16x32xf32>
    %778 = arith.mulf %776, %777 : vector<16x32xf32>
    %779 = vector.broadcast %758 : vector<1x32xf32> to vector<16x32xf32>
    %780 = arith.addf %778, %779 : vector<16x32xf32>
    %c1_252 = arith.constant 1 : index
    %c0_253 = arith.constant 0 : index
    %c0_254 = arith.constant 0 : index
    %781 = vector.load %arg6[%c1_252, %c0_253, %c0_254] : memref<2x32x32xf32, #tpu.memory_space<vmem>>, vector<1x32x32xf32>
    %782 = vector.shape_cast %781 : vector<1x32x32xf32> to vector<32x32xf32>
    %c1_255 = arith.constant 1 : index
    %c0_256 = arith.constant 0 : index
    %c0_257 = arith.constant 0 : index
    %783 = vector.load %arg7[%c1_255, %c0_256, %c0_257] : memref<2x1x32xf32, #tpu.memory_space<vmem>>, vector<1x1x32xf32>
    %784 = vector.shape_cast %783 : vector<1x1x32xf32> to vector<1x32xf32>
    %785 = arith.truncf %780 : vector<16x32xf32> to vector<16x32xbf16>
    %786 = arith.truncf %782 : vector<32x32xf32> to vector<32x32xbf16>
    %cst_258 = arith.constant dense<0.000000e+00> : vector<16x32xf32>
    %787 = tpu.matmul %785, %786, %cst_258 {dimension_numbers = #tpu.dot_dimension_numbers<[1], [0], [0], [1], [0, 0, 1, 1], [], []>} : vector<16x32xbf16>, vector<32x32xbf16>, vector<16x32xf32> -> vector<16x32xf32>
    %788 = vector.broadcast %784 : vector<1x32xf32> to vector<16x32xf32>
    %789 = arith.addf %787, %788 : vector<16x32xf32>
    %c1_259 = arith.constant 1 : index
    %c0_260 = arith.constant 0 : index
    %c0_261 = arith.constant 0 : index
    %790 = vector.load %arg8[%c1_259, %c0_260, %c0_261] : memref<2x32x64xf32, #tpu.memory_space<vmem>>, vector<1x32x64xf32>
    %791 = vector.shape_cast %790 : vector<1x32x64xf32> to vector<32x64xf32>
    %c1_262 = arith.constant 1 : index
    %c0_263 = arith.constant 0 : index
    %c0_264 = arith.constant 0 : index
    %792 = vector.load %arg9[%c1_262, %c0_263, %c0_264] : memref<2x1x64xf32, #tpu.memory_space<vmem>>, vector<1x1x64xf32>
    %793 = vector.shape_cast %792 : vector<1x1x64xf32> to vector<1x64xf32>
    %794 = arith.truncf %7 : vector<16x32xf32> to vector<16x32xbf16>
    %795 = arith.truncf %791 : vector<32x64xf32> to vector<32x64xbf16>
    %cst_265 = arith.constant dense<0.000000e+00> : vector<16x64xf32>
    %796 = tpu.matmul %794, %795, %cst_265 {dimension_numbers = #tpu.dot_dimension_numbers<[1], [0], [0], [1], [0, 0, 1, 1], [], []>} : vector<16x32xbf16>, vector<32x64xbf16>, vector<16x64xf32> -> vector<16x64xf32>
    %797 = vector.broadcast %793 : vector<1x64xf32> to vector<16x64xf32>
    %798 = arith.addf %796, %797 : vector<16x64xf32>
    %799 = vector.extract_strided_slice %798 {offsets = [0, 0], sizes = [16, 32], strides = [1, 1]} : vector<16x64xf32> to vector<16x32xf32>
    %800 = vector.extract_strided_slice %798 {offsets = [0, 32], sizes = [16, 32], strides = [1, 1]} : vector<16x64xf32> to vector<16x32xf32>
    %c1_266 = arith.constant 1 : index
    %c0_267 = arith.constant 0 : index
    %c0_268 = arith.constant 0 : index
    %801 = vector.load %arg10[%c1_266, %c0_267, %c0_268] : memref<2x32x32xf32, #tpu.memory_space<vmem>>, vector<1x32x32xf32>
    %802 = vector.shape_cast %801 : vector<1x32x32xf32> to vector<32x32xf32>
    %c1_269 = arith.constant 1 : index
    %c0_270 = arith.constant 0 : index
    %c0_271 = arith.constant 0 : index
    %803 = vector.load %arg11[%c1_269, %c0_270, %c0_271] : memref<2x1x32xf32, #tpu.memory_space<vmem>>, vector<1x1x32xf32>
    %804 = vector.shape_cast %803 : vector<1x1x32xf32> to vector<1x32xf32>
    %805 = vector.extract_strided_slice %789 {offsets = [0, 0], sizes = [8, 32], strides = [1, 1]} : vector<16x32xf32> to vector<8x32xf32>
    %806 = vector.extract_strided_slice %799 {offsets = [0, 0], sizes = [8, 32], strides = [1, 1]} : vector<16x32xf32> to vector<8x32xf32>
    %807 = vector.extract_strided_slice %800 {offsets = [0, 0], sizes = [8, 32], strides = [1, 1]} : vector<16x32xf32> to vector<8x32xf32>
    %808 = vector.extract_strided_slice %805 {offsets = [0, 0], sizes = [8, 8], strides = [1, 1]} : vector<8x32xf32> to vector<8x8xf32>
    %809 = vector.extract_strided_slice %806 {offsets = [0, 0], sizes = [8, 8], strides = [1, 1]} : vector<8x32xf32> to vector<8x8xf32>
    %810 = vector.extract_strided_slice %807 {offsets = [0, 0], sizes = [8, 8], strides = [1, 1]} : vector<8x32xf32> to vector<8x8xf32>
    %811 = tpu.transpose %809, [1, 0] : vector<8x8xf32> -> vector<8x8xf32>
    %cst_272 = arith.constant dense<0.000000e+00> : vector<8x8xf32>
    %812 = tpu.matmul %808, %811, %cst_272 {dimension_numbers = #tpu.dot_dimension_numbers<[1], [0], [0], [1], [0, 0, 1, 1], [], []>} : vector<8x8xf32>, vector<8x8xf32>, vector<8x8xf32> -> vector<8x8xf32>
    %cst_273 = arith.constant 0.353553385 : f32
    %813 = vector.broadcast %cst_273 : f32 to vector<8x8xf32>
    %814 = arith.mulf %812, %813 : vector<8x8xf32>
    %cst_274 = arith.constant dense<0xFF800000> : vector<8xf32>
    %815 = vector.multi_reduction <maximumf>, %814, %cst_274 [1] : vector<8x8xf32> to vector<8xf32>
    %816 = vector.shape_cast %815 : vector<8xf32> to vector<8x1xf32>
    %817 = vector.broadcast %816 : vector<8x1xf32> to vector<8x8xf32>
    %818 = arith.subf %814, %817 : vector<8x8xf32>
    %819 = math.exp %818 : vector<8x8xf32>
    %cst_275 = arith.constant dense<0.000000e+00> : vector<8xf32>
    %820 = vector.multi_reduction <add>, %819, %cst_275 [1] : vector<8x8xf32> to vector<8xf32>
    %821 = vector.shape_cast %820 : vector<8xf32> to vector<8x1xf32>
    %822 = tpu.reciprocal %821 {approx = true} : vector<8x1xf32> -> vector<8x1xf32>
    %823 = vector.broadcast %822 : vector<8x1xf32> to vector<8x8xf32>
    %824 = arith.mulf %819, %823 : vector<8x8xf32>
    %cst_276 = arith.constant dense<0.000000e+00> : vector<8x8xf32>
    %825 = tpu.matmul %824, %810, %cst_276 {dimension_numbers = #tpu.dot_dimension_numbers<[1], [0], [0], [1], [0, 0, 1, 1], [], []>} : vector<8x8xf32>, vector<8x8xf32>, vector<8x8xf32> -> vector<8x8xf32>
    %826 = arith.truncf %825 : vector<8x8xf32> to vector<8x8xbf16>
    %827 = vector.extract_strided_slice %802 {offsets = [0, 0], sizes = [8, 32], strides = [1, 1]} : vector<32x32xf32> to vector<8x32xf32>
    %828 = arith.truncf %827 : vector<8x32xf32> to vector<8x32xbf16>
    %cst_277 = arith.constant dense<0.000000e+00> : vector<8x32xf32>
    %829 = tpu.matmul %826, %828, %cst_277 {dimension_numbers = #tpu.dot_dimension_numbers<[1], [0], [0], [1], [0, 0, 1, 1], [], []>} : vector<8x8xbf16>, vector<8x32xbf16>, vector<8x32xf32> -> vector<8x32xf32>
    %830 = vector.extract_strided_slice %805 {offsets = [0, 8], sizes = [8, 8], strides = [1, 1]} : vector<8x32xf32> to vector<8x8xf32>
    %831 = vector.extract_strided_slice %806 {offsets = [0, 8], sizes = [8, 8], strides = [1, 1]} : vector<8x32xf32> to vector<8x8xf32>
    %832 = vector.extract_strided_slice %807 {offsets = [0, 8], sizes = [8, 8], strides = [1, 1]} : vector<8x32xf32> to vector<8x8xf32>
    %833 = tpu.transpose %831, [1, 0] : vector<8x8xf32> -> vector<8x8xf32>
    %cst_278 = arith.constant dense<0.000000e+00> : vector<8x8xf32>
    %834 = tpu.matmul %830, %833, %cst_278 {dimension_numbers = #tpu.dot_dimension_numbers<[1], [0], [0], [1], [0, 0, 1, 1], [], []>} : vector<8x8xf32>, vector<8x8xf32>, vector<8x8xf32> -> vector<8x8xf32>
    %cst_279 = arith.constant 0.353553385 : f32
    %835 = vector.broadcast %cst_279 : f32 to vector<8x8xf32>
    %836 = arith.mulf %834, %835 : vector<8x8xf32>
    %cst_280 = arith.constant dense<0xFF800000> : vector<8xf32>
    %837 = vector.multi_reduction <maximumf>, %836, %cst_280 [1] : vector<8x8xf32> to vector<8xf32>
    %838 = vector.shape_cast %837 : vector<8xf32> to vector<8x1xf32>
    %839 = vector.broadcast %838 : vector<8x1xf32> to vector<8x8xf32>
    %840 = arith.subf %836, %839 : vector<8x8xf32>
    %841 = math.exp %840 : vector<8x8xf32>
    %cst_281 = arith.constant dense<0.000000e+00> : vector<8xf32>
    %842 = vector.multi_reduction <add>, %841, %cst_281 [1] : vector<8x8xf32> to vector<8xf32>
    %843 = vector.shape_cast %842 : vector<8xf32> to vector<8x1xf32>
    %844 = tpu.reciprocal %843 {approx = true} : vector<8x1xf32> -> vector<8x1xf32>
    %845 = vector.broadcast %844 : vector<8x1xf32> to vector<8x8xf32>
    %846 = arith.mulf %841, %845 : vector<8x8xf32>
    %cst_282 = arith.constant dense<0.000000e+00> : vector<8x8xf32>
    %847 = tpu.matmul %846, %832, %cst_282 {dimension_numbers = #tpu.dot_dimension_numbers<[1], [0], [0], [1], [0, 0, 1, 1], [], []>} : vector<8x8xf32>, vector<8x8xf32>, vector<8x8xf32> -> vector<8x8xf32>
    %848 = arith.truncf %847 : vector<8x8xf32> to vector<8x8xbf16>
    %849 = vector.extract_strided_slice %802 {offsets = [8, 0], sizes = [8, 32], strides = [1, 1]} : vector<32x32xf32> to vector<8x32xf32>
    %850 = arith.truncf %849 : vector<8x32xf32> to vector<8x32xbf16>
    %cst_283 = arith.constant dense<0.000000e+00> : vector<8x32xf32>
    %851 = tpu.matmul %848, %850, %cst_283 {dimension_numbers = #tpu.dot_dimension_numbers<[1], [0], [0], [1], [0, 0, 1, 1], [], []>} : vector<8x8xbf16>, vector<8x32xbf16>, vector<8x32xf32> -> vector<8x32xf32>
    %852 = arith.addf %829, %851 : vector<8x32xf32>
    %853 = vector.extract_strided_slice %805 {offsets = [0, 16], sizes = [8, 8], strides = [1, 1]} : vector<8x32xf32> to vector<8x8xf32>
    %854 = vector.extract_strided_slice %806 {offsets = [0, 16], sizes = [8, 8], strides = [1, 1]} : vector<8x32xf32> to vector<8x8xf32>
    %855 = vector.extract_strided_slice %807 {offsets = [0, 16], sizes = [8, 8], strides = [1, 1]} : vector<8x32xf32> to vector<8x8xf32>
    %856 = tpu.transpose %854, [1, 0] : vector<8x8xf32> -> vector<8x8xf32>
    %cst_284 = arith.constant dense<0.000000e+00> : vector<8x8xf32>
    %857 = tpu.matmul %853, %856, %cst_284 {dimension_numbers = #tpu.dot_dimension_numbers<[1], [0], [0], [1], [0, 0, 1, 1], [], []>} : vector<8x8xf32>, vector<8x8xf32>, vector<8x8xf32> -> vector<8x8xf32>
    %cst_285 = arith.constant 0.353553385 : f32
    %858 = vector.broadcast %cst_285 : f32 to vector<8x8xf32>
    %859 = arith.mulf %857, %858 : vector<8x8xf32>
    %cst_286 = arith.constant dense<0xFF800000> : vector<8xf32>
    %860 = vector.multi_reduction <maximumf>, %859, %cst_286 [1] : vector<8x8xf32> to vector<8xf32>
    %861 = vector.shape_cast %860 : vector<8xf32> to vector<8x1xf32>
    %862 = vector.broadcast %861 : vector<8x1xf32> to vector<8x8xf32>
    %863 = arith.subf %859, %862 : vector<8x8xf32>
    %864 = math.exp %863 : vector<8x8xf32>
    %cst_287 = arith.constant dense<0.000000e+00> : vector<8xf32>
    %865 = vector.multi_reduction <add>, %864, %cst_287 [1] : vector<8x8xf32> to vector<8xf32>
    %866 = vector.shape_cast %865 : vector<8xf32> to vector<8x1xf32>
    %867 = tpu.reciprocal %866 {approx = true} : vector<8x1xf32> -> vector<8x1xf32>
    %868 = vector.broadcast %867 : vector<8x1xf32> to vector<8x8xf32>
    %869 = arith.mulf %864, %868 : vector<8x8xf32>
    %cst_288 = arith.constant dense<0.000000e+00> : vector<8x8xf32>
    %870 = tpu.matmul %869, %855, %cst_288 {dimension_numbers = #tpu.dot_dimension_numbers<[1], [0], [0], [1], [0, 0, 1, 1], [], []>} : vector<8x8xf32>, vector<8x8xf32>, vector<8x8xf32> -> vector<8x8xf32>
    %871 = arith.truncf %870 : vector<8x8xf32> to vector<8x8xbf16>
    %872 = vector.extract_strided_slice %802 {offsets = [16, 0], sizes = [8, 32], strides = [1, 1]} : vector<32x32xf32> to vector<8x32xf32>
    %873 = arith.truncf %872 : vector<8x32xf32> to vector<8x32xbf16>
    %cst_289 = arith.constant dense<0.000000e+00> : vector<8x32xf32>
    %874 = tpu.matmul %871, %873, %cst_289 {dimension_numbers = #tpu.dot_dimension_numbers<[1], [0], [0], [1], [0, 0, 1, 1], [], []>} : vector<8x8xbf16>, vector<8x32xbf16>, vector<8x32xf32> -> vector<8x32xf32>
    %875 = arith.addf %852, %874 : vector<8x32xf32>
    %876 = vector.extract_strided_slice %805 {offsets = [0, 24], sizes = [8, 8], strides = [1, 1]} : vector<8x32xf32> to vector<8x8xf32>
    %877 = vector.extract_strided_slice %806 {offsets = [0, 24], sizes = [8, 8], strides = [1, 1]} : vector<8x32xf32> to vector<8x8xf32>
    %878 = vector.extract_strided_slice %807 {offsets = [0, 24], sizes = [8, 8], strides = [1, 1]} : vector<8x32xf32> to vector<8x8xf32>
    %879 = tpu.transpose %877, [1, 0] : vector<8x8xf32> -> vector<8x8xf32>
    %cst_290 = arith.constant dense<0.000000e+00> : vector<8x8xf32>
    %880 = tpu.matmul %876, %879, %cst_290 {dimension_numbers = #tpu.dot_dimension_numbers<[1], [0], [0], [1], [0, 0, 1, 1], [], []>} : vector<8x8xf32>, vector<8x8xf32>, vector<8x8xf32> -> vector<8x8xf32>
    %cst_291 = arith.constant 0.353553385 : f32
    %881 = vector.broadcast %cst_291 : f32 to vector<8x8xf32>
    %882 = arith.mulf %880, %881 : vector<8x8xf32>
    %cst_292 = arith.constant dense<0xFF800000> : vector<8xf32>
    %883 = vector.multi_reduction <maximumf>, %882, %cst_292 [1] : vector<8x8xf32> to vector<8xf32>
    %884 = vector.shape_cast %883 : vector<8xf32> to vector<8x1xf32>
    %885 = vector.broadcast %884 : vector<8x1xf32> to vector<8x8xf32>
    %886 = arith.subf %882, %885 : vector<8x8xf32>
    %887 = math.exp %886 : vector<8x8xf32>
    %cst_293 = arith.constant dense<0.000000e+00> : vector<8xf32>
    %888 = vector.multi_reduction <add>, %887, %cst_293 [1] : vector<8x8xf32> to vector<8xf32>
    %889 = vector.shape_cast %888 : vector<8xf32> to vector<8x1xf32>
    %890 = tpu.reciprocal %889 {approx = true} : vector<8x1xf32> -> vector<8x1xf32>
    %891 = vector.broadcast %890 : vector<8x1xf32> to vector<8x8xf32>
    %892 = arith.mulf %887, %891 : vector<8x8xf32>
    %cst_294 = arith.constant dense<0.000000e+00> : vector<8x8xf32>
    %893 = tpu.matmul %892, %878, %cst_294 {dimension_numbers = #tpu.dot_dimension_numbers<[1], [0], [0], [1], [0, 0, 1, 1], [], []>} : vector<8x8xf32>, vector<8x8xf32>, vector<8x8xf32> -> vector<8x8xf32>
    %894 = arith.truncf %893 : vector<8x8xf32> to vector<8x8xbf16>
    %895 = vector.extract_strided_slice %802 {offsets = [24, 0], sizes = [8, 32], strides = [1, 1]} : vector<32x32xf32> to vector<8x32xf32>
    %896 = arith.truncf %895 : vector<8x32xf32> to vector<8x32xbf16>
    %cst_295 = arith.constant dense<0.000000e+00> : vector<8x32xf32>
    %897 = tpu.matmul %894, %896, %cst_295 {dimension_numbers = #tpu.dot_dimension_numbers<[1], [0], [0], [1], [0, 0, 1, 1], [], []>} : vector<8x8xbf16>, vector<8x32xbf16>, vector<8x32xf32> -> vector<8x32xf32>
    %898 = arith.addf %875, %897 : vector<8x32xf32>
    %899 = vector.extract_strided_slice %789 {offsets = [8, 0], sizes = [8, 32], strides = [1, 1]} : vector<16x32xf32> to vector<8x32xf32>
    %900 = vector.extract_strided_slice %799 {offsets = [8, 0], sizes = [8, 32], strides = [1, 1]} : vector<16x32xf32> to vector<8x32xf32>
    %901 = vector.extract_strided_slice %800 {offsets = [8, 0], sizes = [8, 32], strides = [1, 1]} : vector<16x32xf32> to vector<8x32xf32>
    %902 = vector.extract_strided_slice %899 {offsets = [0, 0], sizes = [8, 8], strides = [1, 1]} : vector<8x32xf32> to vector<8x8xf32>
    %903 = vector.extract_strided_slice %900 {offsets = [0, 0], sizes = [8, 8], strides = [1, 1]} : vector<8x32xf32> to vector<8x8xf32>
    %904 = vector.extract_strided_slice %901 {offsets = [0, 0], sizes = [8, 8], strides = [1, 1]} : vector<8x32xf32> to vector<8x8xf32>
    %905 = tpu.transpose %903, [1, 0] : vector<8x8xf32> -> vector<8x8xf32>
    %cst_296 = arith.constant dense<0.000000e+00> : vector<8x8xf32>
    %906 = tpu.matmul %902, %905, %cst_296 {dimension_numbers = #tpu.dot_dimension_numbers<[1], [0], [0], [1], [0, 0, 1, 1], [], []>} : vector<8x8xf32>, vector<8x8xf32>, vector<8x8xf32> -> vector<8x8xf32>
    %cst_297 = arith.constant 0.353553385 : f32
    %907 = vector.broadcast %cst_297 : f32 to vector<8x8xf32>
    %908 = arith.mulf %906, %907 : vector<8x8xf32>
    %cst_298 = arith.constant dense<0xFF800000> : vector<8xf32>
    %909 = vector.multi_reduction <maximumf>, %908, %cst_298 [1] : vector<8x8xf32> to vector<8xf32>
    %910 = vector.shape_cast %909 : vector<8xf32> to vector<8x1xf32>
    %911 = vector.broadcast %910 : vector<8x1xf32> to vector<8x8xf32>
    %912 = arith.subf %908, %911 : vector<8x8xf32>
    %913 = math.exp %912 : vector<8x8xf32>
    %cst_299 = arith.constant dense<0.000000e+00> : vector<8xf32>
    %914 = vector.multi_reduction <add>, %913, %cst_299 [1] : vector<8x8xf32> to vector<8xf32>
    %915 = vector.shape_cast %914 : vector<8xf32> to vector<8x1xf32>
    %916 = tpu.reciprocal %915 {approx = true} : vector<8x1xf32> -> vector<8x1xf32>
    %917 = vector.broadcast %916 : vector<8x1xf32> to vector<8x8xf32>
    %918 = arith.mulf %913, %917 : vector<8x8xf32>
    %cst_300 = arith.constant dense<0.000000e+00> : vector<8x8xf32>
    %919 = tpu.matmul %918, %904, %cst_300 {dimension_numbers = #tpu.dot_dimension_numbers<[1], [0], [0], [1], [0, 0, 1, 1], [], []>} : vector<8x8xf32>, vector<8x8xf32>, vector<8x8xf32> -> vector<8x8xf32>
    %920 = arith.truncf %919 : vector<8x8xf32> to vector<8x8xbf16>
    %921 = vector.extract_strided_slice %802 {offsets = [0, 0], sizes = [8, 32], strides = [1, 1]} : vector<32x32xf32> to vector<8x32xf32>
    %922 = arith.truncf %921 : vector<8x32xf32> to vector<8x32xbf16>
    %cst_301 = arith.constant dense<0.000000e+00> : vector<8x32xf32>
    %923 = tpu.matmul %920, %922, %cst_301 {dimension_numbers = #tpu.dot_dimension_numbers<[1], [0], [0], [1], [0, 0, 1, 1], [], []>} : vector<8x8xbf16>, vector<8x32xbf16>, vector<8x32xf32> -> vector<8x32xf32>
    %924 = vector.extract_strided_slice %899 {offsets = [0, 8], sizes = [8, 8], strides = [1, 1]} : vector<8x32xf32> to vector<8x8xf32>
    %925 = vector.extract_strided_slice %900 {offsets = [0, 8], sizes = [8, 8], strides = [1, 1]} : vector<8x32xf32> to vector<8x8xf32>
    %926 = vector.extract_strided_slice %901 {offsets = [0, 8], sizes = [8, 8], strides = [1, 1]} : vector<8x32xf32> to vector<8x8xf32>
    %927 = tpu.transpose %925, [1, 0] : vector<8x8xf32> -> vector<8x8xf32>
    %cst_302 = arith.constant dense<0.000000e+00> : vector<8x8xf32>
    %928 = tpu.matmul %924, %927, %cst_302 {dimension_numbers = #tpu.dot_dimension_numbers<[1], [0], [0], [1], [0, 0, 1, 1], [], []>} : vector<8x8xf32>, vector<8x8xf32>, vector<8x8xf32> -> vector<8x8xf32>
    %cst_303 = arith.constant 0.353553385 : f32
    %929 = vector.broadcast %cst_303 : f32 to vector<8x8xf32>
    %930 = arith.mulf %928, %929 : vector<8x8xf32>
    %cst_304 = arith.constant dense<0xFF800000> : vector<8xf32>
    %931 = vector.multi_reduction <maximumf>, %930, %cst_304 [1] : vector<8x8xf32> to vector<8xf32>
    %932 = vector.shape_cast %931 : vector<8xf32> to vector<8x1xf32>
    %933 = vector.broadcast %932 : vector<8x1xf32> to vector<8x8xf32>
    %934 = arith.subf %930, %933 : vector<8x8xf32>
    %935 = math.exp %934 : vector<8x8xf32>
    %cst_305 = arith.constant dense<0.000000e+00> : vector<8xf32>
    %936 = vector.multi_reduction <add>, %935, %cst_305 [1] : vector<8x8xf32> to vector<8xf32>
    %937 = vector.shape_cast %936 : vector<8xf32> to vector<8x1xf32>
    %938 = tpu.reciprocal %937 {approx = true} : vector<8x1xf32> -> vector<8x1xf32>
    %939 = vector.broadcast %938 : vector<8x1xf32> to vector<8x8xf32>
    %940 = arith.mulf %935, %939 : vector<8x8xf32>
    %cst_306 = arith.constant dense<0.000000e+00> : vector<8x8xf32>
    %941 = tpu.matmul %940, %926, %cst_306 {dimension_numbers = #tpu.dot_dimension_numbers<[1], [0], [0], [1], [0, 0, 1, 1], [], []>} : vector<8x8xf32>, vector<8x8xf32>, vector<8x8xf32> -> vector<8x8xf32>
    %942 = arith.truncf %941 : vector<8x8xf32> to vector<8x8xbf16>
    %943 = vector.extract_strided_slice %802 {offsets = [8, 0], sizes = [8, 32], strides = [1, 1]} : vector<32x32xf32> to vector<8x32xf32>
    %944 = arith.truncf %943 : vector<8x32xf32> to vector<8x32xbf16>
    %cst_307 = arith.constant dense<0.000000e+00> : vector<8x32xf32>
    %945 = tpu.matmul %942, %944, %cst_307 {dimension_numbers = #tpu.dot_dimension_numbers<[1], [0], [0], [1], [0, 0, 1, 1], [], []>} : vector<8x8xbf16>, vector<8x32xbf16>, vector<8x32xf32> -> vector<8x32xf32>
    %946 = arith.addf %923, %945 : vector<8x32xf32>
    %947 = vector.extract_strided_slice %899 {offsets = [0, 16], sizes = [8, 8], strides = [1, 1]} : vector<8x32xf32> to vector<8x8xf32>
    %948 = vector.extract_strided_slice %900 {offsets = [0, 16], sizes = [8, 8], strides = [1, 1]} : vector<8x32xf32> to vector<8x8xf32>
    %949 = vector.extract_strided_slice %901 {offsets = [0, 16], sizes = [8, 8], strides = [1, 1]} : vector<8x32xf32> to vector<8x8xf32>
    %950 = tpu.transpose %948, [1, 0] : vector<8x8xf32> -> vector<8x8xf32>
    %cst_308 = arith.constant dense<0.000000e+00> : vector<8x8xf32>
    %951 = tpu.matmul %947, %950, %cst_308 {dimension_numbers = #tpu.dot_dimension_numbers<[1], [0], [0], [1], [0, 0, 1, 1], [], []>} : vector<8x8xf32>, vector<8x8xf32>, vector<8x8xf32> -> vector<8x8xf32>
    %cst_309 = arith.constant 0.353553385 : f32
    %952 = vector.broadcast %cst_309 : f32 to vector<8x8xf32>
    %953 = arith.mulf %951, %952 : vector<8x8xf32>
    %cst_310 = arith.constant dense<0xFF800000> : vector<8xf32>
    %954 = vector.multi_reduction <maximumf>, %953, %cst_310 [1] : vector<8x8xf32> to vector<8xf32>
    %955 = vector.shape_cast %954 : vector<8xf32> to vector<8x1xf32>
    %956 = vector.broadcast %955 : vector<8x1xf32> to vector<8x8xf32>
    %957 = arith.subf %953, %956 : vector<8x8xf32>
    %958 = math.exp %957 : vector<8x8xf32>
    %cst_311 = arith.constant dense<0.000000e+00> : vector<8xf32>
    %959 = vector.multi_reduction <add>, %958, %cst_311 [1] : vector<8x8xf32> to vector<8xf32>
    %960 = vector.shape_cast %959 : vector<8xf32> to vector<8x1xf32>
    %961 = tpu.reciprocal %960 {approx = true} : vector<8x1xf32> -> vector<8x1xf32>
    %962 = vector.broadcast %961 : vector<8x1xf32> to vector<8x8xf32>
    %963 = arith.mulf %958, %962 : vector<8x8xf32>
    %cst_312 = arith.constant dense<0.000000e+00> : vector<8x8xf32>
    %964 = tpu.matmul %963, %949, %cst_312 {dimension_numbers = #tpu.dot_dimension_numbers<[1], [0], [0], [1], [0, 0, 1, 1], [], []>} : vector<8x8xf32>, vector<8x8xf32>, vector<8x8xf32> -> vector<8x8xf32>
    %965 = arith.truncf %964 : vector<8x8xf32> to vector<8x8xbf16>
    %966 = vector.extract_strided_slice %802 {offsets = [16, 0], sizes = [8, 32], strides = [1, 1]} : vector<32x32xf32> to vector<8x32xf32>
    %967 = arith.truncf %966 : vector<8x32xf32> to vector<8x32xbf16>
    %cst_313 = arith.constant dense<0.000000e+00> : vector<8x32xf32>
    %968 = tpu.matmul %965, %967, %cst_313 {dimension_numbers = #tpu.dot_dimension_numbers<[1], [0], [0], [1], [0, 0, 1, 1], [], []>} : vector<8x8xbf16>, vector<8x32xbf16>, vector<8x32xf32> -> vector<8x32xf32>
    %969 = arith.addf %946, %968 : vector<8x32xf32>
    %970 = vector.extract_strided_slice %899 {offsets = [0, 24], sizes = [8, 8], strides = [1, 1]} : vector<8x32xf32> to vector<8x8xf32>
    %971 = vector.extract_strided_slice %900 {offsets = [0, 24], sizes = [8, 8], strides = [1, 1]} : vector<8x32xf32> to vector<8x8xf32>
    %972 = vector.extract_strided_slice %901 {offsets = [0, 24], sizes = [8, 8], strides = [1, 1]} : vector<8x32xf32> to vector<8x8xf32>
    %973 = tpu.transpose %971, [1, 0] : vector<8x8xf32> -> vector<8x8xf32>
    %cst_314 = arith.constant dense<0.000000e+00> : vector<8x8xf32>
    %974 = tpu.matmul %970, %973, %cst_314 {dimension_numbers = #tpu.dot_dimension_numbers<[1], [0], [0], [1], [0, 0, 1, 1], [], []>} : vector<8x8xf32>, vector<8x8xf32>, vector<8x8xf32> -> vector<8x8xf32>
    %cst_315 = arith.constant 0.353553385 : f32
    %975 = vector.broadcast %cst_315 : f32 to vector<8x8xf32>
    %976 = arith.mulf %974, %975 : vector<8x8xf32>
    %cst_316 = arith.constant dense<0xFF800000> : vector<8xf32>
    %977 = vector.multi_reduction <maximumf>, %976, %cst_316 [1] : vector<8x8xf32> to vector<8xf32>
    %978 = vector.shape_cast %977 : vector<8xf32> to vector<8x1xf32>
    %979 = vector.broadcast %978 : vector<8x1xf32> to vector<8x8xf32>
    %980 = arith.subf %976, %979 : vector<8x8xf32>
    %981 = math.exp %980 : vector<8x8xf32>
    %cst_317 = arith.constant dense<0.000000e+00> : vector<8xf32>
    %982 = vector.multi_reduction <add>, %981, %cst_317 [1] : vector<8x8xf32> to vector<8xf32>
    %983 = vector.shape_cast %982 : vector<8xf32> to vector<8x1xf32>
    %984 = tpu.reciprocal %983 {approx = true} : vector<8x1xf32> -> vector<8x1xf32>
    %985 = vector.broadcast %984 : vector<8x1xf32> to vector<8x8xf32>
    %986 = arith.mulf %981, %985 : vector<8x8xf32>
    %cst_318 = arith.constant dense<0.000000e+00> : vector<8x8xf32>
    %987 = tpu.matmul %986, %972, %cst_318 {dimension_numbers = #tpu.dot_dimension_numbers<[1], [0], [0], [1], [0, 0, 1, 1], [], []>} : vector<8x8xf32>, vector<8x8xf32>, vector<8x8xf32> -> vector<8x8xf32>
    %988 = arith.truncf %987 : vector<8x8xf32> to vector<8x8xbf16>
    %989 = vector.extract_strided_slice %802 {offsets = [24, 0], sizes = [8, 32], strides = [1, 1]} : vector<32x32xf32> to vector<8x32xf32>
    %990 = arith.truncf %989 : vector<8x32xf32> to vector<8x32xbf16>
    %cst_319 = arith.constant dense<0.000000e+00> : vector<8x32xf32>
    %991 = tpu.matmul %988, %990, %cst_319 {dimension_numbers = #tpu.dot_dimension_numbers<[1], [0], [0], [1], [0, 0, 1, 1], [], []>} : vector<8x8xbf16>, vector<8x32xbf16>, vector<8x32xf32> -> vector<8x32xf32>
    %992 = arith.addf %969, %991 : vector<8x32xf32>
    %993 = tpu.concatenate %898, %992 in 0 : vector<8x32xf32>, vector<8x32xf32> -> vector<16x32xf32>
    %994 = vector.broadcast %804 : vector<1x32xf32> to vector<16x32xf32>
    %995 = arith.addf %993, %994 : vector<16x32xf32>
    %996 = arith.addf %780, %995 : vector<16x32xf32>
    %c1_320 = arith.constant 1 : index
    %c0_321 = arith.constant 0 : index
    %c0_322 = arith.constant 0 : index
    %997 = vector.load %arg18[%c1_320, %c0_321, %c0_322] : memref<2x1x32xf32, #tpu.memory_space<vmem>>, vector<1x1x32xf32>
    %998 = vector.shape_cast %997 : vector<1x1x32xf32> to vector<1x32xf32>
    %c1_323 = arith.constant 1 : index
    %c0_324 = arith.constant 0 : index
    %c0_325 = arith.constant 0 : index
    %999 = vector.load %arg19[%c1_323, %c0_324, %c0_325] : memref<2x1x32xf32, #tpu.memory_space<vmem>>, vector<1x1x32xf32>
    %1000 = vector.shape_cast %999 : vector<1x1x32xf32> to vector<1x32xf32>
    %cst_326 = arith.constant dense<0.000000e+00> : vector<16xf32>
    %1001 = vector.multi_reduction <add>, %996, %cst_326 [1] : vector<16x32xf32> to vector<16xf32>
    %1002 = vector.shape_cast %1001 : vector<16xf32> to vector<16x1xf32>
    %cst_327 = arith.constant 3.200000e+01 : f32
    %1003 = vector.broadcast %cst_327 : f32 to vector<16x1xf32>
    %1004 = arith.divf %1002, %1003 : vector<16x1xf32>
    %1005 = vector.broadcast %1004 : vector<16x1xf32> to vector<16x32xf32>
    %1006 = arith.subf %996, %1005 : vector<16x32xf32>
    %1007 = arith.mulf %1006, %1006 : vector<16x32xf32>
    %cst_328 = arith.constant dense<0.000000e+00> : vector<16xf32>
    %1008 = vector.multi_reduction <add>, %1007, %cst_328 [1] : vector<16x32xf32> to vector<16xf32>
    %1009 = vector.shape_cast %1008 : vector<16xf32> to vector<16x1xf32>
    %cst_329 = arith.constant 3.200000e+01 : f32
    %1010 = vector.broadcast %cst_329 : f32 to vector<16x1xf32>
    %1011 = arith.divf %1009, %1010 : vector<16x1xf32>
    %1012 = vector.broadcast %1004 : vector<16x1xf32> to vector<16x32xf32>
    %1013 = arith.subf %996, %1012 : vector<16x32xf32>
    %cst_330 = arith.constant 9.99999974E-6 : f32
    %1014 = vector.broadcast %cst_330 : f32 to vector<16x1xf32>
    %1015 = arith.addf %1011, %1014 : vector<16x1xf32>
    %1016 = math.rsqrt %1015 : vector<16x1xf32>
    %1017 = vector.broadcast %1016 : vector<16x1xf32> to vector<16x32xf32>
    %1018 = arith.mulf %1013, %1017 : vector<16x32xf32>
    %1019 = vector.broadcast %998 : vector<1x32xf32> to vector<16x32xf32>
    %1020 = arith.mulf %1018, %1019 : vector<16x32xf32>
    %1021 = vector.broadcast %1000 : vector<1x32xf32> to vector<16x32xf32>
    %1022 = arith.addf %1020, %1021 : vector<16x32xf32>
    %c1_331 = arith.constant 1 : index
    %c0_332 = arith.constant 0 : index
    %c0_333 = arith.constant 0 : index
    %1023 = vector.load %arg12[%c1_331, %c0_332, %c0_333] : memref<2x32x64xf32, #tpu.memory_space<vmem>>, vector<1x32x64xf32>
    %1024 = vector.shape_cast %1023 : vector<1x32x64xf32> to vector<32x64xf32>
    %c1_334 = arith.constant 1 : index
    %c0_335 = arith.constant 0 : index
    %c0_336 = arith.constant 0 : index
    %1025 = vector.load %arg13[%c1_334, %c0_335, %c0_336] : memref<2x1x64xf32, #tpu.memory_space<vmem>>, vector<1x1x64xf32>
    %1026 = vector.shape_cast %1025 : vector<1x1x64xf32> to vector<1x64xf32>
    %1027 = arith.truncf %1022 : vector<16x32xf32> to vector<16x32xbf16>
    %1028 = arith.truncf %1024 : vector<32x64xf32> to vector<32x64xbf16>
    %cst_337 = arith.constant dense<0.000000e+00> : vector<16x64xf32>
    %1029 = tpu.matmul %1027, %1028, %cst_337 {dimension_numbers = #tpu.dot_dimension_numbers<[1], [0], [0], [1], [0, 0, 1, 1], [], []>} : vector<16x32xbf16>, vector<32x64xbf16>, vector<16x64xf32> -> vector<16x64xf32>
    %1030 = vector.broadcast %1026 : vector<1x64xf32> to vector<16x64xf32>
    %1031 = arith.addf %1029, %1030 : vector<16x64xf32>
    %cst_338 = arith.constant 0.000000e+00 : f32
    %1032 = vector.broadcast %cst_338 : f32 to vector<16x64xf32>
    %1033 = arith.maximumf %1031, %1032 : vector<16x64xf32>
    %c1_339 = arith.constant 1 : index
    %c0_340 = arith.constant 0 : index
    %c0_341 = arith.constant 0 : index
    %1034 = vector.load %arg14[%c1_339, %c0_340, %c0_341] : memref<2x64x32xf32, #tpu.memory_space<vmem>>, vector<1x64x32xf32>
    %1035 = vector.shape_cast %1034 : vector<1x64x32xf32> to vector<64x32xf32>
    %c1_342 = arith.constant 1 : index
    %c0_343 = arith.constant 0 : index
    %c0_344 = arith.constant 0 : index
    %1036 = vector.load %arg15[%c1_342, %c0_343, %c0_344] : memref<2x1x32xf32, #tpu.memory_space<vmem>>, vector<1x1x32xf32>
    %1037 = vector.shape_cast %1036 : vector<1x1x32xf32> to vector<1x32xf32>
    %1038 = arith.truncf %1033 : vector<16x64xf32> to vector<16x64xbf16>
    %1039 = arith.truncf %1035 : vector<64x32xf32> to vector<64x32xbf16>
    %cst_345 = arith.constant dense<0.000000e+00> : vector<16x32xf32>
    %1040 = tpu.matmul %1038, %1039, %cst_345 {dimension_numbers = #tpu.dot_dimension_numbers<[1], [0], [0], [1], [0, 0, 1, 1], [], []>} : vector<16x64xbf16>, vector<64x32xbf16>, vector<16x32xf32> -> vector<16x32xf32>
    %1041 = vector.broadcast %1037 : vector<1x32xf32> to vector<16x32xf32>
    %1042 = arith.addf %1040, %1041 : vector<16x32xf32>
    %1043 = arith.addf %1022, %1042 : vector<16x32xf32>
    %c1_346 = arith.constant 1 : index
    %c0_347 = arith.constant 0 : index
    %c0_348 = arith.constant 0 : index
    %1044 = vector.load %arg20[%c1_346, %c0_347, %c0_348] : memref<2x1x32xf32, #tpu.memory_space<vmem>>, vector<1x1x32xf32>
    %1045 = vector.shape_cast %1044 : vector<1x1x32xf32> to vector<1x32xf32>
    %c1_349 = arith.constant 1 : index
    %c0_350 = arith.constant 0 : index
    %c0_351 = arith.constant 0 : index
    %1046 = vector.load %arg21[%c1_349, %c0_350, %c0_351] : memref<2x1x32xf32, #tpu.memory_space<vmem>>, vector<1x1x32xf32>
    %1047 = vector.shape_cast %1046 : vector<1x1x32xf32> to vector<1x32xf32>
    %cst_352 = arith.constant dense<0.000000e+00> : vector<16xf32>
    %1048 = vector.multi_reduction <add>, %1043, %cst_352 [1] : vector<16x32xf32> to vector<16xf32>
    %1049 = vector.shape_cast %1048 : vector<16xf32> to vector<16x1xf32>
    %cst_353 = arith.constant 3.200000e+01 : f32
    %1050 = vector.broadcast %cst_353 : f32 to vector<16x1xf32>
    %1051 = arith.divf %1049, %1050 : vector<16x1xf32>
    %1052 = vector.broadcast %1051 : vector<16x1xf32> to vector<16x32xf32>
    %1053 = arith.subf %1043, %1052 : vector<16x32xf32>
    %1054 = arith.mulf %1053, %1053 : vector<16x32xf32>
    %cst_354 = arith.constant dense<0.000000e+00> : vector<16xf32>
    %1055 = vector.multi_reduction <add>, %1054, %cst_354 [1] : vector<16x32xf32> to vector<16xf32>
    %1056 = vector.shape_cast %1055 : vector<16xf32> to vector<16x1xf32>
    %cst_355 = arith.constant 3.200000e+01 : f32
    %1057 = vector.broadcast %cst_355 : f32 to vector<16x1xf32>
    %1058 = arith.divf %1056, %1057 : vector<16x1xf32>
    %1059 = vector.broadcast %1051 : vector<16x1xf32> to vector<16x32xf32>
    %1060 = arith.subf %1043, %1059 : vector<16x32xf32>
    %cst_356 = arith.constant 9.99999974E-6 : f32
    %1061 = vector.broadcast %cst_356 : f32 to vector<16x1xf32>
    %1062 = arith.addf %1058, %1061 : vector<16x1xf32>
    %1063 = math.rsqrt %1062 : vector<16x1xf32>
    %1064 = vector.broadcast %1063 : vector<16x1xf32> to vector<16x32xf32>
    %1065 = arith.mulf %1060, %1064 : vector<16x32xf32>
    %1066 = vector.broadcast %1045 : vector<1x32xf32> to vector<16x32xf32>
    %1067 = arith.mulf %1065, %1066 : vector<16x32xf32>
    %1068 = vector.broadcast %1047 : vector<1x32xf32> to vector<16x32xf32>
    %1069 = arith.addf %1067, %1068 : vector<16x32xf32>
    %c0_357 = arith.constant 0 : index
    %c0_358 = arith.constant 0 : index
    %1070 = vector.load %arg22[%c0_357, %c0_358] : memref<1x32xf32, #tpu.memory_space<vmem>>, vector<1x32xf32>
    %c0_359 = arith.constant 0 : index
    %c0_360 = arith.constant 0 : index
    %1071 = vector.load %arg23[%c0_359, %c0_360] : memref<1x32xf32, #tpu.memory_space<vmem>>, vector<1x32xf32>
    %cst_361 = arith.constant dense<0.000000e+00> : vector<16xf32>
    %1072 = vector.multi_reduction <add>, %1069, %cst_361 [1] : vector<16x32xf32> to vector<16xf32>
    %1073 = vector.shape_cast %1072 : vector<16xf32> to vector<16x1xf32>
    %cst_362 = arith.constant 3.200000e+01 : f32
    %1074 = vector.broadcast %cst_362 : f32 to vector<16x1xf32>
    %1075 = arith.divf %1073, %1074 : vector<16x1xf32>
    %1076 = vector.broadcast %1075 : vector<16x1xf32> to vector<16x32xf32>
    %1077 = arith.subf %1069, %1076 : vector<16x32xf32>
    %1078 = arith.mulf %1077, %1077 : vector<16x32xf32>
    %cst_363 = arith.constant dense<0.000000e+00> : vector<16xf32>
    %1079 = vector.multi_reduction <add>, %1078, %cst_363 [1] : vector<16x32xf32> to vector<16xf32>
    %1080 = vector.shape_cast %1079 : vector<16xf32> to vector<16x1xf32>
    %cst_364 = arith.constant 3.200000e+01 : f32
    %1081 = vector.broadcast %cst_364 : f32 to vector<16x1xf32>
    %1082 = arith.divf %1080, %1081 : vector<16x1xf32>
    %1083 = vector.broadcast %1075 : vector<16x1xf32> to vector<16x32xf32>
    %1084 = arith.subf %1069, %1083 : vector<16x32xf32>
    %cst_365 = arith.constant 9.99999974E-6 : f32
    %1085 = vector.broadcast %cst_365 : f32 to vector<16x1xf32>
    %1086 = arith.addf %1082, %1085 : vector<16x1xf32>
    %1087 = math.rsqrt %1086 : vector<16x1xf32>
    %1088 = vector.broadcast %1087 : vector<16x1xf32> to vector<16x32xf32>
    %1089 = arith.mulf %1084, %1088 : vector<16x32xf32>
    %1090 = vector.broadcast %1070 : vector<1x32xf32> to vector<16x32xf32>
    %1091 = arith.mulf %1089, %1090 : vector<16x32xf32>
    %1092 = vector.broadcast %1071 : vector<1x32xf32> to vector<16x32xf32>
    %1093 = arith.addf %1091, %1092 : vector<16x32xf32>
    %c0_366 = arith.constant 0 : index
    %c0_367 = arith.constant 0 : index
    %1094 = vector.load %arg24[%c0_366, %c0_367] : memref<16x32xf32, #tpu.memory_space<vmem>>, vector<16x32xf32>
    tpu.vector_store %arg24[%c0_366, %c0_367], %1093 {strides = array<i32>} : memref<16x32xf32, #tpu.memory_space<vmem>>, vector<16x32xf32>,
    return
  }
}

</mosaic_0001>

<bundles_post_ra>
// kernel: my_transformer_decoder.1
= control target key start
LH: loop header
LB: loop body
LE: loop exit
PB: predicated region body
PF: predicated region fallthrough
CT: control target
= control target key end

     0   :  { %s10506_s0 = inlined_call_operand.vmem [shape: f32[16,32], index: 0, kind: input, shape index: {}]   ;;  %s10507_s1 = inlined_call_operand.vmem [shape: f32[16,32], index: 1, kind: input, shape index: {}]   ;;  %s10508_s2 = inlined_call_operand.vmem [shape: f32[2,32,96], index: 2, kind: input, shape index: {}]   ;;  %s10509_s3 = inlined_call_operand.vmem [shape: f32[2,1,96], index: 3, kind: input, shape index: {}]   ;;  %s10510_s4 = inlined_call_operand.vmem [shape: f32[2,32,32], index: 4, kind: input, shape index: {}]   ;;  %s10511_s5 = inlined_call_operand.vmem [shape: f32[2,1,32], index: 5, kind: input, shape index: {}]   ;;  %s10512_s6 = inlined_call_operand.vmem [shape: f32[2,32,32], index: 6, kind: input, shape index: {}]   ;;  %s10513_s7 = inlined_call_operand.vmem [shape: f32[2,1,32], index: 7, kind: input, shape index: {}]   ;;  %s10514_s8 = inlined_call_operand.hbm [shape: f32[2,32,64], index: 8, kind: input, shape index: {}]   ;;  %s10515_s9 = inlined_call_operand.vmem [shape: f32[2,1,64], index: 9, kind: input, shape index: {}]   ;;  %s10516_s10 = inlined_call_operand.hbm [shape: f32[2,32,32], index: 10, kind: input, shape index: {}]   ;;  %s10517_s11 = inlined_call_operand.vmem [shape: f32[2,1,32], index: 11, kind: input, shape index: {}]   ;;  %s10518_s12 = inlined_call_operand.hbm [shape: f32[2,32,64], index: 12, kind: input, shape index: {}]   ;;  %s10519_s13 = inlined_call_operand.vmem [shape: f32[2,1,64], index: 13, kind: input, shape index: {}]   ;;  %s10520_s14 = inlined_call_operand.vmem [shape: f32[2,64,32], index: 14, kind: input, shape index: {}]   ;;  %s10521_s15 = inlined_call_operand.vmem [shape: f32[2,1,32], index: 15, kind: input, shape index: {}]   ;;  %s10522_s16 = inlined_call_operand.vmem [shape: f32[2,1,32], index: 16, kind: input, shape index: {}]   ;;  %s10523_s17 = inlined_call_operand.vmem [shape: f32[2,1,32], index: 17, kind: input, shape index: {}]   ;;  %s10524_s18 = inlined_call_operand.vmem [shape: f32[2,1,32], index: 18, kind: input, shape index: {}]   ;;  %s10525_s19 = inlined_call_operand.vmem [shape: f32[2,1,32], index: 19, kind: input, shape index: {}]   ;;  %s10526_s20 = inlined_call_operand.vmem [shape: f32[2,1,32], index: 20, kind: input, shape index: {}]   ;;  %s10527_s21 = inlined_call_operand.vmem [shape: f32[2,1,32], index: 21, kind: input, shape index: {}]   ;;  %s10528_s22 = inlined_call_operand.vmem [shape: f32[1,32], index: 22, kind: input, shape index: {}]   ;;  %s10529_s23 = inlined_call_operand.vmem [shape: f32[1,32], index: 23, kind: input, shape index: {}]   ;;  %s10530_s24 = inlined_call_operand.vmem [shape: f32[16,32], index: 24, kind: output, shape index: {}]  }
   0x1   :  { %10562 = sst [smem:[#allocation9_spill]] %s10506_s0 }
   0x2   :  { %10563 = sst [smem:[#allocation10_spill]] %s10507_s1 }
   0x3   :  { %10564 = sst [smem:[#allocation11_spill]] %s10508_s2 }
   0x4   :  { %10565 = sst [smem:[#allocation12_spill]] %s10509_s3 }
   0x5   :  { %10566 = sst [smem:[#allocation13_spill]] %s10510_s4 }
   0x6   :  { %10567 = sst [smem:[#allocation14_spill]] %s10511_s5 }
   0x7   :  { %10568 = sst [smem:[#allocation15_spill]] %s10512_s6 }
   0x8   :  { %10569 = sst [smem:[#allocation16_spill]] %s10513_s7 }
   0x9   :  { %10570 = sst [smem:[#allocation17_spill]] %s10514_s8 }
   0xa   :  { %10571 = sst [smem:[#allocation18_spill]] %s10530_s24 }
   0xb   :  { %29 = vsyncpa [#allocation3], 0 }
   0xc   :  { %30 = vsyncpa [#allocation5], 0  ;;  %s9193_s5 = smov [#allocation4]   ;;  %s9194_s27 = smov [#allocation2]  }
   0xd   :  { %s66_s26 = sshll.u32 %s9193_s5, 4  ;;  %s52_s28 = sshll.u32 %s9194_s27, 4  ;;  %s67_s26 = int_to_ptr.vmem [resolvable:$true] %s66_s26  ;;  %s53_s28 = int_to_ptr.vmem [resolvable:$true] %s52_s28 }
   0xe   :  { %s9137_s6 = scalar_lea.vmem %s67_s26, 1024  ;;  %p9142_p1 = scmp.lt.s32.totalorder %s67_s26, %s67_s26 }
   0xf   :  { %p9138_p0 = scmp.ne.s32.totalorder %s67_s26, %s9137_s6  ;;  %p9143_p2 = scmp.lt.s32.totalorder %s9137_s6, %s9137_s6 }
  0x11   :  { %p9144_p3 = por %p9143_p2, %p9142_p1 }
  0x13   :  { %p9145_p4 = pnand %p9144_p3, %p9138_p0 }
  0x15   :  { %9148 = shalt.err (!%p9145_p4)
}
  0x16   :  { %s9195_s2 = smov 128   ;;  %s9196_s29 = smov 8  }
  0x17   :  { %72 = dma.hbm_to_vmem [thread:$0]  %s10516_s10, 1024, %s67_s26, [#allocation5], %s9195_s2, %s9195_s2, %s9196_s29  }
  0x18   :  { %s9157_s30 = scalar_lea.vmem %s53_s28, 1024  ;;  %p9162_p6 = scmp.lt.s32.totalorder %s53_s28, %s53_s28 }
  0x19   :  { %p9158_p5 = scmp.ne.s32.totalorder %s53_s28, %s9157_s30  ;;  %p9163_p7 = scmp.lt.s32.totalorder %s9157_s30, %s9157_s30 }
  0x1b   :  { %p9164_p8 = por %p9163_p7, %p9162_p6 }
  0x1d   :  { %p9165_p9 = pnand %p9164_p8, %p9158_p5 }
  0x1f   :  { %9168 = shalt.err (!%p9165_p9)
}
  0x20   :  { %s10572_s8 = sld [smem:[#allocation17_spill]]  ;;  %s9197_s4 = smov [#allocation6]  }
  0x21   :  { %s80_s1 = sshll.u32 %s9197_s4, 4  ;;  %s81_s1 = int_to_ptr.vmem [resolvable:$true] %s80_s1 }
  0x22   :  { %s9177_s5 = scalar_lea.vmem %s81_s1, 1024  ;;  %p9182_p11 = scmp.lt.s32.totalorder %s81_s1, %s81_s1 }
  0x23   :  { %p9178_p10 = scmp.ne.s32.totalorder %s81_s1, %s9177_s5  ;;  %p9183_p12 = scmp.lt.s32.totalorder %s9177_s5, %s9177_s5 }
  0x25   :  { %p9184_p13 = por %p9183_p12, %p9182_p11 }
  0x26   :  { %58 = dma.hbm_to_vmem [thread:$0]  %s10572_s8, 1024, %s53_s28, [#allocation3], %s9195_s2, %s9195_s2, %s9196_s29  }
  0x27   :  { %p9185_p0 = pnand %p9184_p13, %p9178_p10 }
  0x29   :  { %9188 = shalt.err (!%p9185_p0)
}
  0x2a   :  { %86 = dma.hbm_to_vmem [thread:$0]  %s10518_s12, 1024, %s81_s1, [#allocation5], %s9195_s2, %s9195_s2, %s9196_s29  }
  0x2b   :  { %9189 = dma.done.wait [#allocation3], 1024  }
  0x2c   :  { %9190 = vsyncadd [#allocation3], 4294966272 }
  0x2d   :  { %9191 = dma.done.wait [#allocation5], 2048  }
  0x2e   :  { %9192 = vsyncadd [#allocation5], 4294965248  ;;  %v9198_v0 = vmov 0.0   ;;  %vm9199_vm0 = vmmov 0   ;;  %s10573_s6 = sld [smem:[#allocation11_spill]]  ;;  %vm143_vm1 = vcmask 261120   ;;  %v119_v19 = vlaneseq }
  0x2f   :  { %8355 = vmatprep.subr.bf16.mxu0 %v9198_v0  ;;  %8359 = vmatprep.mubr.msk.bf16.mxu0 %vm9199_vm0, %v9198_v0  ;;  %s10574_s8 = sld [smem:[#allocation9_spill]]  ;;  %s10543_s27 = smov 64   ;;  %vm196_vm2 = vcmask 64512   ;;  %vm534_vm4 = vcmask 1043456   ;;  %vm3907_vm5 = vcmask 523264  }
  0x30   :  { %8363 = vmatprep.subr.mxu1 %v9198_v0  ;;  %8365 = vmatprep.mubr.msk.f32.mxu1 %vm9199_vm0, %v9198_v0  ;;  %s10575_s26 = sld [smem:[#allocation12_spill]]  ;;  %s10557_s28 = smov 96   ;;  %v120_v20 = vshrl.u32 %v119_v19, 7  ;;  %v122_v21 = vand.u32 127, %v119_v19 }
  0x31   :  { %s10555_s12 = smov 88   ;;  %s10559_s2 = smov 120  }
  0x32   :  { %vm123_vm3 = vcmp.gt.s32.totalorder %v122_v21, %v120_v20  ;;  %s10545_s29 = smov 56   ;;  %s10549_s0 = smov 80  }
  0x33   :  { %v9401_v23 = vsel %vm123_vm3, -1e+30, %v9198_v0  ;;  %s10553_s7 = smov 112   ;;  %s10576_s25 = sld [smem:[#allocation13_spill]] }
  0x34   :  { %v131_v1 = vld [vmem:[%s10573_s6 + $0x10] sm:$0xff]  ;;  %v132_v2 = vld [vmem:[%s10573_s6 + $0x18] sm:$0xff]  ;;  %v129_v3 = vld [vmem:[%s10573_s6] sm:$0xff]  ;;  %s10541_s1 = smov 48   ;;  %s10547_s5 = smov 72  }
  0x35   :  { %v136_v4 = vpack.c.bf16 %v132_v2, %v131_v1  ;;  %v130_v5 = vld [vmem:[%s10573_s6 + $0x8] sm:$0xff]  ;;  %v9366_v7 = vld [vmem:[%s10574_s8] sm:$0xff]  ;;  %s10551_s10 = smov 104   ;;  %s10577_s30 = sld [smem:[#allocation14_spill]] }
  0x36   :  { %v135_v6 = vpack.c.bf16 %v130_v5, %v129_v3  ;;  %v9371_v8 = vld [vmem:[%s10574_s8 + $0x8] sm:$0xff]  ;;  %v7930_v10 = vld [vmem:[%s10575_s26] ss:$0 sm:$0xff]  ;;  %s10539_s8 = smov 40   ;;  %s10585_s3 = smov 120  }
  0x37   :  { %8356 = vmatpush3.bf16.msra.mxu0 %v136_v4  ;;  %v134_v9 = vpack.c.bf16 %v9371_v8, %v9366_v7  ;;  %s10586_s24 = smov 96   ;;  %s10591_s4 = smov 40  }
  0x38   :  { %8357 = vmatprep.subr.bf16.mxu0 %v9198_v0 }
  0x39   :  { %v189_v50 = vld [vmem:[%s10576_s25 + $0x8] sm:$0xff]  ;;  %v188_v55 = vld [vmem:[%s10576_s25] sm:$0xff] }
  0x3a   :  { %v530_v51 = vpack.c.bf16 %v189_v50, %v189_v50  ;;  %v361_v56 = vpack.c.bf16 %v188_v55, %v188_v55 }
  0x3b   :  { %8358 = vmatpush3.bf16.msra.mxu0 %v135_v6 }
  0x3c   :  { %8378 = vmatprep.subr.mxu0 %v9198_v0  ;;  %v9429_v52 = vsel %vm534_vm4, %v530_v51, 0  ;;  %v9438_v59 = vsel %vm534_vm4, %v361_v56, 0 }
  0x3e   :  { %8360 = vmatmul.mubr.msk.bf16.vlgmr.msra.gmra.mxu0 %vm143_vm1, %v134_v9 }
  0x3f   :  { %8380 = vmatprep.mubr.msk.f32.mxu0 %vm9199_vm0, %v9198_v0 }
  0xfe   :  { %v181_v11 = vpop.f32.mrf.mxu0 }
  0xff   :  { %v9383_v12 = vadd.f32 %v7930_v10, %v181_v11 }
 0x100   :  { %v8361_v13 = vpop.f32.mrf.mxu0 }
 0x101   :  { %284 = vrot.lane.b32.xlu1 %v9383_v12, %s10543_s27  ;;  %194 = vrot.lane.b32.xlu0 %v9383_v12, %s10557_s28 }
 0x102   :  { %v184_v14 = vpop.f32.mrf.mxu0 }
 0x103   :  { %v9389_v15 = vadd.f32 %v7930_v10, %v184_v14 }
 0x104   :  { %v8362_v16 = vpop.f32.mrf.mxu0 }
 0x105   :  { %364 = vrot.lane.b32.xlu1 %v9383_v12, %s10555_s12 }
 0x173   :  { %v195_v17 = vpop.permute.xlu0 %194  ;;  %v285_v18 = vpop.permute.xlu1 %284 }
 0x174   :  { %8364 = vmatpush3.xpose.msk.msra.mxu1 %vm196_vm2, %v195_v17 }
 0x175   :  { %8368 = vmatprep.subr.mxu1 %v9198_v0 }
 0x177   :  { %8366 = vmatmul.mubr.msk.f32.vlgmr.msra.gmra.mxu1 %vm196_vm2, %v9383_v12  ;;  %v365_v33 = vpop.permute.xlu1 %364 }
 0x178   :  { %8369 = vmatpush3.msra.mxu1 %v285_v18  ;;  %8370 = vmatprep.mubr.msk.f32.mxu1 %vm9199_vm0, %v9198_v0 }
 0x179   :  { %8373 = vmatprep.subr.mxu1 %v9198_v0 }
 0x237   :  { %v267_v22 = vpop.f32.mrf.mxu1 }
 0x238   :  { %v271_v24 = vmul.f32 0.35355338, %v267_v22 }
 0x239   :  { %v8367_v25 = vpop.f32.mrf.mxu1 }
 0x23a   :  { %v272_v26 = vadd.f32 %v271_v24, %v9401_v23 }
 0x23c   :  { %v273_v27 = vsel %vm196_vm2, %v272_v26, -inf }
 0x23d   :  { %274 = vmax.xlane.f32.xlu0 %v273_v27 }
 0x2c6   :  { %v275_v28 = vpop.xlane.xlu0 %274 }
 0x2c7   :  { %v276_v29 = vsub.f32 %v272_v26, %v275_v28 }
 0x2c9   :  { %v277_v30 = vmul.f32 1.442695, %v276_v29 }
 0x2cb   :  { %8973 = vpow2.f32 %v277_v30 }
 0x2d8   :  { %v8974_v31 = vpop.eup %8973 }
 0x2d9   :  { %v279_v32 = vsel %vm196_vm2, %v8974_v31, 0.0 }
 0x2da   :  { %280 = vadd.xlane.f32.xlu1 %v279_v32  ;;  %v190_v32 = vld [vmem:[%s10576_s25 + $0x10] sm:$0xff] }
 0x2eb   :  { %362 = vrot.lane.b32.xlu1 %v9383_v12, %s10559_s2 }
 0x363   :  { %v281_v34 = vpop.xlane.xlu1 %280 }
 0x364   :  { %8975 = vrcp.f32 %v281_v34 }
 0x367   :  { %v363_v37 = vpop.permute.xlu1 %362 }
 0x371   :  { %v8976_v35 = vpop.eup %8975 }
 0x372   :  { %v283_v36 = vmul.f32 %v8976_v35, %v8974_v31 }
 0x374   :  { %8371 = vmatmul.mubr.msk.f32.vlgmr.msra.gmra.mxu1 %vm196_vm2, %v283_v36 }
 0x375   :  { %8374 = vmatpush3.xpose.msk.msra.mxu1 %vm196_vm2, %v365_v33  ;;  %8375 = vmatprep.mubr.msk.f32.mxu1 %vm9199_vm0, %v9198_v0  ;;  %v792_v33 = vpack.c.bf16 %v190_v32, %v190_v32 }
 0x376   :  { %8383 = vmatprep.subr.bf16.mxu1 %v9198_v0 }
 0x377   :  { %v9482_v34 = vsel %vm534_vm4, %v792_v33, 0 }
 0x378   :  { %8376 = vmatmul.mubr.msk.f32.vlgmr.msra.gmra.mxu1 %vm196_vm2, %v363_v37 }
 0x379   :  { %8385 = vmatprep.mubr.msk.bf16.mxu1 %vm9199_vm0, %v9198_v0  ;;  %8384 = vmatpush3.bf16.msra.mxu1 %v9429_v52 }
 0x37a   :  { %8395 = vmatprep.subr.mxu1 %v9198_v0 }
 0x434   :  { %v356_v38 = vpop.f32.mrf.mxu1 }
 0x435   :  { %v360_v60 = vpack.c.bf16 %v356_v38, %v356_v38 }
 0x436   :  { %v8372_v39 = vpop.f32.mrf.mxu1 }
 0x438   :  { %v436_v40 = vpop.f32.mrf.mxu1 }
 0x439   :  { %v440_v41 = vmul.f32 0.35355338, %v436_v40 }
 0x43a   :  { %v8377_v42 = vpop.f32.mrf.mxu1 }
 0x43b   :  { %v441_v43 = vadd.f32 %v440_v41, %v9401_v23 }
 0x43d   :  { %v442_v44 = vsel %vm196_vm2, %v441_v43, -inf }
 0x43e   :  { %443 = vmax.xlane.f32.xlu1 %v442_v44 }
 0x4c7   :  { %v444_v45 = vpop.xlane.xlu1 %443 }
 0x4c8   :  { %v445_v46 = vsub.f32 %v441_v43, %v444_v45 }
 0x4ca   :  { %v446_v47 = vmul.f32 1.442695, %v445_v46 }
 0x4cc   :  { %8977 = vpow2.f32 %v446_v47 }
 0x4d9   :  { %v8978_v48 = vpop.eup %8977 }
 0x4da   :  { %v448_v49 = vsel %vm196_vm2, %v8978_v48, 0.0 }
 0x4db   :  { %449 = vadd.xlane.f32.xlu0 %v448_v49 }
 0x4f1   :  { %453 = vrot.lane.b32.xlu0 %v9383_v12, %s10545_s29 }
 0x4f5   :  { %626 = vrot.lane.b32.xlu0 %v9383_v12, %s10549_s0 }
 0x4f9   :  { %624 = vrot.lane.b32.xlu0 %v9383_v12, %s10553_s7 }
 0x564   :  { %v450_v53 = vpop.xlane.xlu0 %449 }
 0x565   :  { %8979 = vrcp.f32 %v450_v53  ;;  %v191_v53 = vld [vmem:[%s10576_s25 + $0x18] sm:$0xff] }
 0x568   :  { %v454_v54 = vpop.permute.xlu0 %453 }
 0x569   :  { %8379 = vmatpush3.msra.mxu0 %v454_v54  ;;  %v1008_v54 = vpack.c.bf16 %v191_v53, %v191_v53 }
 0x56a   :  { %8389 = vmatprep.subr.bf16.mxu0 %v9198_v0 }
 0x56c   :  { %v627_v1 = vpop.permute.xlu0 %626 }
 0x570   :  { %v625_v5 = vpop.permute.xlu0 %624 }
 0x572   :  { %v8980_v57 = vpop.eup %8979 }
 0x573   :  { %v452_v58 = vmul.f32 %v8980_v57, %v8978_v48 }
 0x575   :  { %8381 = vmatmul.mubr.msk.f32.vlgmr.msra.gmra.mxu0 %vm196_vm2, %v452_v58 }
 0x576   :  { %8390 = vmatpush3.bf16.msra.mxu0 %v9438_v59  ;;  %8391 = vmatprep.mubr.msk.bf16.mxu0 %vm9199_vm0, %v9198_v0 }
 0x577   :  { %8400 = vmatprep.subr.mxu0 %v9198_v0 }
 0x579   :  { %8392 = vmatmul.mubr.msk.bf16.vlgmr.msra.gmra.mxu0 %vm196_vm2, %v360_v60 }
 0x57a   :  { %8402 = vmatprep.mubr.msk.f32.mxu0 %vm9199_vm0, %v9198_v0 }
 0x635   :  { %v525_v61 = vpop.f32.mrf.mxu0 }
 0x636   :  { %v529_v62 = vpack.c.bf16 %v525_v61, %v525_v61 }
 0x637   :  { %v8382_v63 = vpop.f32.mrf.mxu0 }
 0x638   :  { %8386 = vmatmul.mubr.msk.bf16.vlgmr.msra.gmra.mxu1 %vm196_vm2, %v529_v62 }
 0x639   :  { %8396 = vmatpush3.xpose.msk.msra.mxu1 %vm196_vm2, %v627_v1  ;;  %v9450_v2 = vpop.f32.mrf.mxu0  ;;  %8397 = vmatprep.mubr.msk.f32.mxu1 %vm9199_vm0, %v9198_v0 }
 0x63a   :  { %8405 = vmatprep.subr.bf16.mxu1 %v9198_v0 }
 0x63b   :  { %v8393_v3 = vpop.f32.mrf.mxu0 }
 0x63d   :  { %v621_v4 = vpop.f32.mrf.mxu0 }
 0x63f   :  { %v8394_v6 = vpop.f32.mrf.mxu0 }
 0x640   :  { %8398 = vmatmul.mubr.msk.f32.vlgmr.msra.gmra.mxu1 %vm196_vm2, %v625_v5 }
 0x641   :  { %8407 = vmatprep.mubr.msk.bf16.mxu1 %vm9199_vm0, %v9198_v0  ;;  %8406 = vmatpush3.bf16.msra.mxu1 %v9482_v34 }
 0x642   :  { %8421 = vmatprep.subr.bf16.mxu1 %v9198_v0 }
 0x6f8   :  { %v9458_v9 = vpop.f32.mrf.mxu1 }
 0x6f9   :  { %v619_v48 = vadd.f32 %v9450_v2, %v9458_v9 }
 0x6fa   :  { %v8387_v10 = vpop.f32.mrf.mxu1 }
 0x6fc   :  { %v575_v11 = vpop.f32.mrf.mxu1 }
 0x6fe   :  { %v8388_v13 = vpop.f32.mrf.mxu1 }
 0x700   :  { %v698_v14 = vpop.f32.mrf.mxu1 }
 0x701   :  { %v702_v16 = vmul.f32 0.35355338, %v698_v14 }
 0x702   :  { %v8399_v17 = vpop.f32.mrf.mxu1 }
 0x703   :  { %v703_v18 = vadd.f32 %v702_v16, %v9401_v23 }
 0x705   :  { %v704_v19 = vsel %vm196_vm2, %v703_v18, -inf }
 0x706   :  { %705 = vmax.xlane.f32.xlu1 %v704_v19 }
 0x717   :  { %715 = vrot.lane.b32.xlu1 %v9383_v12, %s10541_s1 }
 0x71b   :  { %842 = vrot.lane.b32.xlu1 %v9383_v12, %s10547_s5 }
 0x71f   :  { %840 = vrot.lane.b32.xlu1 %v9383_v12, %s10551_s10 }
 0x78f   :  { %v706_v20 = vpop.xlane.xlu1 %705 }
 0x790   :  { %v707_v21 = vsub.f32 %v703_v18, %v706_v20 }
 0x792   :  { %v708_v22 = vmul.f32 1.442695, %v707_v21 }
 0x793   :  { %v716_v24 = vpop.permute.xlu1 %715 }
 0x794   :  { %8981 = vpow2.f32 %v708_v22  ;;  %8401 = vmatpush3.msra.mxu0 %v716_v24 }
 0x795   :  { %8411 = vmatprep.subr.mxu0 %v9198_v0 }
 0x797   :  { %v843_v29 = vpop.permute.xlu1 %842 }
 0x79b   :  { %v841_v31 = vpop.permute.xlu1 %840 }
 0x7a1   :  { %v8982_v25 = vpop.eup %8981 }
 0x7a2   :  { %v710_v26 = vsel %vm196_vm2, %v8982_v25, 0.0 }
 0x7a3   :  { %711 = vadd.xlane.f32.xlu0 %v710_v26 }
 0x82c   :  { %v712_v27 = vpop.xlane.xlu0 %711 }
 0x82d   :  { %8983 = vrcp.f32 %v712_v27 }
 0x83a   :  { %v8984_v28 = vpop.eup %8983 }
 0x83b   :  { %v714_v30 = vmul.f32 %v8984_v28, %v8982_v25 }
 0x83d   :  { %8403 = vmatmul.mubr.msk.f32.vlgmr.msra.gmra.mxu0 %vm196_vm2, %v714_v30 }
 0x83e   :  { %8412 = vmatpush3.xpose.msk.msra.mxu0 %vm196_vm2, %v843_v29  ;;  %8413 = vmatprep.mubr.msk.f32.mxu0 %vm9199_vm0, %v9198_v0 }
 0x83f   :  { %8416 = vmatprep.subr.mxu0 %v9198_v0 }
 0x841   :  { %8414 = vmatmul.mubr.msk.f32.vlgmr.msra.gmra.mxu0 %vm196_vm2, %v841_v31 }
 0x842   :  { %8418 = vmatprep.mubr.msk.f32.mxu0 %vm9199_vm0, %v9198_v0 }
 0x8fd   :  { %v787_v35 = vpop.f32.mrf.mxu0 }
 0x8fe   :  { %v791_v36 = vpack.c.bf16 %v787_v35, %v787_v35 }
 0x8ff   :  { %v8404_v37 = vpop.f32.mrf.mxu0 }
 0x900   :  { %8408 = vmatmul.mubr.msk.bf16.vlgmr.msra.gmra.mxu1 %vm196_vm2, %v791_v36 }
 0x901   :  { %v914_v38 = vpop.f32.mrf.mxu0  ;;  %8423 = vmatprep.mubr.msk.bf16.mxu1 %vm9199_vm0, %v9198_v0 }
 0x902   :  { %v918_v39 = vmul.f32 0.35355338, %v914_v38 }
 0x903   :  { %v8415_v40 = vpop.f32.mrf.mxu0 }
 0x904   :  { %v919_v41 = vadd.f32 %v918_v39, %v9401_v23 }
 0x906   :  { %v920_v42 = vsel %vm196_vm2, %v919_v41, -inf }
 0x907   :  { %921 = vmax.xlane.f32.xlu1 %v920_v42 }
 0x918   :  { %1223 = vrot.lane.b32.xlu1 %v9389_v15, %s10559_s2 }
 0x990   :  { %v922_v43 = vpop.xlane.xlu1 %921 }
 0x991   :  { %v923_v44 = vsub.f32 %v919_v41, %v922_v43 }
 0x993   :  { %v924_v45 = vmul.f32 1.442695, %v923_v44 }
 0x994   :  { %v1224_v11 = vpop.permute.xlu1 %1223 }
 0x995   :  { %8985 = vpow2.f32 %v924_v45 }
 0x9a2   :  { %v8986_v46 = vpop.eup %8985 }
 0x9a3   :  { %v926_v47 = vsel %vm196_vm2, %v8986_v46, 0.0 }
 0x9a4   :  { %927 = vadd.xlane.f32.xlu0 %v926_v47 }
 0x9ba   :  { %931 = vrot.lane.b32.xlu0 %v9383_v12, %s10539_s8  ;;  %v9506_v12 = vsel %vm534_vm4, %v1008_v54, 0 }
 0x9bb   :  { %8422 = vmatpush3.bf16.msra.mxu1 %v9506_v12 }
 0x9bc   :  { %8437 = vmatprep.subr.mxu1 %v9198_v0 }
 0x9be   :  { %1057 = vrot.lane.b32.xlu0 %v9389_v15, %s10557_s28 }
 0x9c0   :  { %v833_v49 = vpop.f32.mrf.mxu1 }
 0x9c1   :  { %v839_v50 = vadd.f32 %v833_v49, %v619_v48 }
 0x9c2   :  { %v8409_v51 = vpop.f32.mrf.mxu1  ;;  %1225 = vrot.lane.b32.xlu0 %v9389_v15, %s10555_s12 }
 0x9c4   :  { %v836_v55 = vpop.f32.mrf.mxu1 }
 0x9c6   :  { %v8410_v56 = vpop.f32.mrf.mxu1 }
 0xa2d   :  { %v928_v57 = vpop.xlane.xlu0 %927 }
 0xa2e   :  { %8987 = vrcp.f32 %v928_v57 }
 0xa31   :  { %v932_v58 = vpop.permute.xlu0 %931 }
 0xa32   :  { %8417 = vmatpush3.msra.mxu0 %v932_v58 }
 0xa33   :  { %8427 = vmatprep.subr.mxu0 %v9198_v0 }
 0xa35   :  { %v1058_v62 = vpop.permute.xlu0 %1057 }
 0xa39   :  { %v1226_v3 = vpop.permute.xlu0 %1225 }
 0xa3b   :  { %v8988_v60 = vpop.eup %8987 }
 0xa3c   :  { %v930_v61 = vmul.f32 %v8988_v60, %v8986_v46 }
 0xa3e   :  { %8419 = vmatmul.mubr.msk.f32.vlgmr.msra.gmra.mxu0 %vm196_vm2, %v930_v61 }
 0xa3f   :  { %8428 = vmatpush3.xpose.msk.msra.mxu0 %vm196_vm2, %v1058_v62  ;;  %8429 = vmatprep.mubr.msk.f32.mxu0 %vm9199_vm0, %v9198_v0 }
 0xa40   :  { %8432 = vmatprep.subr.mxu0 %v9198_v0 }
 0xa42   :  { %8430 = vmatmul.mubr.msk.f32.vlgmr.msra.gmra.mxu0 %vm196_vm2, %v9389_v15 }
 0xa43   :  { %8434 = vmatprep.mubr.msk.f32.mxu0 %vm9199_vm0, %v9198_v0 }
 0xafe   :  { %v1003_v63 = vpop.f32.mrf.mxu0 }
 0xaff   :  { %v1007_v1 = vpack.c.bf16 %v1003_v63, %v1003_v63 }
 0xb00   :  { %v8420_v2 = vpop.f32.mrf.mxu0 }
 0xb01   :  { %8424 = vmatmul.mubr.msk.bf16.vlgmr.msra.gmra.mxu1 %vm196_vm2, %v1007_v1 }
 0xb02   :  { %8438 = vmatpush3.xpose.msk.msra.mxu1 %vm196_vm2, %v1226_v3  ;;  %v1129_v4 = vpop.f32.mrf.mxu0  ;;  %8439 = vmatprep.mubr.msk.f32.mxu1 %vm9199_vm0, %v9198_v0 }
 0xb03   :  { %v1133_v5 = vmul.f32 0.35355338, %v1129_v4  ;;  %8447 = vmatprep.subr.bf16.mxu1 %v9198_v0 }
 0xb04   :  { %v8431_v6 = vpop.f32.mrf.mxu0 }
 0xb05   :  { %v1134_v9 = vadd.f32 %v1133_v5, %v9401_v23 }
 0xb07   :  { %v1135_v10 = vsel %vm196_vm2, %v1134_v9, -inf }
 0xb08   :  { %1136 = vmax.xlane.f32.xlu0 %v1135_v10 }
 0xb09   :  { %8440 = vmatmul.mubr.msk.f32.vlgmr.msra.gmra.mxu1 %vm196_vm2, %v1224_v11 }
 0xb0a   :  { %8448 = vmatpush3.bf16.msra.mxu1 %v9429_v52  ;;  %8449 = vmatprep.mubr.msk.bf16.mxu1 %vm9199_vm0, %v9198_v0 }
 0xb0b   :  { %8459 = vmatprep.subr.mxu1 %v9198_v0 }
 0xb91   :  { %v1137_v13 = vpop.xlane.xlu0 %1136 }
 0xb92   :  { %v1138_v14 = vsub.f32 %v1134_v9, %v1137_v13 }
 0xb94   :  { %v1139_v16 = vmul.f32 1.442695, %v1138_v14 }
 0xb96   :  { %8989 = vpow2.f32 %v1139_v16 }
 0xba3   :  { %v8990_v17 = vpop.eup %8989 }
 0xba4   :  { %v1141_v18 = vsel %vm196_vm2, %v8990_v17, 0.0 }
 0xba5   :  { %1142 = vadd.xlane.f32.xlu0 %v1141_v18 }
 0xbc1   :  { %v1049_v19 = vpop.f32.mrf.mxu1 }
 0xbc2   :  { %v9533_v20 = vadd.f32 %v1049_v19, %v839_v50 }
 0xbc3   :  { %v8425_v21 = vpop.f32.mrf.mxu1 }
 0xbc5   :  { %v1052_v22 = vpop.f32.mrf.mxu1 }
 0xbc7   :  { %v8426_v24 = vpop.f32.mrf.mxu1 }
 0xbc9   :  { %v1297_v52 = vpop.f32.mrf.mxu1 }
 0xbca   :  { %v1301_v25 = vmul.f32 0.35355338, %v1297_v52 }
 0xbcb   :  { %v8441_v26 = vpop.f32.mrf.mxu1 }
 0xbcc   :  { %v1302_v27 = vadd.f32 %v1301_v25, %v9401_v23 }
 0xbce   :  { %v1303_v28 = vsel %vm196_vm2, %v1302_v27, -inf }
 0xbcf   :  { %1304 = vmax.xlane.f32.xlu1 %v1303_v28 }
 0xbe0   :  { %1314 = vrot.lane.b32.xlu1 %v9389_v15, %s10545_s29  ;;  %s10581_s29 = smov 112  }
 0xc2e   :  { %v1143_v35 = vpop.xlane.xlu0 %1142 }
 0xc58   :  { %v1305_v29 = vpop.xlane.xlu1 %1304 }
 0xc59   :  { %v1306_v30 = vsub.f32 %v1302_v27, %v1305_v29 }
 0xc5b   :  { %v1307_v31 = vmul.f32 1.442695, %v1306_v30 }
 0xc5c   :  { %v1315_v40 = vpop.permute.xlu1 %1314 }
 0xc5d   :  { %8991 = vpow2.f32 %v1307_v31 }
 0xc5e   :  { %8993 = vrcp.f32 %v1143_v35 }
 0xc6a   :  { %v8992_v32 = vpop.eup %8991 }
 0xc6b   :  { %v1309_v33 = vsel %vm196_vm2, %v8992_v32, 0.0  ;;  %v8994_v37 = vpop.eup %8993 }
 0xc6c   :  { %1310 = vadd.xlane.f32.xlu0 %v1309_v33  ;;  %v1145_v39 = vmul.f32 %v8994_v37, %v8990_v17 }
 0xc82   :  { %1146 = vrot.lane.b32.xlu0 %v9389_v15, %s10543_s27 }
 0xc86   :  { %1479 = vrot.lane.b32.xlu0 %v9389_v15, %s10549_s0  ;;  %s10579_s0 = sld [smem:[#allocation15_spill]] }
 0xc8a   :  { %1477 = vrot.lane.b32.xlu0 %v9389_v15, %s10553_s7  ;;  %s10582_s7 = smov 104  }
 0xcf5   :  { %v1311_v36 = vpop.xlane.xlu0 %1310 }
 0xcf6   :  { %8995 = vrcp.f32 %v1311_v36 }
 0xcf9   :  { %v1147_v38 = vpop.permute.xlu0 %1146 }
 0xcfa   :  { %8433 = vmatpush3.msra.mxu0 %v1147_v38 }
 0xcfb   :  { %8435 = vmatmul.mubr.msk.f32.vlgmr.msra.gmra.mxu0 %vm196_vm2, %v1145_v39  ;;  %8442 = vmatprep.subr.mxu0 %v9198_v0 }
 0xcfc   :  { %8443 = vmatpush3.msra.mxu0 %v1315_v40  ;;  %8444 = vmatprep.mubr.msk.f32.mxu0 %vm9199_vm0, %v9198_v0 }
 0xcfd   :  { %8453 = vmatprep.subr.bf16.mxu0 %v9198_v0  ;;  %v1480_v49 = vpop.permute.xlu0 %1479 }
 0xd03   :  { %v8996_v41 = vpop.eup %8995 }
 0xd04   :  { %v1313_v42 = vmul.f32 %v8996_v41, %v8992_v32 }
 0xd06   :  { %8445 = vmatmul.mubr.msk.f32.vlgmr.msra.gmra.mxu0 %vm196_vm2, %v1313_v42 }
 0xd07   :  { %8454 = vmatpush3.bf16.msra.mxu0 %v9438_v59  ;;  %8455 = vmatprep.mubr.msk.bf16.mxu0 %vm9199_vm0, %v9198_v0  ;;  %v1478_v59 = vpop.permute.xlu0 %1477 }
 0xd08   :  { %8464 = vmatprep.subr.mxu0 %v9198_v0 }
 0xdbb   :  { %v1218_v43 = vpop.f32.mrf.mxu0 }
 0xdbc   :  { %v1222_v44 = vpack.c.bf16 %v1218_v43, %v1218_v43 }
 0xdbd   :  { %v8436_v45 = vpop.f32.mrf.mxu0 }
 0xdbe   :  { %8456 = vmatmul.mubr.msk.bf16.vlgmr.msra.gmra.mxu0 %vm196_vm2, %v1222_v44 }
 0xdbf   :  { %8466 = vmatprep.mubr.msk.f32.mxu0 %vm9199_vm0, %v9198_v0 }
 0xdc6   :  { %v1386_v46 = vpop.f32.mrf.mxu0 }
 0xdc7   :  { %v1390_v47 = vpack.c.bf16 %v1386_v46, %v1386_v46 }
 0xdc8   :  { %v8446_v48 = vpop.f32.mrf.mxu0 }
 0xdc9   :  { %8450 = vmatmul.mubr.msk.bf16.vlgmr.msra.gmra.mxu1 %vm196_vm2, %v1390_v47 }
 0xdca   :  { %8460 = vmatpush3.xpose.msk.msra.mxu1 %vm196_vm2, %v1480_v49  ;;  %8461 = vmatprep.mubr.msk.f32.mxu1 %vm9199_vm0, %v9198_v0 }
 0xdcb   :  { %8469 = vmatprep.subr.bf16.mxu1 %v9198_v0 }
 0xdd1   :  { %8462 = vmatmul.mubr.msk.f32.vlgmr.msra.gmra.mxu1 %vm196_vm2, %v1478_v59 }
 0xdd2   :  { %8470 = vmatpush3.bf16.msra.mxu1 %v9482_v34  ;;  %8471 = vmatprep.mubr.msk.bf16.mxu1 %vm9199_vm0, %v9198_v0 }
 0xdd3   :  { %8485 = vmatprep.subr.bf16.mxu1 %v9198_v0 }
 0xe7e   :  { %v1471_v50 = vpop.f32.mrf.mxu0 }
 0xe80   :  { %v8457_v51 = vpop.f32.mrf.mxu0 }
 0xe82   :  { %v1474_v53 = vpop.f32.mrf.mxu0 }
 0xe84   :  { %v8458_v54 = vpop.f32.mrf.mxu0 }
 0xe89   :  { %v1428_v55 = vpop.f32.mrf.mxu1 }
 0xe8a   :  { %v9569_v56 = vadd.f32 %v1471_v50, %v1428_v55 }
 0xe8b   :  { %v8451_v57 = vpop.f32.mrf.mxu1 }
 0xe8d   :  { %v1431_v58 = vpop.f32.mrf.mxu1 }
 0xe8f   :  { %v8452_v60 = vpop.f32.mrf.mxu1 }
 0xe91   :  { %v1551_v61 = vpop.f32.mrf.mxu1 }
 0xe92   :  { %v1555_v62 = vmul.f32 0.35355338, %v1551_v61 }
 0xe93   :  { %v8463_v63 = vpop.f32.mrf.mxu1 }
 0xe94   :  { %v1556_v34 = vadd.f32 %v1555_v62, %v9401_v23  ;;  %v2016_v63 = vld [vmem:[#allocation2 + $0x10] sm:$0xff] }
 0xe96   :  { %v1557_v1 = vsel %vm196_vm2, %v1556_v34, -inf }
 0xe97   :  { %1558 = vmax.xlane.f32.xlu1 %v1557_v1 }
 0xea8   :  { %1691 = vrot.lane.b32.xlu1 %v9389_v15, %s10547_s5  ;;  %s10583_s5 = smov 80  }
 0xeac   :  { %1689 = vrot.lane.b32.xlu1 %v9389_v15, %s10551_s10  ;;  %s10584_s10 = smov 72  }
 0xf20   :  { %v1559_v2 = vpop.xlane.xlu1 %1558 }
 0xf21   :  { %v1560_v3 = vsub.f32 %v1556_v34, %v1559_v2  ;;  %v2017_v34 = vld [vmem:[#allocation2 + $0x18] sm:$0xff]  ;;  %v2015_v2 = vld [vmem:[#allocation2 + $0x8] sm:$0xff] }
 0xf22   :  { %v2021_v1 = vpack.c.bf16 %v2017_v34, %v2016_v63 }
 0xf23   :  { %v1561_v4 = vmul.f32 1.442695, %v1560_v3 }
 0xf24   :  { %v1692_v13 = vpop.permute.xlu1 %1691 }
 0xf25   :  { %8997 = vpow2.f32 %v1561_v4 }
 0xf28   :  { %v1690_v16 = vpop.permute.xlu1 %1689 }
 0xf32   :  { %v8998_v5 = vpop.eup %8997 }
 0xf33   :  { %v1563_v6 = vsel %vm196_vm2, %v8998_v5, 0.0 }
 0xf34   :  { %1564 = vadd.xlane.f32.xlu0 %v1563_v6 }
 0xf4a   :  { %1568 = vrot.lane.b32.xlu0 %v9389_v15, %s10541_s1  ;;  %s10580_s1 = sld [smem:[#allocation16_spill]] }
 0xfbd   :  { %v1565_v9 = vpop.xlane.xlu0 %1564 }
 0xfbe   :  { %8999 = vrcp.f32 %v1565_v9  ;;  %v1958_v9 = vld [vmem:[%s10579_s0 + $0x10] sm:$0xff] }
 0xfc1   :  { %v1569_v10 = vpop.permute.xlu0 %1568 }
 0xfc2   :  { %8465 = vmatpush3.msra.mxu0 %v1569_v10  ;;  %v1959_v10 = vld [vmem:[%s10579_s0 + $0x18] sm:$0xff] }
 0xfc3   :  { %8475 = vmatprep.subr.mxu0 %v9198_v0 }
 0xfcb   :  { %v9000_v11 = vpop.eup %8999 }
 0xfcc   :  { %v1567_v14 = vmul.f32 %v9000_v11, %v8998_v5  ;;  %v1963_v11 = vpack.c.bf16 %v1959_v10, %v1958_v9 }
 0xfce   :  { %8467 = vmatmul.mubr.msk.f32.vlgmr.msra.gmra.mxu0 %vm196_vm2, %v1567_v14  ;;  %v1957_v14 = vld [vmem:[%s10579_s0 + $0x8] sm:$0xff] }
 0xfcf   :  { %8476 = vmatpush3.xpose.msk.msra.mxu0 %vm196_vm2, %v1692_v13  ;;  %8477 = vmatprep.mubr.msk.f32.mxu0 %vm9199_vm0, %v9198_v0  ;;  %v1956_v13 = vld [vmem:[%s10579_s0] sm:$0xff] }
 0xfd0   :  { %8480 = vmatprep.subr.mxu0 %v9198_v0 }
 0xfd2   :  { %8478 = vmatmul.mubr.msk.f32.vlgmr.msra.gmra.mxu0 %vm196_vm2, %v1690_v16  ;;  %v1962_v16 = vpack.c.bf16 %v1957_v14, %v1956_v13  ;;  %v2072_v14 = vld [vmem:[#allocation4] sm:$0xff] }
 0xfd3   :  { %8482 = vmatprep.mubr.msk.f32.mxu0 %vm9199_vm0, %v9198_v0 }
0x108e   :  { %v1640_v17 = vpop.f32.mrf.mxu0 }
0x108f   :  { %v1644_v18 = vpack.c.bf16 %v1640_v17, %v1640_v17 }
0x1090   :  { %v8468_v19 = vpop.f32.mrf.mxu0 }
0x1091   :  { %8472 = vmatmul.mubr.msk.bf16.vlgmr.msra.gmra.mxu1 %vm196_vm2, %v1644_v18 }
0x1092   :  { %v1763_v21 = vpop.f32.mrf.mxu0  ;;  %8486 = vmatpush3.bf16.msra.mxu1 %v9506_v12  ;;  %8487 = vmatprep.mubr.msk.bf16.mxu1 %vm9199_vm0, %v9198_v0  ;;  %v7964_v12 = vld [vmem:[%s10577_s30] ss:$0 sm:$0xff] }
0x1093   :  { %v1767_v22 = vmul.f32 0.35355338, %v1763_v21  ;;  %8499 = vmatprep.subr.bf16.mxu1 %v9198_v0  ;;  %v1907_v30 = vadd.f32 %v7964_v12, %v9533_v20 }
0x1094   :  { %v8479_v24 = vpop.f32.mrf.mxu0 }
0x1095   :  { %v1768_v52 = vadd.f32 %v1767_v22, %v9401_v23  ;;  %v1909_v33 = vadd.f32 %v1907_v30, %v9366_v7 }
0x1097   :  { %v1769_v25 = vsel %vm196_vm2, %v1768_v52, -inf }
0x1098   :  { %1770 = vmax.xlane.f32.xlu0 %v1769_v25 }
0x10ae   :  { %1780 = vrot.lane.b32.xlu0 %v9389_v15, %s10539_s8  ;;  %v1913_v15 = vsel %vm143_vm1, %v1909_v33, 0.0  ;;  %s10578_s8 = sld [smem:[#allocation10_spill]] }
0x10b4   :  { %v127_v4 = vld [vmem:[%s10578_s8] sm:$0xff]  ;;  %v128_v5 = vld [vmem:[%s10578_s8 + $0x8] sm:$0xff]  ;;  %s10590_s8 = smov 48  }
0x10b5   :  { %v9624_v6 = vpack.c.bf16 %v128_v5, %v127_v4 }
0x1121   :  { %v1771_v26 = vpop.xlane.xlu0 %1770 }
0x1122   :  { %v1772_v27 = vsub.f32 %v1768_v52, %v1771_v26  ;;  %v7965_v26 = vld [vmem:[%s10522_s16] ss:$0 sm:$0xff] }
0x1124   :  { %v1773_v28 = vmul.f32 1.442695, %v1772_v27 }
0x1125   :  { %v1781_v29 = vpop.permute.xlu0 %1780 }
0x1126   :  { %9001 = vpow2.f32 %v1773_v28  ;;  %8481 = vmatpush3.msra.mxu0 %v1781_v29 }
0x1127   :  { %8491 = vmatprep.subr.bf16.mxu0 %v9198_v0 }
0x1133   :  { %v9002_v31 = vpop.eup %9001 }
0x1134   :  { %v1775_v32 = vsel %vm196_vm2, %v9002_v31, 0.0 }
0x1135   :  { %1776 = vadd.xlane.f32.xlu1 %v1775_v32 }
0x1139   :  { %1914 = vadd.xlane.f32.xlu1 %v1913_v15  ;;  %v7969_v15 = vld [vmem:[%s10515_s9] ss:$0 sm:$0xff] }
0x1151   :  { %v1682_v35 = vpop.f32.mrf.mxu1 }
0x1152   :  { %v1688_v36 = vadd.f32 %v1682_v35, %v9569_v56 }
0x1153   :  { %v8473_v37 = vpop.f32.mrf.mxu1 }
0x1155   :  { %v1685_v38 = vpop.f32.mrf.mxu1 }
0x1157   :  { %v8474_v39 = vpop.f32.mrf.mxu1 }
0x11be   :  { %v1777_v40 = vpop.xlane.xlu1 %1776 }
0x11bf   :  { %9003 = vrcp.f32 %v1777_v40 }
0x11c2   :  { %v1915_v44 = vpop.xlane.xlu1 %1914 }
0x11c3   :  { %v1920_v45 = vmul.f32 0.03125, %v1915_v44 }
0x11c5   :  { %v1922_v49 = vsub.f32 %v1909_v33, %v1920_v45 }
0x11c7   :  { %v1924_v55 = vmul.f32 %v1922_v49, %v1922_v49 }
0x11c9   :  { %v1926_v56 = vsel %vm143_vm1, %v1924_v55, 0.0 }
0x11cc   :  { %v9004_v41 = vpop.eup %9003 }
0x11cd   :  { %v1779_v42 = vmul.f32 %v9004_v41, %v9002_v31  ;;  %v7967_v41 = vld [vmem:[%s10580_s1] ss:$0 sm:$0xff] }
0x11cf   :  { %8483 = vmatmul.mubr.msk.f32.vlgmr.msra.gmra.mxu0 %vm196_vm2, %v1779_v42 }
0x11d0   :  { %8495 = vmatprep.mubr.msk.bf16.mxu0 %vm9199_vm0, %v9198_v0  ;;  %8492 = vmatpush3.bf16.msra.mxu0 %v1963_v11 }
0x11d1   :  { %8493 = vmatprep.subr.bf16.mxu0 %v9198_v0 }
0x11d4   :  { %8494 = vmatpush3.bf16.msra.mxu0 %v1962_v16  ;;  %v2242_v16 = vpack.c.bf16 %v2072_v14, %v2072_v14 }
0x11d5   :  { %8507 = vmatprep.subr.mxu0 %v9198_v0 }
0x128f   :  { %v1852_v7 = vpop.f32.mrf.mxu0 }
0x1290   :  { %v1856_v20 = vpack.c.bf16 %v1852_v7, %v1852_v7 }
0x1291   :  { %v8484_v43 = vpop.f32.mrf.mxu0 }
0x1292   :  { %8488 = vmatmul.mubr.msk.bf16.vlgmr.msra.gmra.mxu1 %vm196_vm2, %v1856_v20 }
0x1293   :  { %8503 = vmatprep.mubr.msk.bf16.mxu1 %vm9199_vm0, %v9198_v0  ;;  %8500 = vmatpush3.bf16.msra.mxu1 %v2021_v1 }
0x1294   :  { %8501 = vmatprep.subr.bf16.mxu1 %v9198_v0 }
0x1352   :  { %v1894_v46 = vpop.f32.mrf.mxu1 }
0x1353   :  { %v1900_v47 = vadd.f32 %v1894_v46, %v1688_v36 }
0x1354   :  { %v8489_v48 = vpop.f32.mrf.mxu1 }
0x1355   :  { %v1908_v59 = vadd.f32 %v7964_v12, %v1900_v47  ;;  %v7966_v12 = vld [vmem:[%s10523_s17] ss:$0 sm:$0xff] }
0x1356   :  { %v1897_v50 = vpop.f32.mrf.mxu1 }
0x1357   :  { %v1910_v51 = vadd.f32 %v1908_v59, %v9371_v8  ;;  %v2014_v8 = vld [vmem:[#allocation2] sm:$0xff] }
0x1358   :  { %v8490_v53 = vpop.f32.mrf.mxu1  ;;  %v2020_v3 = vpack.c.bf16 %v2015_v2, %v2014_v8 }
0x1359   :  { %v1916_v54 = vsel %vm143_vm1, %v1910_v51, 0.0 }
0x135a   :  { %1917 = vadd.xlane.f32.xlu1 %v1916_v54  ;;  %8502 = vmatpush3.bf16.msra.mxu1 %v2020_v3 }
0x135b   :  { %8512 = vmatprep.subr.mxu1 %v9198_v0 }
0x135d   :  { %8504 = vmatmul.mubr.msk.bf16.vlgmr.msra.gmra.mxu1 %vm143_vm1, %v9624_v6 }
0x135e   :  { %1927 = vadd.xlane.f32.xlu1 %v1926_v56  ;;  %8514 = vmatprep.mubr.msk.f32.mxu1 %vm9199_vm0, %v9198_v0 }
0x13e3   :  { %v1918_v57 = vpop.xlane.xlu1 %1917 }
0x13e4   :  { %v1921_v58 = vmul.f32 0.03125, %v1918_v57 }
0x13e6   :  { %v1923_v60 = vsub.f32 %v1910_v51, %v1921_v58 }
0x13e7   :  { %v1928_v17 = vpop.xlane.xlu1 %1927 }
0x13e8   :  { %v1925_v61 = vmul.f32 %v1923_v60, %v1923_v60  ;;  %v1932_v18 = vmul.f32 0.03125, %v1928_v17  ;;  %v9711_v17 = vsel %vm534_vm4, %v2242_v16, 0 }
0x13ea   :  { %v1929_v62 = vsel %vm143_vm1, %v1925_v61, 0.0  ;;  %v1934_v19 = vadd.f32 1e-05, %v1932_v18  ;;  %v2073_v18 = vld [vmem:[#allocation4 + $0x8] sm:$0xff] }
0x13eb   :  { %1930 = vadd.xlane.f32.xlu1 %v1929_v62 }
0x13ec   :  { %9005 = vrsqrt.f32 %v1934_v19  ;;  %v2410_v19 = vpack.c.bf16 %v2073_v18, %v2073_v18 }
0x13f9   :  { %v9006_v52 = vpop.eup %9005 }
0x13fa   :  { %v1938_v25 = vmul.f32 %v9006_v52, %v1922_v49 }
0x13fc   :  { %v1946_v29 = vmul.f32 %v7965_v26, %v1938_v25 }
0x13fe   :  { %v9651_v31 = vadd.f32 %v7966_v12, %v1946_v29 }
0x141d   :  { %v2065_v35 = vpop.f32.mrf.mxu1 }
0x141e   :  { %v9663_v36 = vadd.f32 %v7969_v15, %v2065_v35 }
0x141f   :  { %v8505_v37 = vpop.f32.mrf.mxu1 }
0x1420   :  { %2245 = vrot.lane.b32.xlu0 %v9663_v36, %s10559_s2 }
0x1421   :  { %v2068_v38 = vpop.f32.mrf.mxu1 }
0x1422   :  { %v9670_v39 = vadd.f32 %v7969_v15, %v2068_v38 }
0x1423   :  { %v8506_v40 = vpop.f32.mrf.mxu1 }
0x1474   :  { %v1931_v21 = vpop.xlane.xlu1 %1930 }
0x1475   :  { %v1933_v22 = vmul.f32 0.03125, %v1931_v21  ;;  %v9716_v21 = vsel %vm534_vm4, %v2410_v19, 0 }
0x1477   :  { %v1935_v24 = vadd.f32 1e-05, %v1933_v22 }
0x1479   :  { %9007 = vrsqrt.f32 %v1935_v24 }
0x1486   :  { %v9008_v27 = vpop.eup %9007 }
0x1487   :  { %v1939_v28 = vmul.f32 %v9008_v27, %v1923_v60 }
0x1489   :  { %v1947_v30 = vmul.f32 %v7965_v26, %v1939_v28 }
0x148b   :  { %v9653_v32 = vadd.f32 %v7966_v12, %v1947_v30 }
0x148d   :  { %v1961_v33 = vpack.c.bf16 %v9653_v32, %v9651_v31 }
0x148f   :  { %8496 = vmatmul.mubr.msk.bf16.vlgmr.msra.gmra.mxu0 %vm143_vm1, %v1961_v33 }
0x1490   :  { %8509 = vmatprep.mubr.msk.f32.mxu0 %vm9199_vm0, %v9198_v0  ;;  %8508 = vmatpush3.xpose.msk.msra.mxu0 %vm196_vm2, %v9663_v36 }
0x1491   :  { %8517 = vmatprep.subr.mxu0 %v9198_v0 }
0x1492   :  { %v2246_v20 = vpop.permute.xlu0 %2245 }
0x154f   :  { %v2007_v42 = vpop.f32.mrf.mxu0 }
0x1550   :  { %v9675_v7 = vadd.f32 %v7967_v41, %v2007_v42 }
0x1551   :  { %v8497_v43 = vpop.f32.mrf.mxu0 }
0x1552   :  { %2243 = vrot.lane.b32.xlu1 %v9675_v7, %s10559_s2  ;;  %8510 = vmatmul.mubr.msk.f32.vlgmr.msra.gmra.mxu0 %vm196_vm2, %v9675_v7 }
0x1553   :  { %v2010_v44 = vpop.f32.mrf.mxu0  ;;  %8518 = vmatpush3.xpose.msk.msra.mxu0 %vm196_vm2, %v2246_v20  ;;  %8519 = vmatprep.mubr.msk.f32.mxu0 %vm9199_vm0, %v9198_v0 }
0x1554   :  { %v9684_v45 = vadd.f32 %v7967_v41, %v2010_v44  ;;  %8527 = vmatprep.subr.bf16.mxu0 %v9198_v0 }
0x1555   :  { %v8498_v46 = vpop.f32.mrf.mxu0 }
0x15c4   :  { %v2244_v47 = vpop.permute.xlu1 %2243 }
0x15c5   :  { %8520 = vmatmul.mubr.msk.f32.vlgmr.msra.gmra.mxu0 %vm196_vm2, %v2244_v47 }
0x15c6   :  { %8529 = vmatprep.mubr.msk.bf16.mxu0 %vm9199_vm0, %v9198_v0  ;;  %8528 = vmatpush3.bf16.msra.mxu0 %v9716_v21 }
0x15c7   :  { %8539 = vmatprep.subr.mxu0 %v9198_v0 }
0x1612   :  { %v2149_v48 = vpop.f32.mrf.mxu0 }
0x1613   :  { %v2153_v49 = vmul.f32 0.35355338, %v2149_v48 }
0x1614   :  { %v8511_v59 = vpop.f32.mrf.mxu0 }
0x1615   :  { %v2154_v50 = vsel %vm196_vm2, %v2153_v49, -inf }
0x1616   :  { %2155 = vmax.xlane.f32.xlu0 %v2154_v50 }
0x1685   :  { %v2317_v51 = vpop.f32.mrf.mxu0 }
0x1686   :  { %v2321_v53 = vmul.f32 0.35355338, %v2317_v51 }
0x1687   :  { %v8521_v54 = vpop.f32.mrf.mxu0 }
0x1688   :  { %v2322_v55 = vsel %vm196_vm2, %v2321_v53, -inf }
0x1689   :  { %2323 = vmax.xlane.f32.xlu1 %v2322_v55 }
0x169a   :  { %2333 = vrot.lane.b32.xlu1 %v9663_v36, %s10555_s12 }
0x169f   :  { %v2156_v56 = vpop.xlane.xlu0 %2155 }
0x16a0   :  { %v2157_v57 = vsub.f32 %v2153_v49, %v2156_v56  ;;  %v2074_v56 = vld [vmem:[#allocation4 + $0x10] sm:$0xff] }
0x16a2   :  { %v2158_v58 = vmul.f32 1.442695, %v2157_v57  ;;  %v2670_v57 = vpack.c.bf16 %v2074_v56, %v2074_v56 }
0x16a4   :  { %9009 = vpow2.f32 %v2158_v58  ;;  %v9751_v58 = vsel %vm534_vm4, %v2670_v57, 0 }
0x16b1   :  { %v9010_v60 = vpop.eup %9009 }
0x16b2   :  { %v2160_v61 = vsel %vm196_vm2, %v9010_v60, 0.0 }
0x16b3   :  { %2161 = vadd.xlane.f32.xlu0 %v2160_v61 }
0x1712   :  { %v2324_v62 = vpop.xlane.xlu1 %2323 }
0x1713   :  { %v2325_v63 = vsub.f32 %v2321_v53, %v2324_v62 }
0x1715   :  { %v2326_v34 = vmul.f32 1.442695, %v2325_v63 }
0x1716   :  { %v2334_v10 = vpop.permute.xlu1 %2333 }
0x1717   :  { %9011 = vpow2.f32 %v2326_v34 }
0x1724   :  { %v9012_v1 = vpop.eup %9011 }
0x1725   :  { %v2328_v8 = vsel %vm196_vm2, %v9012_v1, 0.0 }
0x1726   :  { %2329 = vadd.xlane.f32.xlu0 %v2328_v8 }
0x173c   :  { %2165 = vrot.lane.b32.xlu0 %v9663_v36, %s10557_s28  ;;  %v2162_v2 = vpop.xlane.xlu0 %2161 }
0x173d   :  { %9013 = vrcp.f32 %v2162_v2 }
0x1740   :  { %2505 = vrot.lane.b32.xlu0 %v9663_v36, %s10581_s29 }
0x1744   :  { %2503 = vrot.lane.b32.xlu0 %v9675_v7, %s10581_s29 }
0x174a   :  { %v9014_v4 = vpop.eup %9013 }
0x174b   :  { %v2164_v9 = vmul.f32 %v9014_v4, %v9010_v60 }
0x17af   :  { %v2330_v3 = vpop.xlane.xlu0 %2329 }
0x17b0   :  { %9015 = vrcp.f32 %v2330_v3 }
0x17b3   :  { %v2166_v5 = vpop.permute.xlu0 %2165 }
0x17b4   :  { %8513 = vmatpush3.msra.mxu1 %v2166_v5 }
0x17b5   :  { %8515 = vmatmul.mubr.msk.f32.vlgmr.msra.gmra.mxu1 %vm196_vm2, %v2164_v9  ;;  %8522 = vmatprep.subr.mxu1 %v9198_v0 }
0x17b6   :  { %8523 = vmatpush3.msra.mxu1 %v2334_v10  ;;  %8524 = vmatprep.mubr.msk.f32.mxu1 %vm9199_vm0, %v9198_v0 }
0x17b7   :  { %8533 = vmatprep.subr.bf16.mxu1 %v9198_v0  ;;  %v2506_v28 = vpop.permute.xlu0 %2505 }
0x17bb   :  { %v2504_v29 = vpop.permute.xlu0 %2503 }
0x17bd   :  { %v9016_v11 = vpop.eup %9015 }
0x17be   :  { %v2332_v13 = vmul.f32 %v9016_v11, %v9012_v1 }
0x17c0   :  { %8525 = vmatmul.mubr.msk.f32.vlgmr.msra.gmra.mxu1 %vm196_vm2, %v2332_v13 }
0x17c1   :  { %8535 = vmatprep.mubr.msk.bf16.mxu1 %vm9199_vm0, %v9198_v0  ;;  %8534 = vmatpush3.bf16.msra.mxu1 %v9711_v17 }
0x17c2   :  { %8544 = vmatprep.subr.mxu1 %v9198_v0 }
0x1875   :  { %v2237_v22 = vpop.f32.mrf.mxu1 }
0x1876   :  { %v2241_v24 = vpack.c.bf16 %v2237_v22, %v2237_v22 }
0x1877   :  { %v8516_v52 = vpop.f32.mrf.mxu1 }
0x1878   :  { %8536 = vmatmul.mubr.msk.bf16.vlgmr.msra.gmra.mxu1 %vm196_vm2, %v2241_v24 }
0x1879   :  { %8546 = vmatprep.mubr.msk.f32.mxu1 %vm9199_vm0, %v9198_v0 }
0x1880   :  { %v2405_v25 = vpop.f32.mrf.mxu1 }
0x1881   :  { %v2409_v26 = vpack.c.bf16 %v2405_v25, %v2405_v25 }
0x1882   :  { %v8526_v27 = vpop.f32.mrf.mxu1 }
0x1883   :  { %8530 = vmatmul.mubr.msk.bf16.vlgmr.msra.gmra.mxu0 %vm196_vm2, %v2409_v26 }
0x1884   :  { %8540 = vmatpush3.xpose.msk.msra.mxu0 %vm196_vm2, %v2506_v28  ;;  %8541 = vmatprep.mubr.msk.f32.mxu0 %vm9199_vm0, %v9198_v0 }
0x1885   :  { %8549 = vmatprep.subr.bf16.mxu0 %v9198_v0 }
0x188b   :  { %8542 = vmatmul.mubr.msk.f32.vlgmr.msra.gmra.mxu0 %vm196_vm2, %v2504_v29 }
0x188c   :  { %8551 = vmatprep.mubr.msk.bf16.mxu0 %vm9199_vm0, %v9198_v0  ;;  %8550 = vmatpush3.bf16.msra.mxu0 %v9751_v58 }
0x188d   :  { %8565 = vmatprep.subr.bf16.mxu0 %v9198_v0 }
0x1938   :  { %v2497_v12 = vpop.f32.mrf.mxu1 }
0x193a   :  { %v8537_v30 = vpop.f32.mrf.mxu1 }
0x193c   :  { %v2500_v33 = vpop.f32.mrf.mxu1 }
0x193e   :  { %v8538_v15 = vpop.f32.mrf.mxu1 }
0x1943   :  { %v2451_v35 = vpop.f32.mrf.mxu0 }
0x1944   :  { %v9731_v37 = vadd.f32 %v2497_v12, %v2451_v35 }
0x1945   :  { %v8531_v38 = vpop.f32.mrf.mxu0 }
0x1947   :  { %v2454_v40 = vpop.f32.mrf.mxu0 }
0x1949   :  { %v8532_v41 = vpop.f32.mrf.mxu0 }
0x194b   :  { %v2577_v42 = vpop.f32.mrf.mxu0 }
0x194c   :  { %v2581_v20 = vmul.f32 0.35355338, %v2577_v42 }
0x194d   :  { %v8543_v43 = vpop.f32.mrf.mxu0 }
0x194e   :  { %v2582_v44 = vsel %vm196_vm2, %v2581_v20, -inf }
0x194f   :  { %2583 = vmax.xlane.f32.xlu1 %v2582_v44 }
0x1960   :  { %2720 = vrot.lane.b32.xlu1 %v9663_v36, %s10582_s7 }
0x1964   :  { %2718 = vrot.lane.b32.xlu1 %v9675_v7, %s10582_s7 }
0x19d8   :  { %v2584_v46 = vpop.xlane.xlu1 %2583 }
0x19d9   :  { %v2585_v47 = vsub.f32 %v2581_v20, %v2584_v46 }
0x19db   :  { %v2586_v48 = vmul.f32 1.442695, %v2585_v47 }
0x19dc   :  { %v2721_v54 = vpop.permute.xlu1 %2720 }
0x19dd   :  { %9017 = vpow2.f32 %v2586_v48 }
0x19e0   :  { %v2719_v55 = vpop.permute.xlu1 %2718 }
0x19ea   :  { %v9018_v49 = vpop.eup %9017 }
0x19eb   :  { %v2588_v59 = vsel %vm196_vm2, %v9018_v49, 0.0 }
0x19ec   :  { %2589 = vadd.xlane.f32.xlu0 %v2588_v59 }
0x1a02   :  { %2593 = vrot.lane.b32.xlu0 %v9663_v36, %s10583_s5 }
0x1a75   :  { %v2590_v50 = vpop.xlane.xlu0 %2589 }
0x1a76   :  { %9019 = vrcp.f32 %v2590_v50 }
0x1a79   :  { %v2594_v51 = vpop.permute.xlu0 %2593 }
0x1a7a   :  { %8545 = vmatpush3.msra.mxu1 %v2594_v51 }
0x1a7b   :  { %8555 = vmatprep.subr.mxu1 %v9198_v0 }
0x1a83   :  { %v9020_v53 = vpop.eup %9019 }
0x1a84   :  { %v2592_v7 = vmul.f32 %v9020_v53, %v9018_v49 }
0x1a86   :  { %8547 = vmatmul.mubr.msk.f32.vlgmr.msra.gmra.mxu1 %vm196_vm2, %v2592_v7 }
0x1a87   :  { %8556 = vmatpush3.xpose.msk.msra.mxu1 %vm196_vm2, %v2721_v54  ;;  %8557 = vmatprep.mubr.msk.f32.mxu1 %vm9199_vm0, %v9198_v0 }
0x1a88   :  { %8560 = vmatprep.subr.mxu1 %v9198_v0 }
0x1a8a   :  { %8558 = vmatmul.mubr.msk.f32.vlgmr.msra.gmra.mxu1 %vm196_vm2, %v2719_v55 }
0x1a8b   :  { %8562 = vmatprep.mubr.msk.f32.mxu1 %vm9199_vm0, %v9198_v0 }
0x1b46   :  { %v2665_v60 = vpop.f32.mrf.mxu1 }
0x1b47   :  { %v2669_v61 = vpack.c.bf16 %v2665_v60, %v2665_v60 }
0x1b48   :  { %v8548_v62 = vpop.f32.mrf.mxu1 }
0x1b49   :  { %8552 = vmatmul.mubr.msk.bf16.vlgmr.msra.gmra.mxu0 %vm196_vm2, %v2669_v61 }
0x1b4a   :  { %v2792_v63 = vpop.f32.mrf.mxu1  ;;  %8567 = vmatprep.mubr.msk.bf16.mxu0 %vm9199_vm0, %v9198_v0 }
0x1b4b   :  { %v2796_v34 = vmul.f32 0.35355338, %v2792_v63 }
0x1b4c   :  { %v8559_v1 = vpop.f32.mrf.mxu1 }
0x1b4d   :  { %v2797_v8 = vsel %vm196_vm2, %v2796_v34, -inf }
0x1b4e   :  { %2798 = vmax.xlane.f32.xlu0 %v2797_v8 }
0x1b64   :  { %2808 = vrot.lane.b32.xlu0 %v9663_v36, %s10584_s10  ;;  %v2075_v36 = vld [vmem:[#allocation4 + $0x18] sm:$0xff] }
0x1b65   :  { %v2885_v14 = vpack.c.bf16 %v2075_v36, %v2075_v36 }
0x1b67   :  { %v9769_v18 = vsel %vm534_vm4, %v2885_v14, 0 }
0x1b68   :  { %3098 = vrot.lane.b32.xlu0 %v9684_v45, %s10559_s2  ;;  %8566 = vmatpush3.bf16.msra.mxu0 %v9769_v18 }
0x1b69   :  { %8581 = vmatprep.subr.mxu0 %v9198_v0 }
0x1bd7   :  { %v2799_v2 = vpop.xlane.xlu0 %2798 }
0x1bd8   :  { %v2800_v3 = vsub.f32 %v2796_v34, %v2799_v2 }
0x1bda   :  { %v2801_v4 = vmul.f32 1.442695, %v2800_v3 }
0x1bdb   :  { %v2809_v5 = vpop.permute.xlu0 %2808 }
0x1bdc   :  { %9021 = vpow2.f32 %v2801_v4  ;;  %8561 = vmatpush3.msra.mxu1 %v2809_v5 }
0x1bdd   :  { %8571 = vmatprep.subr.mxu1 %v9198_v0 }
0x1bdf   :  { %v3099_v35 = vpop.permute.xlu0 %3098 }
0x1be9   :  { %v9022_v9 = vpop.eup %9021 }
0x1bea   :  { %v2803_v10 = vsel %vm196_vm2, %v9022_v9, 0.0 }
0x1beb   :  { %2804 = vadd.xlane.f32.xlu1 %v2803_v10 }
0x1bfc   :  { %3100 = vrot.lane.b32.xlu1 %v9670_v39, %s10559_s2  ;;  %s10587_s2 = smov 88  }
0x1c09   :  { %v2711_v11 = vpop.f32.mrf.mxu0 }
0x1c0a   :  { %v2717_v13 = vadd.f32 %v2711_v11, %v9731_v37 }
0x1c0b   :  { %v8553_v16 = vpop.f32.mrf.mxu0 }
0x1c0d   :  { %v2714_v19 = vpop.f32.mrf.mxu0 }
0x1c0f   :  { %v8554_v22 = vpop.f32.mrf.mxu0 }
0x1c74   :  { %v2805_v24 = vpop.xlane.xlu1 %2804 }
0x1c75   :  { %9023 = vrcp.f32 %v2805_v24 }
0x1c78   :  { %v3101_v29 = vpop.permute.xlu1 %3100 }
0x1c82   :  { %v9024_v52 = vpop.eup %9023 }
0x1c83   :  { %v2807_v25 = vmul.f32 %v9024_v52, %v9022_v9 }
0x1c85   :  { %8563 = vmatmul.mubr.msk.f32.vlgmr.msra.gmra.mxu1 %vm196_vm2, %v2807_v25 }
0x1c86   :  { %8572 = vmatpush3.xpose.msk.msra.mxu1 %vm196_vm2, %v9670_v39  ;;  %8573 = vmatprep.mubr.msk.f32.mxu1 %vm9199_vm0, %v9198_v0 }
0x1c87   :  { %8576 = vmatprep.subr.mxu1 %v9198_v0 }
0x1c89   :  { %8574 = vmatmul.mubr.msk.f32.vlgmr.msra.gmra.mxu1 %vm196_vm2, %v9684_v45 }
0x1c8a   :  { %8578 = vmatprep.mubr.msk.f32.mxu1 %vm9199_vm0, %v9198_v0 }
0x1d45   :  { %v2880_v26 = vpop.f32.mrf.mxu1 }
0x1d46   :  { %v2884_v27 = vpack.c.bf16 %v2880_v26, %v2880_v26 }
0x1d47   :  { %v8564_v28 = vpop.f32.mrf.mxu1 }
0x1d48   :  { %8568 = vmatmul.mubr.msk.bf16.vlgmr.msra.gmra.mxu0 %vm196_vm2, %v2884_v27 }
0x1d49   :  { %8582 = vmatpush3.xpose.msk.msra.mxu0 %vm196_vm2, %v3101_v29  ;;  %v3005_v12 = vpop.f32.mrf.mxu1  ;;  %8583 = vmatprep.mubr.msk.f32.mxu0 %vm9199_vm0, %v9198_v0 }
0x1d4a   :  { %v3009_v30 = vmul.f32 0.35355338, %v3005_v12  ;;  %8591 = vmatprep.subr.bf16.mxu0 %v9198_v0 }
0x1d4b   :  { %v8575_v33 = vpop.f32.mrf.mxu1 }
0x1d4c   :  { %v3010_v15 = vsel %vm196_vm2, %v3009_v30, -inf }
0x1d4d   :  { %3011 = vmax.xlane.f32.xlu1 %v3010_v15 }
0x1d50   :  { %8584 = vmatmul.mubr.msk.f32.vlgmr.msra.gmra.mxu0 %vm196_vm2, %v3099_v35 }
0x1d51   :  { %8592 = vmatpush3.bf16.msra.mxu0 %v9716_v21  ;;  %8593 = vmatprep.mubr.msk.bf16.mxu0 %vm9199_vm0, %v9198_v0 }
0x1d52   :  { %8603 = vmatprep.subr.mxu0 %v9198_v0 }
0x1dd6   :  { %v3012_v37 = vpop.xlane.xlu1 %3011 }
0x1dd7   :  { %v3013_v38 = vsub.f32 %v3009_v30, %v3012_v37 }
0x1dd9   :  { %v3014_v40 = vmul.f32 1.442695, %v3013_v38 }
0x1ddb   :  { %9025 = vpow2.f32 %v3014_v40 }
0x1de8   :  { %v9026_v49 = vpop.eup %9025 }
0x1de9   :  { %v3016_v59 = vsel %vm196_vm2, %v9026_v49, 0.0 }
0x1e08   :  { %v2926_v41 = vpop.f32.mrf.mxu0 }
0x1e09   :  { %v9794_v42 = vadd.f32 %v2926_v41, %v2717_v13 }
0x1e0a   :  { %v8569_v20 = vpop.f32.mrf.mxu0 }
0x1e0c   :  { %v2929_v43 = vpop.f32.mrf.mxu0 }
0x1e0e   :  { %v8570_v44 = vpop.f32.mrf.mxu0 }
0x1e10   :  { %v3172_v46 = vpop.f32.mrf.mxu0 }
0x1e11   :  { %v3176_v47 = vmul.f32 0.35355338, %v3172_v46 }
0x1e12   :  { %v8585_v48 = vpop.f32.mrf.mxu0 }
0x1e13   :  { %v3177_v21 = vsel %vm196_vm2, %v3176_v47, -inf }
0x1e14   :  { %3178 = vmax.xlane.f32.xlu0 %v3177_v21 }
0x1e18   :  { %3017 = vadd.xlane.f32.xlu0 %v3016_v59  ;;  %v8003_v59 = vld [vmem:[%s10517_s11] ss:$0 sm:$0xff] }
0x1e2e   :  { %3021 = vrot.lane.b32.xlu0 %v9670_v39, %s10557_s28  ;;  %s10589_s28 = smov 64  }
0x1e32   :  { %3351 = vrot.lane.b32.xlu0 %v9684_v45, %s10581_s29 }
0x1e9d   :  { %v3179_v50 = vpop.xlane.xlu0 %3178 }
0x1e9e   :  { %v3180_v51 = vsub.f32 %v3176_v47, %v3179_v50  ;;  %v3779_v50 = vadd.f32 %v8003_v59, %v9794_v42 }
0x1ea0   :  { %v3181_v53 = vmul.f32 1.442695, %v3180_v51 }
0x1ea1   :  { %v3018_v54 = vpop.xlane.xlu0 %3017 }
0x1ea2   :  { %9027 = vpow2.f32 %v3181_v53 }
0x1ea3   :  { %9029 = vrcp.f32 %v3018_v54  ;;  %v3781_v54 = vadd.f32 %v3779_v50, %v9651_v31  ;;  %v3891_v50 = vld [vmem:[%s10520_s14 + $0x20] sm:$0xff] }
0x1ea5   :  { %v3022_v7 = vpop.permute.xlu0 %3021 }
0x1ea6   :  { %8577 = vmatpush3.msra.mxu1 %v3022_v7 }
0x1ea7   :  { %8586 = vmatprep.subr.mxu1 %v9198_v0 }
0x1eaf   :  { %v9028_v55 = vpop.eup %9027 }
0x1eb0   :  { %v9030_v56 = vpop.eup %9029  ;;  %v3183_v57 = vsel %vm196_vm2, %v9028_v55, 0.0 }
0x1eb1   :  { %3184 = vadd.xlane.f32.xlu1 %v3183_v57  ;;  %v3020_v60 = vmul.f32 %v9030_v56, %v9026_v49 }
0x1eb3   :  { %8579 = vmatmul.mubr.msk.f32.vlgmr.msra.gmra.mxu1 %vm196_vm2, %v3020_v60 }
0x1eb4   :  { %8588 = vmatprep.mubr.msk.f32.mxu1 %vm9199_vm0, %v9198_v0 }
0x1ec2   :  { %3188 = vrot.lane.b32.xlu1 %v9670_v39, %s10555_s12 }
0x1ec6   :  { %3353 = vrot.lane.b32.xlu1 %v9670_v39, %s10581_s29 }
0x1f3a   :  { %v3185_v61 = vpop.xlane.xlu1 %3184 }
0x1f3b   :  { %9031 = vrcp.f32 %v3185_v61 }
0x1f3e   :  { %v3189_v62 = vpop.permute.xlu1 %3188 }
0x1f3f   :  { %8587 = vmatpush3.msra.mxu1 %v3189_v62 }
0x1f40   :  { %8597 = vmatprep.subr.bf16.mxu1 %v9198_v0 }
0x1f42   :  { %v3354_v9 = vpop.permute.xlu1 %3353 }
0x1f48   :  { %v9032_v63 = vpop.eup %9031 }
0x1f49   :  { %v3187_v34 = vmul.f32 %v9032_v63, %v9028_v55 }
0x1f4b   :  { %8589 = vmatmul.mubr.msk.f32.vlgmr.msra.gmra.mxu1 %vm196_vm2, %v3187_v34 }
0x1f4c   :  { %8598 = vmatpush3.bf16.msra.mxu1 %v9711_v17  ;;  %8599 = vmatprep.mubr.msk.bf16.mxu1 %vm9199_vm0, %v9198_v0  ;;  %v3352_v17 = vpop.permute.xlu0 %3351 }
0x1f4d   :  { %8608 = vmatprep.subr.mxu1 %v9198_v0 }
0x1f73   :  { %v3093_v1 = vpop.f32.mrf.mxu1 }
0x1f74   :  { %v3097_v8 = vpack.c.bf16 %v3093_v1, %v3093_v1 }
0x1f75   :  { %v8580_v2 = vpop.f32.mrf.mxu1 }
0x1f76   :  { %8600 = vmatmul.mubr.msk.bf16.vlgmr.msra.gmra.mxu1 %vm196_vm2, %v3097_v8 }
0x1f77   :  { %8610 = vmatprep.mubr.msk.f32.mxu1 %vm9199_vm0, %v9198_v0 }
0x200b   :  { %v3260_v3 = vpop.f32.mrf.mxu1 }
0x200c   :  { %v3264_v4 = vpack.c.bf16 %v3260_v3, %v3260_v3 }
0x200d   :  { %v8590_v5 = vpop.f32.mrf.mxu1 }
0x200e   :  { %8594 = vmatmul.mubr.msk.bf16.vlgmr.msra.gmra.mxu0 %vm196_vm2, %v3264_v4 }
0x200f   :  { %8604 = vmatpush3.xpose.msk.msra.mxu0 %vm196_vm2, %v3354_v9  ;;  %8605 = vmatprep.mubr.msk.f32.mxu0 %vm9199_vm0, %v9198_v0 }
0x2010   :  { %8613 = vmatprep.subr.bf16.mxu0 %v9198_v0 }
0x2016   :  { %8606 = vmatmul.mubr.msk.f32.vlgmr.msra.gmra.mxu0 %vm196_vm2, %v3352_v17 }
0x2017   :  { %8614 = vmatpush3.bf16.msra.mxu0 %v9751_v58  ;;  %8615 = vmatprep.mubr.msk.bf16.mxu0 %vm9199_vm0, %v9198_v0 }
0x2018   :  { %8643 = vmatprep.subr.bf16.mxu0 %v9198_v0 }
0x2036   :  { %v9830_v10 = vpop.f32.mrf.mxu1 }
0x2038   :  { %v8601_v11 = vpop.f32.mrf.mxu1 }
0x203a   :  { %v3348_v36 = vpop.f32.mrf.mxu1 }
0x203c   :  { %v8602_v13 = vpop.f32.mrf.mxu1 }
0x20ce   :  { %v3302_v14 = vpop.f32.mrf.mxu0 }
0x20cf   :  { %v3346_v7 = vadd.f32 %v9830_v10, %v3302_v14 }
0x20d0   :  { %v8595_v16 = vpop.f32.mrf.mxu0 }
0x20d2   :  { %v3305_v19 = vpop.f32.mrf.mxu0 }
0x20d4   :  { %v8596_v22 = vpop.f32.mrf.mxu0 }
0x20d6   :  { %v3425_v24 = vpop.f32.mrf.mxu0 }
0x20d7   :  { %v3429_v52 = vmul.f32 0.35355338, %v3425_v24 }
0x20d8   :  { %v8607_v25 = vpop.f32.mrf.mxu0 }
0x20d9   :  { %v3430_v26 = vsel %vm196_vm2, %v3429_v52, -inf  ;;  %v3829_v25 = vld [vmem:[#allocation6 + $0x10] sm:$0xff] }
0x20da   :  { %3431 = vmax.xlane.f32.xlu1 %v3430_v26  ;;  %v3830_v26 = vld [vmem:[#allocation6 + $0x18] sm:$0xff] }
0x20eb   :  { %3564 = vrot.lane.b32.xlu1 %v9670_v39, %s10582_s7 }
0x20ef   :  { %3562 = vrot.lane.b32.xlu1 %v9684_v45, %s10582_s7 }
0x2163   :  { %v3432_v58 = vpop.xlane.xlu1 %3431 }
0x2164   :  { %v3433_v27 = vsub.f32 %v3429_v52, %v3432_v58  ;;  %v3834_v58 = vpack.c.bf16 %v3830_v26, %v3829_v25 }
0x2166   :  { %v3434_v28 = vmul.f32 1.442695, %v3433_v27  ;;  %v3827_v27 = vld [vmem:[#allocation6] sm:$0xff] }
0x2167   :  { %v3565_v35 = vpop.permute.xlu1 %3564 }
0x2168   :  { %9033 = vpow2.f32 %v3434_v28 }
0x216b   :  { %v3563_v37 = vpop.permute.xlu1 %3562 }
0x2175   :  { %v9034_v29 = vpop.eup %9033 }
0x2176   :  { %v3436_v12 = vsel %vm196_vm2, %v9034_v29, 0.0 }
0x2177   :  { %3437 = vadd.xlane.f32.xlu0 %v3436_v12  ;;  %v3894_v12 = vld [vmem:[%s10520_s14 + $0x38] sm:$0xff] }
0x218d   :  { %3441 = vrot.lane.b32.xlu0 %v9670_v39, %s10583_s5 }
0x2200   :  { %v3438_v30 = vpop.xlane.xlu0 %3437 }
0x2201   :  { %9035 = vrcp.f32 %v3438_v30 }
0x2204   :  { %v3442_v33 = vpop.permute.xlu0 %3441 }
0x2205   :  { %8609 = vmatpush3.msra.mxu1 %v3442_v33 }
0x2206   :  { %8619 = vmatprep.subr.mxu1 %v9198_v0 }
0x220e   :  { %v9036_v15 = vpop.eup %9035 }
0x220f   :  { %v3440_v45 = vmul.f32 %v9036_v15, %v9034_v29  ;;  %v3893_v29 = vld [vmem:[%s10520_s14 + $0x30] sm:$0xff] }
0x2210   :  { %v3900_v30 = vpack.c.bf16 %v3894_v12, %v3893_v29  ;;  %v8015_v29 = vld [vmem:[%s10573_s6 + $0x38] sm:$0xff] }
0x2211   :  { %8611 = vmatmul.mubr.msk.f32.vlgmr.msra.gmra.mxu1 %vm196_vm2, %v3440_v45 }
0x2212   :  { %8620 = vmatpush3.xpose.msk.msra.mxu1 %vm196_vm2, %v3565_v35  ;;  %8621 = vmatprep.mubr.msk.f32.mxu1 %vm9199_vm0, %v9198_v0 }
0x2213   :  { %8624 = vmatprep.subr.mxu1 %v9198_v0 }
0x2215   :  { %8622 = vmatmul.mubr.msk.f32.vlgmr.msra.gmra.mxu1 %vm196_vm2, %v3563_v37 }
0x2216   :  { %8626 = vmatprep.mubr.msk.f32.mxu1 %vm9199_vm0, %v9198_v0 }
0x22d1   :  { %v3513_v38 = vpop.f32.mrf.mxu1 }
0x22d2   :  { %v3517_v40 = vpack.c.bf16 %v3513_v38, %v3513_v38 }
0x22d3   :  { %v8612_v41 = vpop.f32.mrf.mxu1 }
0x22d4   :  { %8616 = vmatmul.mubr.msk.bf16.vlgmr.msra.gmra.mxu0 %vm196_vm2, %v3517_v40 }
0x22d5   :  { %v3636_v20 = vpop.f32.mrf.mxu1  ;;  %8651 = vmatprep.mubr.msk.bf16.mxu0 %vm9199_vm0, %v9198_v0  ;;  %8644 = vmatpush3.bf16.msra.mxu0 %v3900_v30  ;;  %v8012_v30 = vld [vmem:[%s10573_s6 + $0x20] sm:$0xff] }
0x22d6   :  { %v3640_v43 = vmul.f32 0.35355338, %v3636_v20  ;;  %8645 = vmatprep.subr.bf16.mxu0 %v9198_v0  ;;  %v8004_v20 = vld [vmem:[%s10524_s18] ss:$0 sm:$0xff] }
0x22d7   :  { %v8623_v44 = vpop.f32.mrf.mxu1 }
0x22d8   :  { %v3641_v46 = vsel %vm196_vm2, %v3640_v43, -inf }
0x22d9   :  { %3642 = vmax.xlane.f32.xlu0 %v3641_v46 }
0x22ef   :  { %3652 = vrot.lane.b32.xlu0 %v9670_v39, %s10584_s10  ;;  %v3785_v39 = vsel %vm143_vm1, %v3781_v54, 0.0 }
0x2362   :  { %v3643_v47 = vpop.xlane.xlu0 %3642 }
0x2363   :  { %v3644_v48 = vsub.f32 %v3640_v43, %v3643_v47  ;;  %v8005_v47 = vld [vmem:[%s10525_s19] ss:$0 sm:$0xff] }
0x2365   :  { %v3645_v21 = vmul.f32 1.442695, %v3644_v48 }
0x2366   :  { %v3653_v49 = vpop.permute.xlu0 %3652 }
0x2367   :  { %9037 = vpow2.f32 %v3645_v21  ;;  %8625 = vmatpush3.msra.mxu1 %v3653_v49 }
0x2368   :  { %8629 = vmatprep.subr.bf16.mxu1 %v9198_v0 }
0x2374   :  { %v9038_v51 = vpop.eup %9037 }
0x2375   :  { %v3647_v53 = vsel %vm196_vm2, %v9038_v51, 0.0 }
0x2376   :  { %3648 = vadd.xlane.f32.xlu1 %v3647_v53 }
0x237a   :  { %3786 = vadd.xlane.f32.xlu1 %v3785_v39  ;;  %v3890_v39 = vld [vmem:[%s10520_s14 + $0x18] sm:$0xff] }
0x2394   :  { %v3555_v55 = vpop.f32.mrf.mxu0 }
0x2395   :  { %v3561_v56 = vadd.f32 %v3555_v55, %v3346_v7  ;;  %v3887_v55 = vld [vmem:[%s10520_s14] sm:$0xff] }
0x2396   :  { %v8617_v57 = vpop.f32.mrf.mxu0 }
0x2398   :  { %v3558_v60 = vpop.f32.mrf.mxu0 }
0x2399   :  { %v8006_v60 = vld [vmem:[%s10519_s13] ss:$0 sm:$0xff] }
0x239a   :  { %v8618_v61 = vpop.f32.mrf.mxu0 }
0x23ff   :  { %v3649_v62 = vpop.xlane.xlu1 %3648 }
0x2400   :  { %9039 = vrcp.f32 %v3649_v62 }
0x2403   :  { %v3787_v8 = vpop.xlane.xlu1 %3786 }
0x2404   :  { %v3791_v2 = vmul.f32 0.03125, %v3787_v8 }
0x2406   :  { %v3793_v9 = vsub.f32 %v3781_v54, %v3791_v2  ;;  %v3889_v54 = vld [vmem:[%s10520_s14 + $0x10] sm:$0xff] }
0x2407   :  { %v3898_v7 = vpack.c.bf16 %v3890_v39, %v3889_v54 }
0x2408   :  { %v3795_v13 = vmul.f32 %v3793_v9, %v3793_v9 }
0x240a   :  { %v3797_v14 = vsel %vm143_vm1, %v3795_v13, 0.0 }
0x240d   :  { %v9040_v63 = vpop.eup %9039 }
0x240e   :  { %v3651_v42 = vmul.f32 %v9040_v63, %v9038_v51  ;;  %v3892_v51 = vld [vmem:[%s10520_s14 + $0x28] sm:$0xff] }
0x240f   :  { %v3899_v53 = vpack.c.bf16 %v3892_v51, %v3891_v50 }
0x2410   :  { %8627 = vmatmul.mubr.msk.f32.vlgmr.msra.gmra.mxu1 %vm196_vm2, %v3651_v42 }
0x2411   :  { %8630 = vmatpush3.bf16.msra.mxu1 %v9769_v18  ;;  %8631 = vmatprep.mubr.msk.bf16.mxu1 %vm9199_vm0, %v9198_v0 }
0x2412   :  { %8635 = vmatprep.subr.bf16.mxu1 %v9198_v0  ;;  %8646 = vmatpush3.bf16.msra.mxu0 %v3899_v53  ;;  %v8017_v53 = vld [vmem:[%s10575_s26 + $0x1] ss:$0 sm:$0xff]  ;;  %s10588_s26 = smov 56  }
0x2413   :  { %8647 = vmatprep.subr.bf16.mxu0 %v9198_v0 }
0x2416   :  { %8648 = vmatpush3.bf16.msra.mxu0 %v3898_v7 }
0x2417   :  { %8649 = vmatprep.subr.bf16.mxu0 %v9198_v0 }
0x24d0   :  { %v3724_v31 = vpop.f32.mrf.mxu1 }
0x24d1   :  { %v3728_v34 = vpack.c.bf16 %v3724_v31, %v3724_v31 }
0x24d2   :  { %v8628_v1 = vpop.f32.mrf.mxu1 }
0x24d3   :  { %8632 = vmatmul.mubr.msk.bf16.vlgmr.msra.gmra.mxu1 %vm196_vm2, %v3728_v34 }
0x24d4   :  { %8639 = vmatprep.mubr.msk.bf16.mxu1 %vm9199_vm0, %v9198_v0  ;;  %8636 = vmatpush3.bf16.msra.mxu1 %v3834_v58 }
0x24d5   :  { %8637 = vmatprep.subr.bf16.mxu1 %v9198_v0 }
0x2593   :  { %v3766_v3 = vpop.f32.mrf.mxu1 }
0x2594   :  { %v3772_v4 = vadd.f32 %v3766_v3, %v3561_v56  ;;  %v3888_v56 = vld [vmem:[%s10520_s14 + $0x8] sm:$0xff]  ;;  %v8008_v3 = vld [vmem:[%s10521_s15] ss:$0 sm:$0xff] }
0x2595   :  { %v8633_v5 = vpop.f32.mrf.mxu1  ;;  %v3897_v57 = vpack.c.bf16 %v3888_v56, %v3887_v55 }
0x2596   :  { %v3780_v18 = vadd.f32 %v8003_v59, %v3772_v4 }
0x2597   :  { %v3769_v17 = vpop.f32.mrf.mxu1  ;;  %8650 = vmatpush3.bf16.msra.mxu0 %v3897_v57 }
0x2598   :  { %v3782_v10 = vadd.f32 %v3780_v18, %v9653_v32  ;;  %v3828_v32 = vld [vmem:[#allocation6 + $0x8] sm:$0xff]  ;;  %8668 = vmatprep.subr.mxu0 %v9198_v0 }
0x2599   :  { %v8634_v11 = vpop.f32.mrf.mxu1  ;;  %v3833_v28 = vpack.c.bf16 %v3828_v32, %v3827_v27 }
0x259a   :  { %v3788_v36 = vsel %vm143_vm1, %v3782_v10, 0.0 }
0x259b   :  { %3789 = vadd.xlane.f32.xlu1 %v3788_v36  ;;  %8638 = vmatpush3.bf16.msra.mxu1 %v3833_v28  ;;  %v8014_v28 = vld [vmem:[%s10573_s6 + $0x30] sm:$0xff] }
0x259c   :  { %8655 = vmatprep.subr.bf16.mxu1 %v9198_v0  ;;  %v4007_v12 = vpack.c.bf16 %v8015_v29, %v8014_v28  ;;  %v8019_v28 = vld [vmem:[%s10576_s25 + $0x20] sm:$0xff] }
0x259d   :  { %v4232_v29 = vpack.c.bf16 %v8019_v28, %v8019_v28 }
0x259f   :  { %3798 = vadd.xlane.f32.xlu1 %v3797_v14 }
0x2624   :  { %v3790_v16 = vpop.xlane.xlu1 %3789 }
0x2625   :  { %v3792_v19 = vmul.f32 0.03125, %v3790_v16 }
0x2627   :  { %v3794_v22 = vsub.f32 %v3782_v10, %v3792_v19 }
0x2628   :  { %v3799_v33 = vpop.xlane.xlu1 %3798 }
0x2629   :  { %v3796_v24 = vmul.f32 %v3794_v22, %v3794_v22  ;;  %v3803_v15 = vmul.f32 0.03125, %v3799_v33  ;;  %v8013_v33 = vld [vmem:[%s10573_s6 + $0x28] sm:$0xff] }
0x262b   :  { %v3800_v52 = vsel %vm143_vm1, %v3796_v24, 0.0  ;;  %v3805_v35 = vadd.f32 1e-05, %v3803_v15  ;;  %v4006_v15 = vpack.c.bf16 %v8013_v33, %v8012_v30  ;;  %v8020_v30 = vld [vmem:[%s10576_s25 + $0x28] sm:$0xff] }
0x262c   :  { %3801 = vadd.xlane.f32.xlu1 %v3800_v52  ;;  %v4401_v33 = vpack.c.bf16 %v8020_v30, %v8020_v30 }
0x262d   :  { %9041 = vrsqrt.f32 %v3805_v35 }
0x263a   :  { %v9042_v40 = vpop.eup %9041 }
0x263b   :  { %v3809_v41 = vmul.f32 %v9042_v40, %v3793_v9 }
0x263d   :  { %v3817_v46 = vmul.f32 %v8004_v20, %v3809_v41 }
0x263f   :  { %v3825_v21 = vadd.f32 %v8005_v47, %v3817_v46 }
0x26b5   :  { %v3802_v45 = vpop.xlane.xlu1 %3801 }
0x26b6   :  { %v3804_v37 = vmul.f32 0.03125, %v3802_v45 }
0x26b8   :  { %v3806_v38 = vadd.f32 1e-05, %v3804_v37 }
0x26ba   :  { %9043 = vrsqrt.f32 %v3806_v38 }
0x26c7   :  { %v9044_v43 = vpop.eup %9043 }
0x26c8   :  { %v3810_v44 = vmul.f32 %v9044_v43, %v3794_v22 }
0x26ca   :  { %v3818_v48 = vmul.f32 %v8004_v20, %v3810_v44  ;;  %v8010_v44 = vld [vmem:[%s10526_s20] ss:$0 sm:$0xff] }
0x26cc   :  { %v3826_v49 = vadd.f32 %v8005_v47, %v3818_v48 }
0x26ce   :  { %v3832_v59 = vpack.c.bf16 %v3826_v49, %v3825_v21 }
0x26d0   :  { %8640 = vmatmul.mubr.msk.bf16.vlgmr.msra.gmra.mxu1 %vm143_vm1, %v3832_v59 }
0x26d1   :  { %8659 = vmatprep.mubr.msk.bf16.mxu1 %vm9199_vm0, %v9198_v0  ;;  %8656 = vmatpush3.bf16.msra.mxu1 %v4007_v12  ;;  %v10007_v12 = vsel %vm534_vm4, %v4232_v29, 0  ;;  %v8022_v29 = vld [vmem:[%s10576_s25 + $0x38] sm:$0xff] }
0x26d2   :  { %8657 = vmatprep.subr.bf16.mxu1 %v9198_v0  ;;  %v4878_v30 = vpack.c.bf16 %v8022_v29, %v8022_v29 }
0x26d5   :  { %8658 = vmatpush3.bf16.msra.mxu1 %v4006_v15  ;;  %v10015_v15 = vsel %vm534_vm4, %v4401_v33, 0 }
0x26d6   :  { %8663 = vmatprep.subr.mxu1 %v9198_v0 }
0x2790   :  { %v3878_v61 = vpop.f32.mrf.mxu1 }
0x2791   :  { %v3879_v63 = vadd.f32 %v8006_v60, %v3878_v61 }
0x2792   :  { %v8641_v62 = vpop.f32.mrf.mxu1 }
0x2793   :  { %v3885_v1 = vmax.f32 %v3879_v63, 0.0 }
0x2794   :  { %v3881_v42 = vpop.f32.mrf.mxu1 }
0x2795   :  { %v3882_v31 = vadd.f32 %v8006_v60, %v3881_v42 }
0x2796   :  { %v8642_v34 = vpop.f32.mrf.mxu1 }
0x2797   :  { %v3886_v8 = vmax.f32 %v3882_v31, 0.0 }
0x2799   :  { %v3896_v2 = vpack.c.bf16 %v3886_v8, %v3885_v1 }
0x279b   :  { %8652 = vmatmul.mubr.msk.bf16.vlgmr.msra.gmra.mxu0 %vm3907_vm5, %v3896_v2 }
0x279c   :  { %8670 = vmatprep.mubr.msk.f32.mxu0 %vm9199_vm0, %v9198_v0 }
0x285b   :  { %v3945_v4 = vpop.f32.mrf.mxu0 }
0x285c   :  { %v3946_v5 = vadd.f32 %v8008_v3, %v3945_v4 }
0x285d   :  { %v8653_v9 = vpop.f32.mrf.mxu0 }
0x285e   :  { %v3952_v18 = vadd.f32 %v3946_v5, %v3825_v21  ;;  %v8011_v21 = vld [vmem:[%s10527_s21] ss:$0 sm:$0xff] }
0x285f   :  { %v3948_v17 = vpop.f32.mrf.mxu0 }
0x2860   :  { %v3949_v10 = vadd.f32 %v8008_v3, %v3948_v17  ;;  %v3956_v11 = vsel %vm143_vm1, %v3952_v18, 0.0 }
0x2861   :  { %3957 = vadd.xlane.f32.xlu0 %v3956_v11  ;;  %v8654_v36 = vpop.f32.mrf.mxu0 }
0x2862   :  { %v3953_v13 = vadd.f32 %v3949_v10, %v3826_v49 }
0x2864   :  { %v3959_v14 = vsel %vm143_vm1, %v3953_v13, 0.0 }
0x2865   :  { %3960 = vadd.xlane.f32.xlu1 %v3959_v14 }
0x28ea   :  { %v3958_v16 = vpop.xlane.xlu0 %3957 }
0x28eb   :  { %v3962_v19 = vmul.f32 0.03125, %v3958_v16 }
0x28ed   :  { %v3964_v22 = vsub.f32 %v3952_v18, %v3962_v19 }
0x28ee   :  { %v3961_v24 = vpop.xlane.xlu1 %3960 }
0x28ef   :  { %v3963_v52 = vmul.f32 0.03125, %v3961_v24  ;;  %v3966_v25 = vmul.f32 %v3964_v22, %v3964_v22 }
0x28f1   :  { %v3965_v26 = vsub.f32 %v3953_v13, %v3963_v52  ;;  %v3968_v58 = vsel %vm143_vm1, %v3966_v25, 0.0 }
0x28f2   :  { %3969 = vadd.xlane.f32.xlu1 %v3968_v58 }
0x28f3   :  { %v3967_v27 = vmul.f32 %v3965_v26, %v3965_v26 }
0x28f5   :  { %v3971_v32 = vsel %vm143_vm1, %v3967_v27, 0.0 }
0x28f6   :  { %3972 = vadd.xlane.f32.xlu1 %v3971_v32 }
0x297b   :  { %v3970_v35 = vpop.xlane.xlu1 %3969 }
0x297c   :  { %v3974_v45 = vmul.f32 0.03125, %v3970_v35 }
0x297e   :  { %v3976_v37 = vadd.f32 1e-05, %v3974_v45 }
0x297f   :  { %v3973_v38 = vpop.xlane.xlu1 %3972 }
0x2980   :  { %9045 = vrsqrt.f32 %v3976_v37  ;;  %v3975_v40 = vmul.f32 0.03125, %v3973_v38 }
0x2982   :  { %v3977_v41 = vadd.f32 1e-05, %v3975_v40 }
0x2984   :  { %9047 = vrsqrt.f32 %v3977_v41 }
0x298d   :  { %v9046_v20 = vpop.eup %9045 }
0x298e   :  { %v3980_v43 = vmul.f32 %v9046_v20, %v3964_v22 }
0x2990   :  { %v3988_v48 = vmul.f32 %v8010_v44, %v3980_v43 }
0x2991   :  { %v9048_v46 = vpop.eup %9047 }
0x2992   :  { %v3981_v47 = vmul.f32 %v9048_v46, %v3965_v26  ;;  %v9948_v59 = vadd.f32 %v8011_v21, %v3988_v48 }
0x2994   :  { %v3989_v49 = vmul.f32 %v8010_v44, %v3981_v47 }
0x2996   :  { %v9950_v50 = vadd.f32 %v8011_v21, %v3989_v49 }
0x2998   :  { %v4005_v51 = vpack.c.bf16 %v9950_v50, %v9948_v59 }
0x299a   :  { %8660 = vmatmul.mubr.msk.bf16.vlgmr.msra.gmra.mxu1 %vm143_vm1, %v4005_v51 }
0x299b   :  { %8665 = vmatprep.mubr.msk.f32.mxu1 %vm9199_vm0, %v9198_v0 }
0x2a5a   :  { %v4051_v54 = vpop.f32.mrf.mxu1 }
0x2a5b   :  { %v9960_v39 = vadd.f32 %v8017_v53, %v4051_v54 }
0x2a5c   :  { %v8661_v7 = vpop.f32.mrf.mxu1 }
0x2a5d   :  { %4233 = vrot.lane.b32.xlu0 %v9960_v39, %s10585_s3  ;;  %4066 = vrot.lane.b32.xlu1 %v9960_v39, %s10586_s24 }
0x2a5e   :  { %v4054_v55 = vpop.f32.mrf.mxu1 }
0x2a5f   :  { %v9966_v56 = vadd.f32 %v8017_v53, %v4054_v55 }
0x2a60   :  { %v8662_v57 = vpop.f32.mrf.mxu1 }
0x2a61   :  { %4235 = vrot.lane.b32.xlu1 %v9960_v39, %s10587_s2 }
0x2acf   :  { %v4067_v60 = vpop.permute.xlu1 %4066  ;;  %v4234_v62 = vpop.permute.xlu0 %4233 }
0x2ad0   :  { %8664 = vmatpush3.xpose.msk.msra.mxu1 %vm196_vm2, %v4067_v60 }
0x2ad1   :  { %8673 = vmatprep.subr.mxu1 %v9198_v0 }
0x2ad3   :  { %8666 = vmatmul.mubr.msk.f32.vlgmr.msra.gmra.mxu1 %vm196_vm2, %v9960_v39  ;;  %v4236_v61 = vpop.permute.xlu1 %4235 }
0x2ad4   :  { %8674 = vmatpush3.xpose.msk.msra.mxu1 %vm196_vm2, %v4236_v61  ;;  %8675 = vmatprep.mubr.msk.f32.mxu1 %vm9199_vm0, %v9198_v0 }
0x2ad5   :  { %8683 = vmatprep.subr.bf16.mxu1 %v9198_v0 }
0x2ad7   :  { %8676 = vmatmul.mubr.msk.f32.vlgmr.msra.gmra.mxu1 %vm196_vm2, %v4234_v62 }
0x2ad8   :  { %8685 = vmatprep.mubr.msk.bf16.mxu1 %vm9199_vm0, %v9198_v0  ;;  %8684 = vmatpush3.bf16.msra.mxu1 %v10015_v15 }
0x2ad9   :  { %8695 = vmatprep.subr.mxu1 %v9198_v0 }
0x2b93   :  { %v4138_v63 = vpop.f32.mrf.mxu1 }
0x2b94   :  { %v4142_v42 = vmul.f32 0.35355338, %v4138_v63 }
0x2b95   :  { %v8667_v31 = vpop.f32.mrf.mxu1 }
0x2b96   :  { %v4143_v34 = vadd.f32 %v4142_v42, %v9401_v23 }
0x2b97   :  { %v4307_v1 = vpop.f32.mrf.mxu1 }
0x2b98   :  { %v4311_v8 = vmul.f32 0.35355338, %v4307_v1  ;;  %v4144_v2 = vsel %vm196_vm2, %v4143_v34, -inf }
0x2b99   :  { %4145 = vmax.xlane.f32.xlu1 %v4144_v2  ;;  %v8677_v3 = vpop.f32.mrf.mxu1 }
0x2b9a   :  { %v4312_v4 = vadd.f32 %v4311_v8, %v9401_v23 }
0x2b9c   :  { %v4313_v5 = vsel %vm196_vm2, %v4312_v4, -inf }
0x2b9d   :  { %4314 = vmax.xlane.f32.xlu0 %v4313_v5 }
0x2bb3   :  { %4324 = vrot.lane.b32.xlu0 %v9960_v39, %s10588_s26 }
0x2c22   :  { %v4146_v9 = vpop.xlane.xlu1 %4145 }
0x2c23   :  { %v4147_v18 = vsub.f32 %v4143_v34, %v4146_v9  ;;  %v8021_v9 = vld [vmem:[%s10576_s25 + $0x30] sm:$0xff] }
0x2c25   :  { %v4148_v17 = vmul.f32 1.442695, %v4147_v18  ;;  %v4662_v18 = vpack.c.bf16 %v8021_v9, %v8021_v9 }
0x2c26   :  { %v4315_v10 = vpop.xlane.xlu0 %4314 }
0x2c27   :  { %9049 = vpow2.f32 %v4148_v17  ;;  %v4316_v11 = vsub.f32 %v4312_v4, %v4315_v10  ;;  %v10054_v17 = vsel %vm534_vm4, %v4662_v18, 0 }
0x2c29   :  { %v4317_v36 = vmul.f32 1.442695, %v4316_v11 }
0x2c2a   :  { %v4325_v58 = vpop.permute.xlu0 %4324 }
0x2c2b   :  { %9051 = vpow2.f32 %v4317_v36 }
0x2c34   :  { %v9050_v13 = vpop.eup %9049 }
0x2c35   :  { %v4150_v14 = vsel %vm196_vm2, %v9050_v13, 0.0 }
0x2c36   :  { %4151 = vadd.xlane.f32.xlu1 %v4150_v14 }
0x2c38   :  { %v9052_v16 = vpop.eup %9051 }
0x2c39   :  { %v4319_v19 = vsel %vm196_vm2, %v9052_v16, 0.0 }
0x2c3a   :  { %4320 = vadd.xlane.f32.xlu1 %v4319_v19 }
0x2c4b   :  { %4155 = vrot.lane.b32.xlu1 %v9960_v39, %s10589_s28 }
0x2c4f   :  { %4496 = vrot.lane.b32.xlu1 %v9960_v39, %s10583_s5 }
0x2c53   :  { %4494 = vrot.lane.b32.xlu1 %v9960_v39, %s10581_s29 }
0x2cbf   :  { %v4152_v22 = vpop.xlane.xlu1 %4151 }
0x2cc0   :  { %9053 = vrcp.f32 %v4152_v22 }
0x2cc3   :  { %v4321_v24 = vpop.xlane.xlu1 %4320 }
0x2cc4   :  { %9055 = vrcp.f32 %v4321_v24 }
0x2cc7   :  { %v4156_v52 = vpop.permute.xlu1 %4155 }
0x2cc8   :  { %8669 = vmatpush3.msra.mxu0 %v4156_v52 }
0x2cc9   :  { %8678 = vmatprep.subr.mxu0 %v9198_v0 }
0x2ccb   :  { %v4497_v20 = vpop.permute.xlu1 %4496 }
0x2ccd   :  { %v9054_v25 = vpop.eup %9053 }
0x2cce   :  { %v4154_v26 = vmul.f32 %v9054_v25, %v9050_v13 }
0x2ccf   :  { %v4495_v43 = vpop.permute.xlu1 %4494 }
0x2cd0   :  { %8671 = vmatmul.mubr.msk.f32.vlgmr.msra.gmra.mxu0 %vm196_vm2, %v4154_v26 }
0x2cd1   :  { %v9056_v27 = vpop.eup %9055  ;;  %8679 = vmatpush3.msra.mxu0 %v4325_v58  ;;  %8680 = vmatprep.mubr.msk.f32.mxu0 %vm9199_vm0, %v9198_v0 }
0x2cd2   :  { %v4323_v32 = vmul.f32 %v9056_v27, %v9052_v16  ;;  %8689 = vmatprep.subr.bf16.mxu0 %v9198_v0 }
0x2cd4   :  { %8681 = vmatmul.mubr.msk.f32.vlgmr.msra.gmra.mxu0 %vm196_vm2, %v4323_v32 }
0x2cd5   :  { %8691 = vmatprep.mubr.msk.bf16.mxu0 %vm9199_vm0, %v9198_v0  ;;  %8690 = vmatpush3.bf16.msra.mxu0 %v10007_v12 }
0x2cd6   :  { %8700 = vmatprep.subr.mxu0 %v9198_v0 }
0x2d90   :  { %v4227_v35 = vpop.f32.mrf.mxu0 }
0x2d91   :  { %v4231_v45 = vpack.c.bf16 %v4227_v35, %v4227_v35  ;;  %v10078_v35 = vsel %vm534_vm4, %v4878_v30, 0 }
0x2d92   :  { %v8672_v37 = vpop.f32.mrf.mxu0 }
0x2d93   :  { %8692 = vmatmul.mubr.msk.bf16.vlgmr.msra.gmra.mxu0 %vm196_vm2, %v4231_v45 }
0x2d94   :  { %v4396_v38 = vpop.f32.mrf.mxu0  ;;  %8702 = vmatprep.mubr.msk.f32.mxu0 %vm9199_vm0, %v9198_v0 }
0x2d95   :  { %v4400_v40 = vpack.c.bf16 %v4396_v38, %v4396_v38 }
0x2d96   :  { %v8682_v41 = vpop.f32.mrf.mxu0 }
0x2d97   :  { %8686 = vmatmul.mubr.msk.bf16.vlgmr.msra.gmra.mxu1 %vm196_vm2, %v4400_v40 }
0x2d98   :  { %8696 = vmatpush3.xpose.msk.msra.mxu1 %vm196_vm2, %v4497_v20  ;;  %8697 = vmatprep.mubr.msk.f32.mxu1 %vm9199_vm0, %v9198_v0 }
0x2d99   :  { %8705 = vmatprep.subr.bf16.mxu1 %v9198_v0 }
0x2d9f   :  { %8698 = vmatmul.mubr.msk.f32.vlgmr.msra.gmra.mxu1 %vm196_vm2, %v4495_v43 }
0x2da0   :  { %8707 = vmatprep.mubr.msk.bf16.mxu1 %vm9199_vm0, %v9198_v0  ;;  %8706 = vmatpush3.bf16.msra.mxu1 %v10054_v17 }
0x2da1   :  { %8721 = vmatprep.subr.bf16.mxu1 %v9198_v0 }
0x2e53   :  { %v4488_v44 = vpop.f32.mrf.mxu0 }
0x2e55   :  { %v8693_v46 = vpop.f32.mrf.mxu0 }
0x2e57   :  { %v4442_v47 = vpop.f32.mrf.mxu1  ;;  %v4491_v48 = vpop.f32.mrf.mxu0 }
0x2e58   :  { %v10030_v21 = vadd.f32 %v4488_v44, %v4442_v47 }
0x2e59   :  { %v8687_v49 = vpop.f32.mrf.mxu1  ;;  %v8694_v51 = vpop.f32.mrf.mxu0 }
0x2e5b   :  { %v4445_v53 = vpop.f32.mrf.mxu1 }
0x2e5d   :  { %v8688_v54 = vpop.f32.mrf.mxu1 }
0x2e5f   :  { %v4568_v7 = vpop.f32.mrf.mxu1 }
0x2e60   :  { %v4572_v55 = vmul.f32 0.35355338, %v4568_v7 }
0x2e61   :  { %v8699_v57 = vpop.f32.mrf.mxu1 }
0x2e62   :  { %v4573_v60 = vadd.f32 %v4572_v55, %v9401_v23 }
0x2e64   :  { %v4574_v61 = vsel %vm196_vm2, %v4573_v60, -inf }
0x2e65   :  { %4575 = vmax.xlane.f32.xlu1 %v4574_v61 }
0x2e76   :  { %4712 = vrot.lane.b32.xlu1 %v9960_v39, %s10584_s10 }
0x2e7a   :  { %4710 = vrot.lane.b32.xlu1 %v9960_v39, %s10582_s7 }
0x2eee   :  { %v4576_v62 = vpop.xlane.xlu1 %4575 }
0x2eef   :  { %v4577_v63 = vsub.f32 %v4573_v60, %v4576_v62 }
0x2ef1   :  { %v4578_v42 = vmul.f32 1.442695, %v4577_v63 }
0x2ef2   :  { %v4713_v3 = vpop.permute.xlu1 %4712 }
0x2ef3   :  { %9057 = vpow2.f32 %v4578_v42 }
0x2ef6   :  { %v4711_v5 = vpop.permute.xlu1 %4710 }
0x2f00   :  { %v9058_v31 = vpop.eup %9057 }
0x2f01   :  { %v4580_v34 = vsel %vm196_vm2, %v9058_v31, 0.0 }
0x2f02   :  { %4581 = vadd.xlane.f32.xlu0 %v4580_v34 }
0x2f18   :  { %4585 = vrot.lane.b32.xlu0 %v9960_v39, %s10590_s8 }
0x2f8b   :  { %v4582_v1 = vpop.xlane.xlu0 %4581 }
0x2f8c   :  { %9059 = vrcp.f32 %v4582_v1 }
0x2f8f   :  { %v4586_v8 = vpop.permute.xlu0 %4585 }
0x2f90   :  { %8701 = vmatpush3.msra.mxu0 %v4586_v8 }
0x2f91   :  { %8711 = vmatprep.subr.mxu0 %v9198_v0 }
0x2f99   :  { %v9060_v2 = vpop.eup %9059 }
0x2f9a   :  { %v4584_v4 = vmul.f32 %v9060_v2, %v9058_v31 }
0x2f9c   :  { %8703 = vmatmul.mubr.msk.f32.vlgmr.msra.gmra.mxu0 %vm196_vm2, %v4584_v4 }
0x2f9d   :  { %8712 = vmatpush3.xpose.msk.msra.mxu0 %vm196_vm2, %v4713_v3  ;;  %8713 = vmatprep.mubr.msk.f32.mxu0 %vm9199_vm0, %v9198_v0 }
0x2f9e   :  { %8716 = vmatprep.subr.mxu0 %v9198_v0 }
0x2fa0   :  { %8714 = vmatmul.mubr.msk.f32.vlgmr.msra.gmra.mxu0 %vm196_vm2, %v4711_v5 }
0x2fa1   :  { %8718 = vmatprep.mubr.msk.f32.mxu0 %vm9199_vm0, %v9198_v0 }
0x305c   :  { %v4657_v10 = vpop.f32.mrf.mxu0 }
0x305d   :  { %v4661_v11 = vpack.c.bf16 %v4657_v10, %v4657_v10 }
0x305e   :  { %v8704_v36 = vpop.f32.mrf.mxu0 }
0x305f   :  { %8708 = vmatmul.mubr.msk.bf16.vlgmr.msra.gmra.mxu1 %vm196_vm2, %v4661_v11 }
0x3060   :  { %v4784_v13 = vpop.f32.mrf.mxu0  ;;  %8723 = vmatprep.mubr.msk.bf16.mxu1 %vm9199_vm0, %v9198_v0  ;;  %8722 = vmatpush3.bf16.msra.mxu1 %v10078_v35 }
0x3061   :  { %v4788_v14 = vmul.f32 0.35355338, %v4784_v13  ;;  %8737 = vmatprep.subr.mxu1 %v9198_v0 }
0x3062   :  { %v8715_v16 = vpop.f32.mrf.mxu0 }
0x3063   :  { %v4789_v19 = vadd.f32 %v4788_v14, %v9401_v23 }
0x3065   :  { %v4790_v22 = vsel %vm196_vm2, %v4789_v19, -inf }
0x3066   :  { %4791 = vmax.xlane.f32.xlu0 %v4790_v22 }
0x307c   :  { %4801 = vrot.lane.b32.xlu0 %v9960_v39, %s10591_s4 }
0x3080   :  { %5095 = vrot.lane.b32.xlu0 %v9966_v56, %s10587_s2 }
0x30ef   :  { %v4792_v24 = vpop.xlane.xlu0 %4791 }
0x30f0   :  { %v4793_v52 = vsub.f32 %v4789_v19, %v4792_v24 }
0x30f2   :  { %v4794_v25 = vmul.f32 1.442695, %v4793_v52 }
0x30f3   :  { %v4802_v26 = vpop.permute.xlu0 %4801 }
0x30f4   :  { %9061 = vpow2.f32 %v4794_v25  ;;  %8717 = vmatpush3.msra.mxu0 %v4802_v26 }
0x30f5   :  { %8727 = vmatprep.subr.mxu0 %v9198_v0 }
0x30f7   :  { %v5096_v46 = vpop.permute.xlu0 %5095 }
0x3101   :  { %v9062_v58 = vpop.eup %9061 }
0x3102   :  { %v4796_v27 = vsel %vm196_vm2, %v9062_v58, 0.0 }
0x3103   :  { %4797 = vadd.xlane.f32.xlu1 %v4796_v27 }
0x3114   :  { %4927 = vrot.lane.b32.xlu1 %v9966_v56, %s10586_s24 }
0x3118   :  { %5093 = vrot.lane.b32.xlu1 %v9966_v56, %s10585_s3 }
0x311f   :  { %v4703_v39 = vpop.f32.mrf.mxu1 }
0x3120   :  { %v4709_v32 = vadd.f32 %v4703_v39, %v10030_v21 }
0x3121   :  { %v8709_v28 = vpop.f32.mrf.mxu1 }
0x3123   :  { %v4706_v33 = vpop.f32.mrf.mxu1 }
0x3125   :  { %v8710_v45 = vpop.f32.mrf.mxu1 }
0x318c   :  { %v4798_v37 = vpop.xlane.xlu1 %4797 }
0x318d   :  { %9063 = vrcp.f32 %v4798_v37 }
0x3190   :  { %v4928_v41 = vpop.permute.xlu1 %4927 }
0x3194   :  { %v5094_v53 = vpop.permute.xlu1 %5093 }
0x319a   :  { %v9064_v38 = vpop.eup %9063 }
0x319b   :  { %v4800_v40 = vmul.f32 %v9064_v38, %v9062_v58 }
0x319d   :  { %8719 = vmatmul.mubr.msk.f32.vlgmr.msra.gmra.mxu0 %vm196_vm2, %v4800_v40 }
0x319e   :  { %8728 = vmatpush3.xpose.msk.msra.mxu0 %vm196_vm2, %v4928_v41  ;;  %8729 = vmatprep.mubr.msk.f32.mxu0 %vm9199_vm0, %v9198_v0 }
0x319f   :  { %8732 = vmatprep.subr.mxu0 %v9198_v0 }
0x31a1   :  { %8730 = vmatmul.mubr.msk.f32.vlgmr.msra.gmra.mxu0 %vm196_vm2, %v9966_v56 }
0x31a2   :  { %8734 = vmatprep.mubr.msk.f32.mxu0 %vm9199_vm0, %v9198_v0 }
0x325d   :  { %v4873_v20 = vpop.f32.mrf.mxu0 }
0x325e   :  { %v4877_v43 = vpack.c.bf16 %v4873_v20, %v4873_v20 }
0x325f   :  { %v8720_v44 = vpop.f32.mrf.mxu0 }
0x3260   :  { %8724 = vmatmul.mubr.msk.bf16.vlgmr.msra.gmra.mxu1 %vm196_vm2, %v4877_v43 }
0x3261   :  { %8738 = vmatpush3.xpose.msk.msra.mxu1 %vm196_vm2, %v5096_v46  ;;  %v4999_v47 = vpop.f32.mrf.mxu0  ;;  %8739 = vmatprep.mubr.msk.f32.mxu1 %vm9199_vm0, %v9198_v0 }
0x3262   :  { %v5003_v48 = vmul.f32 0.35355338, %v4999_v47  ;;  %8747 = vmatprep.subr.bf16.mxu1 %v9198_v0 }
0x3263   :  { %v8731_v21 = vpop.f32.mrf.mxu0 }
0x3264   :  { %v5004_v49 = vadd.f32 %v5003_v48, %v9401_v23 }
0x3266   :  { %v5005_v51 = vsel %vm196_vm2, %v5004_v49, -inf }
0x3267   :  { %5006 = vmax.xlane.f32.xlu0 %v5005_v51 }
0x3268   :  { %8740 = vmatmul.mubr.msk.f32.vlgmr.msra.gmra.mxu1 %vm196_vm2, %v5094_v53 }
0x3269   :  { %8748 = vmatpush3.bf16.msra.mxu1 %v10015_v15  ;;  %8749 = vmatprep.mubr.msk.bf16.mxu1 %vm9199_vm0, %v9198_v0 }
0x326a   :  { %8759 = vmatprep.subr.mxu1 %v9198_v0 }
0x32f0   :  { %v5007_v54 = vpop.xlane.xlu0 %5006 }
0x32f1   :  { %v5008_v7 = vsub.f32 %v5004_v49, %v5007_v54 }
0x32f3   :  { %v5009_v55 = vmul.f32 1.442695, %v5008_v7 }
0x32f5   :  { %9065 = vpow2.f32 %v5009_v55 }
0x3302   :  { %v9066_v57 = vpop.eup %9065 }
0x3303   :  { %v5011_v60 = vsel %vm196_vm2, %v9066_v57, 0.0 }
0x3304   :  { %5012 = vadd.xlane.f32.xlu0 %v5011_v60 }
0x3320   :  { %v4919_v61 = vpop.f32.mrf.mxu1 }
0x3321   :  { %v10104_v62 = vadd.f32 %v4919_v61, %v4709_v32  ;;  %v8056_v61 = vld [vmem:[%s10577_s30 + $0x1] ss:$0 sm:$0xff] }
0x3322   :  { %v8725_v63 = vpop.f32.mrf.mxu1 }
0x3324   :  { %v4922_v42 = vpop.f32.mrf.mxu1 }
0x3326   :  { %v8726_v31 = vpop.f32.mrf.mxu1 }
0x3327   :  { %v5777_v31 = vadd.f32 %v8056_v61, %v10104_v62 }
0x3328   :  { %v5167_v15 = vpop.f32.mrf.mxu1 }
0x3329   :  { %v5171_v34 = vmul.f32 0.35355338, %v5167_v15 }
0x332a   :  { %v8741_v1 = vpop.f32.mrf.mxu1 }
0x332b   :  { %v5172_v8 = vadd.f32 %v5171_v34, %v9401_v23 }
0x332d   :  { %v5173_v2 = vsel %vm196_vm2, %v5172_v8, -inf }
0x332e   :  { %5174 = vmax.xlane.f32.xlu1 %v5173_v2  ;;  %v5779_v2 = vadd.f32 %v5777_v31, %v9948_v59  ;;  %v8059_v31 = vld [vmem:[%s10522_s16 + $0x1] ss:$0 sm:$0xff] }
0x333f   :  { %5016 = vrot.lane.b32.xlu1 %v9966_v56, %s10589_s28 }
0x3343   :  { %5349 = vrot.lane.b32.xlu1 %v9966_v56, %s10583_s5 }
0x3347   :  { %5347 = vrot.lane.b32.xlu1 %v9966_v56, %s10581_s29 }
0x338d   :  { %v5013_v3 = vpop.xlane.xlu0 %5012 }
0x338e   :  { %9067 = vrcp.f32 %v5013_v3  ;;  %v5785_v3 = vsel %vm143_vm1, %v5779_v2, 0.0 }
0x339b   :  { %v9068_v5 = vpop.eup %9067 }
0x339c   :  { %v5015_v11 = vmul.f32 %v9068_v5, %v9066_v57 }
0x33b7   :  { %v5175_v4 = vpop.xlane.xlu1 %5174 }
0x33b8   :  { %v5176_v9 = vsub.f32 %v5172_v8, %v5175_v4 }
0x33ba   :  { %v5177_v18 = vmul.f32 1.442695, %v5176_v9 }
0x33bb   :  { %v5017_v10 = vpop.permute.xlu1 %5016 }
0x33bc   :  { %9069 = vpow2.f32 %v5177_v18  ;;  %8733 = vmatpush3.msra.mxu0 %v5017_v10 }
0x33bd   :  { %8735 = vmatmul.mubr.msk.f32.vlgmr.msra.gmra.mxu0 %vm196_vm2, %v5015_v11  ;;  %8742 = vmatprep.subr.mxu0 %v9198_v0 }
0x33be   :  { %8744 = vmatprep.mubr.msk.f32.mxu0 %vm9199_vm0, %v9198_v0 }
0x33bf   :  { %v5350_v39 = vpop.permute.xlu1 %5349 }
0x33c9   :  { %v9070_v36 = vpop.eup %9069 }
0x33ca   :  { %v5179_v13 = vsel %vm196_vm2, %v9070_v36, 0.0 }
0x33cb   :  { %5180 = vadd.xlane.f32.xlu0 %v5179_v13 }
0x33e1   :  { %5184 = vrot.lane.b32.xlu0 %v9966_v56, %s10588_s26 }
0x3454   :  { %v5181_v14 = vpop.xlane.xlu0 %5180 }
0x3455   :  { %9071 = vrcp.f32 %v5181_v14 }
0x3458   :  { %v5185_v16 = vpop.permute.xlu0 %5184 }
0x3459   :  { %8743 = vmatpush3.msra.mxu0 %v5185_v16 }
0x345a   :  { %8753 = vmatprep.subr.bf16.mxu0 %v9198_v0 }
0x3462   :  { %v9072_v19 = vpop.eup %9071 }
0x3463   :  { %v5183_v22 = vmul.f32 %v9072_v19, %v9070_v36 }
0x3465   :  { %8745 = vmatmul.mubr.msk.f32.vlgmr.msra.gmra.mxu0 %vm196_vm2, %v5183_v22 }
0x3466   :  { %8754 = vmatpush3.bf16.msra.mxu0 %v10007_v12  ;;  %8755 = vmatprep.mubr.msk.bf16.mxu0 %vm9199_vm0, %v9198_v0  ;;  %v5348_v12 = vpop.permute.xlu1 %5347 }
0x3467   :  { %8764 = vmatprep.subr.mxu0 %v9198_v0 }
0x347d   :  { %v5088_v24 = vpop.f32.mrf.mxu0 }
0x347e   :  { %v5092_v52 = vpack.c.bf16 %v5088_v24, %v5088_v24 }
0x347f   :  { %v8736_v25 = vpop.f32.mrf.mxu0 }
0x3480   :  { %8756 = vmatmul.mubr.msk.bf16.vlgmr.msra.gmra.mxu0 %vm196_vm2, %v5092_v52 }
0x3481   :  { %8766 = vmatprep.mubr.msk.f32.mxu0 %vm9199_vm0, %v9198_v0 }
0x3525   :  { %v5256_v26 = vpop.f32.mrf.mxu0 }
0x3526   :  { %v5260_v58 = vpack.c.bf16 %v5256_v26, %v5256_v26 }
0x3527   :  { %v8746_v27 = vpop.f32.mrf.mxu0 }
0x3528   :  { %8750 = vmatmul.mubr.msk.bf16.vlgmr.msra.gmra.mxu1 %vm196_vm2, %v5260_v58 }
0x3529   :  { %8760 = vmatpush3.xpose.msk.msra.mxu1 %vm196_vm2, %v5350_v39  ;;  %8761 = vmatprep.mubr.msk.f32.mxu1 %vm9199_vm0, %v9198_v0 }
0x352a   :  { %8769 = vmatprep.subr.bf16.mxu1 %v9198_v0 }
0x3530   :  { %8762 = vmatmul.mubr.msk.f32.vlgmr.msra.gmra.mxu1 %vm196_vm2, %v5348_v12 }
0x3531   :  { %8770 = vmatpush3.bf16.msra.mxu1 %v10054_v17  ;;  %8771 = vmatprep.mubr.msk.bf16.mxu1 %vm9199_vm0, %v9198_v0 }
0x3532   :  { %8785 = vmatprep.subr.bf16.mxu1 %v9198_v0 }
0x3540   :  { %v10140_v32 = vpop.f32.mrf.mxu0 }
0x3542   :  { %v8757_v28 = vpop.f32.mrf.mxu0 }
0x3544   :  { %v5344_v29 = vpop.f32.mrf.mxu0 }
0x3546   :  { %v8758_v30 = vpop.f32.mrf.mxu0 }
0x35e8   :  { %v5298_v33 = vpop.f32.mrf.mxu1 }
0x35ea   :  { %v8751_v45 = vpop.f32.mrf.mxu1 }
0x35ec   :  { %v5301_v37 = vpop.f32.mrf.mxu1 }
0x35ee   :  { %v8752_v38 = vpop.f32.mrf.mxu1 }
0x35f0   :  { %v5421_v40 = vpop.f32.mrf.mxu1 }
0x35f1   :  { %v5425_v41 = vmul.f32 0.35355338, %v5421_v40 }
0x35f2   :  { %v8763_v20 = vpop.f32.mrf.mxu1 }
0x35f3   :  { %v5426_v43 = vadd.f32 %v5425_v41, %v9401_v23 }
0x35f5   :  { %v5427_v17 = vsel %vm196_vm2, %v5426_v43, -inf }
0x35f6   :  { %5428 = vmax.xlane.f32.xlu0 %v5427_v17  ;;  %v5891_v17 = vld [vmem:[#allocation2 + $0x38] sm:$0xff] }
0x360c   :  { %5438 = vrot.lane.b32.xlu0 %v9966_v56, %s10590_s8 }
0x3610   :  { %5559 = vrot.lane.b32.xlu0 %v9966_v56, %s10582_s7 }
0x367f   :  { %v5429_v44 = vpop.xlane.xlu0 %5428 }
0x3680   :  { %v5430_v46 = vsub.f32 %v5426_v43, %v5429_v44  ;;  %v5890_v43 = vld [vmem:[#allocation2 + $0x30] sm:$0xff] }
0x3681   :  { %v5895_v44 = vpack.c.bf16 %v5891_v17, %v5890_v43 }
0x3682   :  { %v5431_v47 = vmul.f32 1.442695, %v5430_v46  ;;  %v5889_v46 = vld [vmem:[#allocation2 + $0x28] sm:$0xff] }
0x3683   :  { %v5439_v48 = vpop.permute.xlu0 %5438 }
0x3684   :  { %9073 = vpow2.f32 %v5431_v47  ;;  %8765 = vmatpush3.msra.mxu0 %v5439_v48  ;;  %v8063_v48 = vld [vmem:[%s10579_s0 + $0x30] sm:$0xff] }
0x3685   :  { %8775 = vmatprep.subr.mxu0 %v9198_v0 }
0x3687   :  { %v5560_v55 = vpop.permute.xlu0 %5559 }
0x3691   :  { %v9074_v21 = vpop.eup %9073 }
0x3692   :  { %v5433_v49 = vsel %vm196_vm2, %v9074_v21, 0.0 }
0x3693   :  { %5434 = vadd.xlane.f32.xlu1 %v5433_v49 }
0x36a4   :  { %5561 = vrot.lane.b32.xlu1 %v9966_v56, %s10584_s10 }
0x371c   :  { %v5435_v51 = vpop.xlane.xlu1 %5434 }
0x371d   :  { %9075 = vrcp.f32 %v5435_v51  ;;  %v8061_v51 = vld [vmem:[%s10579_s0 + $0x20] sm:$0xff] }
0x3720   :  { %v5562_v7 = vpop.permute.xlu1 %5561 }
0x372a   :  { %v9076_v53 = vpop.eup %9075 }
0x372b   :  { %v5437_v54 = vmul.f32 %v9076_v53, %v9074_v21  ;;  %v8064_v21 = vld [vmem:[%s10579_s0 + $0x38] sm:$0xff]  ;;  %v8062_v53 = vld [vmem:[%s10579_s0 + $0x28] sm:$0xff] }
0x372c   :  { %v5836_v49 = vpack.c.bf16 %v8064_v21, %v8063_v48 }
0x372d   :  { %8767 = vmatmul.mubr.msk.f32.vlgmr.msra.gmra.mxu0 %vm196_vm2, %v5437_v54  ;;  %v5835_v54 = vpack.c.bf16 %v8062_v53, %v8061_v51 }
0x372e   :  { %8776 = vmatpush3.xpose.msk.msra.mxu0 %vm196_vm2, %v5562_v7  ;;  %8777 = vmatprep.mubr.msk.f32.mxu0 %vm9199_vm0, %v9198_v0 }
0x372f   :  { %8780 = vmatprep.subr.mxu0 %v9198_v0 }
0x3731   :  { %8778 = vmatmul.mubr.msk.f32.vlgmr.msra.gmra.mxu0 %vm196_vm2, %v5560_v55 }
0x3732   :  { %8782 = vmatprep.mubr.msk.f32.mxu0 %vm9199_vm0, %v9198_v0 }
0x37ed   :  { %v5510_v57 = vpop.f32.mrf.mxu0 }
0x37ee   :  { %v5514_v60 = vpack.c.bf16 %v5510_v57, %v5510_v57 }
0x37ef   :  { %v8768_v63 = vpop.f32.mrf.mxu0 }
0x37f0   :  { %8772 = vmatmul.mubr.msk.bf16.vlgmr.msra.gmra.mxu1 %vm196_vm2, %v5514_v60 }
0x37f1   :  { %v5633_v42 = vpop.f32.mrf.mxu0  ;;  %8786 = vmatpush3.bf16.msra.mxu1 %v10078_v35  ;;  %8787 = vmatprep.mubr.msk.bf16.mxu1 %vm9199_vm0, %v9198_v0 }
0x37f2   :  { %v5637_v15 = vmul.f32 0.35355338, %v5633_v42  ;;  %8799 = vmatprep.subr.bf16.mxu1 %v9198_v0 }
0x37f3   :  { %v8779_v34 = vpop.f32.mrf.mxu0 }
0x37f4   :  { %v5638_v1 = vadd.f32 %v5637_v15, %v9401_v23  ;;  %v5342_v23 = vadd.f32 %v10140_v32, %v5298_v33 }
0x37f6   :  { %v5639_v8 = vsel %vm196_vm2, %v5638_v1, -inf }
0x37f7   :  { %5640 = vmax.xlane.f32.xlu1 %v5639_v8  ;;  %v8060_v8 = vld [vmem:[%s10523_s17 + $0x1] ss:$0 sm:$0xff] }
0x37fb   :  { %5786 = vadd.xlane.f32.xlu1 %v5785_v3 }
0x3880   :  { %v5641_v35 = vpop.xlane.xlu1 %5640 }
0x3881   :  { %v5642_v4 = vsub.f32 %v5638_v1, %v5641_v35 }
0x3883   :  { %v5643_v5 = vmul.f32 1.442695, %v5642_v4 }
0x3884   :  { %v5787_v52 = vpop.xlane.xlu1 %5786 }
0x3885   :  { %9077 = vpow2.f32 %v5643_v5  ;;  %v5791_v25 = vmul.f32 0.03125, %v5787_v52  ;;  %v8069_v5 = vld [vmem:[%s10515_s9 + $0x1] ss:$0 sm:$0xff] }
0x3887   :  { %v5793_v39 = vsub.f32 %v5779_v2, %v5791_v25 }
0x3889   :  { %v5795_v33 = vmul.f32 %v5793_v39, %v5793_v39 }
0x388b   :  { %v5797_v45 = vsel %vm143_vm1, %v5795_v33, 0.0 }
0x3892   :  { %v9078_v9 = vpop.eup %9077 }
0x3893   :  { %v5645_v62 = vsel %vm196_vm2, %v9078_v9, 0.0 }
0x3894   :  { %5646 = vadd.xlane.f32.xlu0 %v5645_v62 }
0x38aa   :  { %5650 = vrot.lane.b32.xlu0 %v9966_v56, %s10591_s4 }
0x38b0   :  { %v5552_v18 = vpop.f32.mrf.mxu1 }
0x38b1   :  { %v5558_v10 = vadd.f32 %v5552_v18, %v5342_v23 }
0x38b2   :  { %v8773_v59 = vpop.f32.mrf.mxu1 }
0x38b4   :  { %v5555_v11 = vpop.f32.mrf.mxu1 }
0x38b5   :  { %v8066_v11 = vld [vmem:[%s10580_s1 + $0x1] ss:$0 sm:$0xff] }
0x38b6   :  { %v8774_v36 = vpop.f32.mrf.mxu1 }
0x391d   :  { %v5647_v13 = vpop.xlane.xlu0 %5646 }
0x391e   :  { %9079 = vrcp.f32 %v5647_v13 }
0x3921   :  { %v5651_v14 = vpop.permute.xlu0 %5650 }
0x3922   :  { %8781 = vmatpush3.msra.mxu0 %v5651_v14 }
0x3923   :  { %8791 = vmatprep.subr.bf16.mxu0 %v9198_v0 }
0x392b   :  { %v9080_v16 = vpop.eup %9079 }
0x392c   :  { %v5649_v19 = vmul.f32 %v9080_v16, %v9078_v9 }
0x392e   :  { %8783 = vmatmul.mubr.msk.f32.vlgmr.msra.gmra.mxu0 %vm196_vm2, %v5649_v19 }
0x392f   :  { %8795 = vmatprep.mubr.msk.bf16.mxu0 %vm9199_vm0, %v9198_v0  ;;  %8792 = vmatpush3.bf16.msra.mxu0 %v5836_v49  ;;  %v5944_v49 = vld [vmem:[#allocation4 + $0x20] sm:$0xff] }
0x3930   :  { %8793 = vmatprep.subr.bf16.mxu0 %v9198_v0  ;;  %v6115_v51 = vpack.c.bf16 %v5944_v49, %v5944_v49 }
0x3932   :  { %v10274_v53 = vsel %vm534_vm4, %v6115_v51, 0 }
0x3933   :  { %8794 = vmatpush3.bf16.msra.mxu0 %v5835_v54  ;;  %v5945_v54 = vld [vmem:[#allocation4 + $0x28] sm:$0xff] }
0x3934   :  { %8807 = vmatprep.subr.mxu0 %v9198_v0 }
0x39ee   :  { %v5722_v56 = vpop.f32.mrf.mxu0 }
0x39ef   :  { %v5726_v22 = vpack.c.bf16 %v5722_v56, %v5722_v56 }
0x39f0   :  { %v8784_v24 = vpop.f32.mrf.mxu0 }
0x39f1   :  { %8788 = vmatmul.mubr.msk.bf16.vlgmr.msra.gmra.mxu1 %vm196_vm2, %v5726_v22 }
0x39f2   :  { %8803 = vmatprep.mubr.msk.bf16.mxu1 %vm9199_vm0, %v9198_v0  ;;  %8800 = vmatpush3.bf16.msra.mxu1 %v5895_v44 }
0x39f3   :  { %8801 = vmatprep.subr.bf16.mxu1 %v9198_v0 }
0x3ab1   :  { %v5764_v26 = vpop.f32.mrf.mxu1 }
0x3ab2   :  { %v5770_v58 = vadd.f32 %v5764_v26, %v5558_v10 }
0x3ab3   :  { %v8789_v27 = vpop.f32.mrf.mxu1 }
0x3ab4   :  { %v5778_v12 = vadd.f32 %v8056_v61, %v5770_v58 }
0x3ab5   :  { %v5767_v32 = vpop.f32.mrf.mxu1 }
0x3ab6   :  { %v5780_v28 = vadd.f32 %v5778_v12, %v9950_v50  ;;  %v5888_v50 = vld [vmem:[#allocation2 + $0x20] sm:$0xff] }
0x3ab7   :  { %v8790_v29 = vpop.f32.mrf.mxu1  ;;  %v5894_v47 = vpack.c.bf16 %v5889_v46, %v5888_v50 }
0x3ab8   :  { %v5788_v30 = vsel %vm143_vm1, %v5780_v28, 0.0 }
0x3ab9   :  { %5789 = vadd.xlane.f32.xlu1 %v5788_v30  ;;  %8802 = vmatpush3.bf16.msra.mxu1 %v5894_v47 }
0x3aba   :  { %8812 = vmatprep.subr.mxu1 %v9198_v0 }
0x3abc   :  { %8804 = vmatmul.mubr.msk.bf16.vlgmr.msra.gmra.mxu1 %vm143_vm1, %v9624_v6 }
0x3abd   :  { %5798 = vadd.xlane.f32.xlu1 %v5797_v45  ;;  %8814 = vmatprep.mubr.msk.f32.mxu1 %vm9199_vm0, %v9198_v0 }
0x3b42   :  { %v5790_v37 = vpop.xlane.xlu1 %5789 }
0x3b43   :  { %v5792_v38 = vmul.f32 0.03125, %v5790_v37 }
0x3b45   :  { %v5794_v40 = vsub.f32 %v5780_v28, %v5792_v38 }
0x3b46   :  { %v5799_v7 = vpop.xlane.xlu1 %5798 }
0x3b47   :  { %v5796_v41 = vmul.f32 %v5794_v40, %v5794_v40  ;;  %v5803_v6 = vmul.f32 0.03125, %v5799_v7  ;;  %v6283_v7 = vpack.c.bf16 %v5945_v54, %v5945_v54 }
0x3b49   :  { %v5800_v20 = vsel %vm143_vm1, %v5796_v41, 0.0  ;;  %v5805_v55 = vadd.f32 1e-05, %v5803_v6  ;;  %v10279_v6 = vsel %vm534_vm4, %v6283_v7, 0 }
0x3b4a   :  { %5801 = vadd.xlane.f32.xlu1 %v5800_v20 }
0x3b4b   :  { %9081 = vrsqrt.f32 %v5805_v55 }
0x3b58   :  { %v9082_v63 = vpop.eup %9081 }
0x3b59   :  { %v5809_v42 = vmul.f32 %v9082_v63, %v5793_v39 }
0x3b5b   :  { %v5817_v1 = vmul.f32 %v8059_v31, %v5809_v42 }
0x3b5d   :  { %v10214_v3 = vadd.f32 %v8060_v8, %v5817_v1 }
0x3b7c   :  { %v5936_v9 = vpop.f32.mrf.mxu1 }
0x3b7d   :  { %v10226_v62 = vadd.f32 %v8069_v5, %v5936_v9 }
0x3b7e   :  { %v8805_v23 = vpop.f32.mrf.mxu1 }
0x3b7f   :  { %6118 = vrot.lane.b32.xlu1 %v10226_v62, %s10585_s3 }
0x3b80   :  { %v5939_v18 = vpop.f32.mrf.mxu1 }
0x3b81   :  { %v10233_v10 = vadd.f32 %v8069_v5, %v5939_v18 }
0x3b82   :  { %v8806_v59 = vpop.f32.mrf.mxu1 }
0x3bd3   :  { %v5802_v57 = vpop.xlane.xlu1 %5801 }
0x3bd4   :  { %v5804_v60 = vmul.f32 0.03125, %v5802_v57 }
0x3bd6   :  { %v5806_v61 = vadd.f32 1e-05, %v5804_v60 }
0x3bd8   :  { %9083 = vrsqrt.f32 %v5806_v61 }
0x3be5   :  { %v9084_v15 = vpop.eup %9083 }
0x3be6   :  { %v5810_v34 = vmul.f32 %v9084_v15, %v5794_v40 }
0x3be8   :  { %v5818_v2 = vmul.f32 %v8059_v31, %v5810_v34 }
0x3bea   :  { %v10216_v35 = vadd.f32 %v8060_v8, %v5818_v2 }
0x3bec   :  { %v5834_v4 = vpack.c.bf16 %v10216_v35, %v10214_v3 }
0x3bee   :  { %8796 = vmatmul.mubr.msk.bf16.vlgmr.msra.gmra.mxu0 %vm143_vm1, %v5834_v4 }
0x3bef   :  { %8809 = vmatprep.mubr.msk.f32.mxu0 %vm9199_vm0, %v9198_v0  ;;  %8808 = vmatpush3.xpose.msk.msra.mxu0 %vm196_vm2, %v10226_v62 }
0x3bf0   :  { %8817 = vmatprep.subr.mxu0 %v9198_v0 }
0x3bf1   :  { %v6119_v14 = vpop.permute.xlu1 %6118 }
0x3cae   :  { %v5880_v36 = vpop.f32.mrf.mxu0 }
0x3caf   :  { %v10238_v13 = vadd.f32 %v8066_v11, %v5880_v36 }
0x3cb0   :  { %v8797_v16 = vpop.f32.mrf.mxu0 }
0x3cb1   :  { %6116 = vrot.lane.b32.xlu0 %v10238_v13, %s10585_s3  ;;  %8810 = vmatmul.mubr.msk.f32.vlgmr.msra.gmra.mxu0 %vm196_vm2, %v10238_v13 }
0x3cb2   :  { %v5883_v19 = vpop.f32.mrf.mxu0  ;;  %8818 = vmatpush3.xpose.msk.msra.mxu0 %vm196_vm2, %v6119_v14  ;;  %8819 = vmatprep.mubr.msk.f32.mxu0 %vm9199_vm0, %v9198_v0 }
0x3cb3   :  { %v10247_v56 = vadd.f32 %v8066_v11, %v5883_v19  ;;  %8827 = vmatprep.subr.bf16.mxu0 %v9198_v0 }
0x3cb4   :  { %v8798_v22 = vpop.f32.mrf.mxu0 }
0x3d23   :  { %v6117_v24 = vpop.permute.xlu0 %6116 }
0x3d24   :  { %8820 = vmatmul.mubr.msk.f32.vlgmr.msra.gmra.mxu0 %vm196_vm2, %v6117_v24 }
0x3d25   :  { %8829 = vmatprep.mubr.msk.bf16.mxu0 %vm9199_vm0, %v9198_v0  ;;  %8828 = vmatpush3.bf16.msra.mxu0 %v10279_v6 }
0x3d26   :  { %8839 = vmatprep.subr.mxu0 %v9198_v0 }
0x3d71   :  { %v6022_v52 = vpop.f32.mrf.mxu0 }
0x3d72   :  { %v6026_v25 = vmul.f32 0.35355338, %v6022_v52 }
0x3d73   :  { %v8811_v26 = vpop.f32.mrf.mxu0 }
0x3d74   :  { %v6027_v58 = vsel %vm196_vm2, %v6026_v25, -inf }
0x3d75   :  { %6028 = vmax.xlane.f32.xlu0 %v6027_v58 }
0x3de4   :  { %v6190_v27 = vpop.f32.mrf.mxu0 }
0x3de5   :  { %v6194_v39 = vmul.f32 0.35355338, %v6190_v27 }
0x3de6   :  { %v8821_v12 = vpop.f32.mrf.mxu0 }
0x3de7   :  { %v6195_v32 = vsel %vm196_vm2, %v6194_v39, -inf  ;;  %v5946_v12 = vld [vmem:[#allocation4 + $0x30] sm:$0xff] }
0x3de8   :  { %6196 = vmax.xlane.f32.xlu1 %v6195_v32  ;;  %v6543_v32 = vpack.c.bf16 %v5946_v12, %v5946_v12 }
0x3df9   :  { %6206 = vrot.lane.b32.xlu1 %v10226_v62, %s10587_s2 }
0x3dfd   :  { %6376 = vrot.lane.b32.xlu1 %v10238_v13, %s10581_s29 }
0x3dfe   :  { %v6029_v28 = vpop.xlane.xlu0 %6028 }
0x3dff   :  { %v6030_v29 = vsub.f32 %v6026_v25, %v6029_v28  ;;  %v10312_v28 = vsel %vm534_vm4, %v6543_v32, 0 }
0x3e01   :  { %v6031_v30 = vmul.f32 1.442695, %v6030_v29 }
0x3e03   :  { %9085 = vpow2.f32 %v6031_v30 }
0x3e10   :  { %v9086_v33 = vpop.eup %9085 }
0x3e11   :  { %v6033_v45 = vsel %vm196_vm2, %v9086_v33, 0.0 }
0x3e12   :  { %6034 = vadd.xlane.f32.xlu0 %v6033_v45 }
0x3e71   :  { %v6197_v37 = vpop.xlane.xlu1 %6196 }
0x3e72   :  { %v6198_v38 = vsub.f32 %v6194_v39, %v6197_v37 }
0x3e74   :  { %v6199_v40 = vmul.f32 1.442695, %v6198_v38 }
0x3e75   :  { %v6207_v47 = vpop.permute.xlu1 %6206 }
0x3e76   :  { %9087 = vpow2.f32 %v6199_v40 }
0x3e79   :  { %v6377_v15 = vpop.permute.xlu1 %6376 }
0x3e83   :  { %v9088_v41 = vpop.eup %9087 }
0x3e84   :  { %v6201_v20 = vsel %vm196_vm2, %v9088_v41, 0.0 }
0x3e85   :  { %6202 = vadd.xlane.f32.xlu0 %v6201_v20 }
0x3e9b   :  { %6038 = vrot.lane.b32.xlu0 %v10226_v62, %s10586_s24  ;;  %v6035_v43 = vpop.xlane.xlu0 %6034 }
0x3e9c   :  { %9089 = vrcp.f32 %v6035_v43 }
0x3e9f   :  { %6378 = vrot.lane.b32.xlu0 %v10226_v62, %s10581_s29 }
0x3ea9   :  { %v9090_v44 = vpop.eup %9089 }
0x3eaa   :  { %v6037_v50 = vmul.f32 %v9090_v44, %v9086_v33 }
0x3f0e   :  { %v6203_v17 = vpop.xlane.xlu0 %6202 }
0x3f0f   :  { %9091 = vrcp.f32 %v6203_v17 }
0x3f12   :  { %v6039_v46 = vpop.permute.xlu0 %6038 }
0x3f13   :  { %8813 = vmatpush3.msra.mxu1 %v6039_v46  ;;  %v5947_v46 = vld [vmem:[#allocation4 + $0x38] sm:$0xff] }
0x3f14   :  { %8815 = vmatmul.mubr.msk.f32.vlgmr.msra.gmra.mxu1 %vm196_vm2, %v6037_v50  ;;  %8822 = vmatprep.subr.mxu1 %v9198_v0 }
0x3f15   :  { %8823 = vmatpush3.msra.mxu1 %v6207_v47  ;;  %8824 = vmatprep.mubr.msk.f32.mxu1 %vm9199_vm0, %v9198_v0 }
0x3f16   :  { %8833 = vmatprep.subr.bf16.mxu1 %v9198_v0  ;;  %v6379_v31 = vpop.permute.xlu0 %6378 }
0x3f1c   :  { %v9092_v48 = vpop.eup %9091 }
0x3f1d   :  { %v6205_v21 = vmul.f32 %v9092_v48, %v9088_v41  ;;  %v6758_v48 = vpack.c.bf16 %v5947_v46, %v5947_v46 }
0x3f1f   :  { %8825 = vmatmul.mubr.msk.f32.vlgmr.msra.gmra.mxu1 %vm196_vm2, %v6205_v21  ;;  %v10328_v49 = vsel %vm534_vm4, %v6758_v48, 0 }
0x3f20   :  { %8835 = vmatprep.mubr.msk.bf16.mxu1 %vm9199_vm0, %v9198_v0  ;;  %8834 = vmatpush3.bf16.msra.mxu1 %v10274_v53 }
0x3f21   :  { %8844 = vmatprep.subr.mxu1 %v9198_v0 }
0x3fd4   :  { %v6110_v55 = vpop.f32.mrf.mxu1 }
0x3fd5   :  { %v6114_v57 = vpack.c.bf16 %v6110_v55, %v6110_v55 }
0x3fd6   :  { %v8816_v60 = vpop.f32.mrf.mxu1 }
0x3fd7   :  { %8836 = vmatmul.mubr.msk.bf16.vlgmr.msra.gmra.mxu1 %vm196_vm2, %v6114_v57 }
0x3fd8   :  { %8846 = vmatprep.mubr.msk.f32.mxu1 %vm9199_vm0, %v9198_v0 }
0x3fdf   :  { %v6278_v61 = vpop.f32.mrf.mxu1 }
0x3fe0   :  { %v6282_v63 = vpack.c.bf16 %v6278_v61, %v6278_v61 }
0x3fe1   :  { %v8826_v42 = vpop.f32.mrf.mxu1 }
0x3fe2   :  { %8830 = vmatmul.mubr.msk.bf16.vlgmr.msra.gmra.mxu0 %vm196_vm2, %v6282_v63 }
0x3fe3   :  { %8840 = vmatpush3.xpose.msk.msra.mxu0 %vm196_vm2, %v6379_v31  ;;  %8841 = vmatprep.mubr.msk.f32.mxu0 %vm9199_vm0, %v9198_v0 }
0x3fe4   :  { %8849 = vmatprep.subr.bf16.mxu0 %v9198_v0 }
0x3fea   :  { %8842 = vmatmul.mubr.msk.f32.vlgmr.msra.gmra.mxu0 %vm196_vm2, %v6377_v15 }
0x3feb   :  { %8851 = vmatprep.mubr.msk.bf16.mxu0 %vm9199_vm0, %v9198_v0  ;;  %8850 = vmatpush3.bf16.msra.mxu0 %v10312_v28 }
0x3fec   :  { %8865 = vmatprep.subr.bf16.mxu0 %v9198_v0 }
0x4097   :  { %v6370_v34 = vpop.f32.mrf.mxu1 }
0x4099   :  { %v8837_v1 = vpop.f32.mrf.mxu1 }
0x409b   :  { %v6373_v8 = vpop.f32.mrf.mxu1 }
0x409d   :  { %v8838_v2 = vpop.f32.mrf.mxu1 }
0x40a2   :  { %v6324_v4 = vpop.f32.mrf.mxu0 }
0x40a3   :  { %v6371_v5 = vadd.f32 %v6370_v34, %v6324_v4 }
0x40a4   :  { %v8831_v9 = vpop.f32.mrf.mxu0 }
0x40a6   :  { %v6327_v23 = vpop.f32.mrf.mxu0 }
0x40a8   :  { %v8832_v18 = vpop.f32.mrf.mxu0 }
0x40aa   :  { %v6450_v59 = vpop.f32.mrf.mxu0 }
0x40ab   :  { %v6454_v11 = vmul.f32 0.35355338, %v6450_v59 }
0x40ac   :  { %v8843_v36 = vpop.f32.mrf.mxu0 }
0x40ad   :  { %v6455_v14 = vsel %vm196_vm2, %v6454_v11, -inf }
0x40ae   :  { %6456 = vmax.xlane.f32.xlu0 %v6455_v14 }
0x40c4   :  { %6466 = vrot.lane.b32.xlu0 %v10226_v62, %s10583_s5 }
0x40c8   :  { %6591 = vrot.lane.b32.xlu0 %v10238_v13, %s10582_s7 }
0x4137   :  { %v6457_v16 = vpop.xlane.xlu0 %6456 }
0x4138   :  { %v6458_v19 = vsub.f32 %v6454_v11, %v6457_v16 }
0x413a   :  { %v6459_v22 = vmul.f32 1.442695, %v6458_v19 }
0x413b   :  { %v6467_v24 = vpop.permute.xlu0 %6466 }
0x413c   :  { %9093 = vpow2.f32 %v6459_v22  ;;  %8845 = vmatpush3.msra.mxu1 %v6467_v24 }
0x413d   :  { %8855 = vmatprep.subr.mxu1 %v9198_v0 }
0x413f   :  { %v6592_v39 = vpop.permute.xlu0 %6591 }
0x4149   :  { %v9094_v52 = vpop.eup %9093 }
0x414a   :  { %v6461_v25 = vsel %vm196_vm2, %v9094_v52, 0.0 }
0x414b   :  { %6462 = vadd.xlane.f32.xlu1 %v6461_v25 }
0x415c   :  { %6593 = vrot.lane.b32.xlu1 %v10226_v62, %s10582_s7 }
0x41d4   :  { %v6463_v26 = vpop.xlane.xlu1 %6462 }
0x41d5   :  { %9095 = vrcp.f32 %v6463_v26 }
0x41d8   :  { %v6594_v13 = vpop.permute.xlu1 %6593 }
0x41e2   :  { %v9096_v58 = vpop.eup %9095 }
0x41e3   :  { %v6465_v27 = vmul.f32 %v9096_v58, %v9094_v52 }
0x41e5   :  { %8847 = vmatmul.mubr.msk.f32.vlgmr.msra.gmra.mxu1 %vm196_vm2, %v6465_v27 }
0x41e6   :  { %8856 = vmatpush3.xpose.msk.msra.mxu1 %vm196_vm2, %v6594_v13  ;;  %8857 = vmatprep.mubr.msk.f32.mxu1 %vm9199_vm0, %v9198_v0 }
0x41e7   :  { %8860 = vmatprep.subr.mxu1 %v9198_v0 }
0x41e9   :  { %8858 = vmatmul.mubr.msk.f32.vlgmr.msra.gmra.mxu1 %vm196_vm2, %v6592_v39 }
0x41ea   :  { %8862 = vmatprep.mubr.msk.f32.mxu1 %vm9199_vm0, %v9198_v0 }
0x42a5   :  { %v6538_v29 = vpop.f32.mrf.mxu1 }
0x42a6   :  { %v6542_v30 = vpack.c.bf16 %v6538_v29, %v6538_v29 }
0x42a7   :  { %v8848_v33 = vpop.f32.mrf.mxu1 }
0x42a8   :  { %8852 = vmatmul.mubr.msk.bf16.vlgmr.msra.gmra.mxu0 %vm196_vm2, %v6542_v30 }
0x42a9   :  { %v6665_v45 = vpop.f32.mrf.mxu1  ;;  %8867 = vmatprep.mubr.msk.bf16.mxu0 %vm9199_vm0, %v9198_v0  ;;  %8866 = vmatpush3.bf16.msra.mxu0 %v10328_v49 }
0x42aa   :  { %v6669_v37 = vmul.f32 0.35355338, %v6665_v45  ;;  %8881 = vmatprep.subr.mxu0 %v9198_v0 }
0x42ab   :  { %v8859_v38 = vpop.f32.mrf.mxu1 }
0x42ac   :  { %v6670_v40 = vsel %vm196_vm2, %v6669_v37, -inf }
0x42ad   :  { %6671 = vmax.xlane.f32.xlu1 %v6670_v40 }
0x42be   :  { %6973 = vrot.lane.b32.xlu1 %v10233_v10, %s10585_s3 }
0x42c2   :  { %6971 = vrot.lane.b32.xlu1 %v10247_v56, %s10585_s3  ;;  %s10592_s3 = sld [smem:[#allocation18_spill]] }
0x4336   :  { %v6672_v41 = vpop.xlane.xlu1 %6671 }
0x4337   :  { %v6673_v20 = vsub.f32 %v6669_v37, %v6672_v41 }
0x4339   :  { %v6674_v43 = vmul.f32 1.442695, %v6673_v20 }
0x433a   :  { %v6974_v42 = vpop.permute.xlu1 %6973 }
0x433b   :  { %9097 = vpow2.f32 %v6674_v43 }
0x433e   :  { %v6972_v8 = vpop.permute.xlu1 %6971 }
0x4348   :  { %v9098_v17 = vpop.eup %9097 }
0x4349   :  { %v6676_v44 = vsel %vm196_vm2, %v9098_v17, 0.0 }
0x434a   :  { %6677 = vadd.xlane.f32.xlu0 %v6676_v44 }
0x4360   :  { %6681 = vrot.lane.b32.xlu0 %v10226_v62, %s10584_s10 }
0x4368   :  { %v6584_v50 = vpop.f32.mrf.mxu0 }
0x4369   :  { %v6590_v47 = vadd.f32 %v6584_v50, %v6371_v5 }
0x436a   :  { %v8853_v21 = vpop.f32.mrf.mxu0 }
0x436c   :  { %v6587_v51 = vpop.f32.mrf.mxu0 }
0x436e   :  { %v8854_v54 = vpop.f32.mrf.mxu0 }
0x43d3   :  { %v6678_v7 = vpop.xlane.xlu0 %6677 }
0x43d4   :  { %9099 = vrcp.f32 %v6678_v7 }
0x43d7   :  { %v6682_v55 = vpop.permute.xlu0 %6681 }
0x43d8   :  { %8861 = vmatpush3.msra.mxu1 %v6682_v55 }
0x43d9   :  { %8871 = vmatprep.subr.mxu1 %v9198_v0 }
0x43e1   :  { %v9100_v62 = vpop.eup %9099 }
0x43e2   :  { %v6680_v57 = vmul.f32 %v9100_v62, %v9098_v17 }
0x43e4   :  { %8863 = vmatmul.mubr.msk.f32.vlgmr.msra.gmra.mxu1 %vm196_vm2, %v6680_v57 }
0x43e5   :  { %8872 = vmatpush3.xpose.msk.msra.mxu1 %vm196_vm2, %v10233_v10  ;;  %8873 = vmatprep.mubr.msk.f32.mxu1 %vm9199_vm0, %v9198_v0 }
0x43e6   :  { %8876 = vmatprep.subr.mxu1 %v9198_v0 }
0x43e8   :  { %8874 = vmatmul.mubr.msk.f32.vlgmr.msra.gmra.mxu1 %vm196_vm2, %v10247_v56 }
0x43e9   :  { %8878 = vmatprep.mubr.msk.f32.mxu1 %vm9199_vm0, %v9198_v0 }
0x44a4   :  { %v6753_v60 = vpop.f32.mrf.mxu1 }
0x44a5   :  { %v6757_v61 = vpack.c.bf16 %v6753_v60, %v6753_v60 }
0x44a6   :  { %v8864_v63 = vpop.f32.mrf.mxu1 }
0x44a7   :  { %8868 = vmatmul.mubr.msk.bf16.vlgmr.msra.gmra.mxu0 %vm196_vm2, %v6757_v61 }
0x44a8   :  { %8882 = vmatpush3.xpose.msk.msra.mxu0 %vm196_vm2, %v6974_v42  ;;  %v6878_v31 = vpop.f32.mrf.mxu1  ;;  %8883 = vmatprep.mubr.msk.f32.mxu0 %vm9199_vm0, %v9198_v0 }
0x44a9   :  { %v6882_v15 = vmul.f32 0.35355338, %v6878_v31  ;;  %8891 = vmatprep.subr.bf16.mxu0 %v9198_v0 }
0x44aa   :  { %v8875_v34 = vpop.f32.mrf.mxu1 }
0x44ab   :  { %v6883_v1 = vsel %vm196_vm2, %v6882_v15, -inf }
0x44ac   :  { %6884 = vmax.xlane.f32.xlu0 %v6883_v1 }
0x44af   :  { %8884 = vmatmul.mubr.msk.f32.vlgmr.msra.gmra.mxu0 %vm196_vm2, %v6972_v8  ;;  %v8104_v8 = vld [vmem:[%s10517_s11 + $0x1] ss:$0 sm:$0xff] }
0x44b0   :  { %8892 = vmatpush3.bf16.msra.mxu0 %v10279_v6  ;;  %8893 = vmatprep.mubr.msk.bf16.mxu0 %vm9199_vm0, %v9198_v0 }
0x44b1   :  { %8903 = vmatprep.subr.mxu0 %v9198_v0 }
0x4535   :  { %v6885_v2 = vpop.xlane.xlu0 %6884 }
0x4536   :  { %v6886_v4 = vsub.f32 %v6882_v15, %v6885_v2 }
0x4538   :  { %v6887_v5 = vmul.f32 1.442695, %v6886_v4 }
0x453a   :  { %9101 = vpow2.f32 %v6887_v5 }
0x4547   :  { %v9102_v9 = vpop.eup %9101 }
0x4548   :  { %v6889_v23 = vsel %vm196_vm2, %v9102_v9, 0.0 }
0x4549   :  { %6890 = vadd.xlane.f32.xlu0 %v6889_v23 }
0x4567   :  { %v6799_v18 = vpop.f32.mrf.mxu0 }
0x4568   :  { %v10355_v59 = vadd.f32 %v6799_v18, %v6590_v47 }
0x4569   :  { %v8869_v11 = vpop.f32.mrf.mxu0 }
0x456b   :  { %v6802_v36 = vpop.f32.mrf.mxu0 }
0x456d   :  { %v8870_v14 = vpop.f32.mrf.mxu0 }
0x456f   :  { %v7045_v6 = vpop.f32.mrf.mxu0 }
0x4570   :  { %v7049_v16 = vmul.f32 0.35355338, %v7045_v6 }
0x4571   :  { %v8885_v19 = vpop.f32.mrf.mxu0 }
0x4572   :  { %v7050_v22 = vsel %vm196_vm2, %v7049_v16, -inf }
0x4573   :  { %7051 = vmax.xlane.f32.xlu1 %v7050_v22 }
0x4584   :  { %6894 = vrot.lane.b32.xlu1 %v10233_v10, %s10586_s24 }
0x4588   :  { %7226 = vrot.lane.b32.xlu1 %v10233_v10, %s10581_s29 }
0x458c   :  { %7224 = vrot.lane.b32.xlu1 %v10247_v56, %s10581_s29 }
0x45d2   :  { %v6891_v24 = vpop.xlane.xlu0 %6890 }
0x45d3   :  { %9103 = vrcp.f32 %v6891_v24 }
0x45e0   :  { %v9104_v25 = vpop.eup %9103 }
0x45e1   :  { %v6893_v27 = vmul.f32 %v9104_v25, %v9102_v9  ;;  %v7652_v9 = vadd.f32 %v8104_v8, %v10355_v59 }
0x45e3   :  { %v7654_v14 = vadd.f32 %v7652_v9, %v10214_v3 }
0x45e5   :  { %v7660_v6 = vsel %vm143_vm1, %v7654_v14, 0.0 }
0x45fc   :  { %v7052_v52 = vpop.xlane.xlu1 %7051 }
0x45fd   :  { %v7053_v26 = vsub.f32 %v7049_v16, %v7052_v52 }
0x45ff   :  { %v7054_v58 = vmul.f32 1.442695, %v7053_v26 }
0x4600   :  { %v6895_v13 = vpop.permute.xlu1 %6894 }
0x4601   :  { %9105 = vpow2.f32 %v7054_v58  ;;  %8877 = vmatpush3.msra.mxu1 %v6895_v13 }
0x4602   :  { %8879 = vmatmul.mubr.msk.f32.vlgmr.msra.gmra.mxu1 %vm196_vm2, %v6893_v27  ;;  %8886 = vmatprep.subr.mxu1 %v9198_v0 }
0x4603   :  { %8888 = vmatprep.mubr.msk.f32.mxu1 %vm9199_vm0, %v9198_v0 }
0x4604   :  { %v7227_v43 = vpop.permute.xlu1 %7226 }
0x460e   :  { %v9106_v39 = vpop.eup %9105 }
0x460f   :  { %v7056_v12 = vsel %vm196_vm2, %v9106_v39, 0.0 }
0x4610   :  { %7057 = vadd.xlane.f32.xlu0 %v7056_v12 }
0x4626   :  { %7061 = vrot.lane.b32.xlu0 %v10233_v10, %s10587_s2 }
0x4699   :  { %v7058_v32 = vpop.xlane.xlu0 %7057 }
0x469a   :  { %9107 = vrcp.f32 %v7058_v32 }
0x469d   :  { %v7062_v29 = vpop.permute.xlu0 %7061 }
0x469e   :  { %8887 = vmatpush3.msra.mxu1 %v7062_v29 }
0x469f   :  { %8897 = vmatprep.subr.bf16.mxu1 %v9198_v0 }
0x46a7   :  { %v9108_v30 = vpop.eup %9107 }
0x46a8   :  { %v7060_v33 = vmul.f32 %v9108_v30, %v9106_v39 }
0x46aa   :  { %8889 = vmatmul.mubr.msk.f32.vlgmr.msra.gmra.mxu1 %vm196_vm2, %v7060_v33 }
0x46ab   :  { %8898 = vmatpush3.bf16.msra.mxu1 %v10274_v53  ;;  %8899 = vmatprep.mubr.msk.bf16.mxu1 %vm9199_vm0, %v9198_v0  ;;  %v7225_v53 = vpop.permute.xlu1 %7224 }
0x46ac   :  { %8908 = vmatprep.subr.mxu1 %v9198_v0 }
0x46c2   :  { %v6966_v45 = vpop.f32.mrf.mxu1 }
0x46c3   :  { %v6970_v37 = vpack.c.bf16 %v6966_v45, %v6966_v45 }
0x46c4   :  { %v8880_v38 = vpop.f32.mrf.mxu1 }
0x46c5   :  { %8900 = vmatmul.mubr.msk.bf16.vlgmr.msra.gmra.mxu1 %vm196_vm2, %v6970_v37 }
0x46c6   :  { %8910 = vmatprep.mubr.msk.f32.mxu1 %vm9199_vm0, %v9198_v0 }
0x476a   :  { %v7133_v40 = vpop.f32.mrf.mxu1 }
0x476b   :  { %v7137_v41 = vpack.c.bf16 %v7133_v40, %v7133_v40 }
0x476c   :  { %v8890_v20 = vpop.f32.mrf.mxu1 }
0x476d   :  { %8894 = vmatmul.mubr.msk.bf16.vlgmr.msra.gmra.mxu0 %vm196_vm2, %v7137_v41 }
0x476e   :  { %8904 = vmatpush3.xpose.msk.msra.mxu0 %vm196_vm2, %v7227_v43  ;;  %8905 = vmatprep.mubr.msk.f32.mxu0 %vm9199_vm0, %v9198_v0 }
0x476f   :  { %8913 = vmatprep.subr.bf16.mxu0 %v9198_v0 }
0x4775   :  { %8906 = vmatmul.mubr.msk.f32.vlgmr.msra.gmra.mxu0 %vm196_vm2, %v7225_v53 }
0x4776   :  { %8914 = vmatpush3.bf16.msra.mxu0 %v10312_v28  ;;  %8915 = vmatprep.mubr.msk.bf16.mxu0 %vm9199_vm0, %v9198_v0 }
0x4777   :  { %8929 = vmatprep.subr.bf16.mxu0 %v9198_v0 }
0x4785   :  { %v10390_v17 = vpop.f32.mrf.mxu1 }
0x4787   :  { %v8901_v44 = vpop.f32.mrf.mxu1 }
0x4789   :  { %v7221_v50 = vpop.f32.mrf.mxu1 }
0x478b   :  { %v8902_v46 = vpop.f32.mrf.mxu1 }
0x482d   :  { %v7175_v47 = vpop.f32.mrf.mxu0 }
0x482e   :  { %v7219_v24 = vadd.f32 %v10390_v17, %v7175_v47 }
0x482f   :  { %v8895_v48 = vpop.f32.mrf.mxu0 }
0x4831   :  { %v7178_v21 = vpop.f32.mrf.mxu0 }
0x4833   :  { %v8896_v51 = vpop.f32.mrf.mxu0 }
0x4835   :  { %v7298_v54 = vpop.f32.mrf.mxu0 }
0x4836   :  { %v7302_v7 = vmul.f32 0.35355338, %v7298_v54  ;;  %v7705_v54 = vld [vmem:[#allocation6 + $0x30] sm:$0xff] }
0x4837   :  { %v8907_v55 = vpop.f32.mrf.mxu0 }
0x4838   :  { %v7303_v62 = vsel %vm196_vm2, %v7302_v7, -inf }
0x4839   :  { %7304 = vmax.xlane.f32.xlu0 %v7303_v62  ;;  %v7704_v62 = vld [vmem:[#allocation6 + $0x28] sm:$0xff] }
0x484f   :  { %7314 = vrot.lane.b32.xlu0 %v10233_v10, %s10583_s5 }
0x4853   :  { %7435 = vrot.lane.b32.xlu0 %v10247_v56, %s10582_s7 }
0x48c2   :  { %v7305_v28 = vpop.xlane.xlu0 %7304 }
0x48c3   :  { %v7306_v57 = vsub.f32 %v7302_v7, %v7305_v28  ;;  %v7706_v7 = vld [vmem:[#allocation6 + $0x38] sm:$0xff] }
0x48c4   :  { %v7711_v55 = vpack.c.bf16 %v7706_v7, %v7705_v54 }
0x48c5   :  { %v7307_v60 = vmul.f32 1.442695, %v7306_v57  ;;  %v8118_v57 = vld [vmem:[%s10520_s14 + $0x70] sm:$0xff] }
0x48c6   :  { %v7315_v61 = vpop.permute.xlu0 %7314 }
0x48c7   :  { %9109 = vpow2.f32 %v7307_v60  ;;  %8909 = vmatpush3.msra.mxu1 %v7315_v61  ;;  %v8119_v60 = vld [vmem:[%s10520_s14 + $0x78] sm:$0xff] }
0x48c8   :  { %8919 = vmatprep.subr.mxu1 %v9198_v0  ;;  %v7779_v61 = vpack.c.bf16 %v8119_v60, %v8118_v57 }
0x48ca   :  { %v7436_v1 = vpop.permute.xlu0 %7435 }
0x48d4   :  { %v9110_v63 = vpop.eup %9109 }
0x48d5   :  { %v7309_v42 = vsel %vm196_vm2, %v9110_v63, 0.0 }
0x48d6   :  { %7310 = vadd.xlane.f32.xlu1 %v7309_v42 }
0x48e7   :  { %7437 = vrot.lane.b32.xlu1 %v10233_v10, %s10582_s7 }
0x495f   :  { %v7311_v31 = vpop.xlane.xlu1 %7310 }
0x4960   :  { %9111 = vrcp.f32 %v7311_v31 }
0x4963   :  { %v7438_v56 = vpop.permute.xlu1 %7437 }
0x496d   :  { %v9112_v15 = vpop.eup %9111 }
0x496e   :  { %v7313_v34 = vmul.f32 %v9112_v15, %v9110_v63 }
0x4970   :  { %8911 = vmatmul.mubr.msk.f32.vlgmr.msra.gmra.mxu1 %vm196_vm2, %v7313_v34 }
0x4971   :  { %8920 = vmatpush3.xpose.msk.msra.mxu1 %vm196_vm2, %v7438_v56  ;;  %8921 = vmatprep.mubr.msk.f32.mxu1 %vm9199_vm0, %v9198_v0 }
0x4972   :  { %8924 = vmatprep.subr.mxu1 %v9198_v0 }
0x4974   :  { %8922 = vmatmul.mubr.msk.f32.vlgmr.msra.gmra.mxu1 %vm196_vm2, %v7436_v1 }
0x4975   :  { %8926 = vmatprep.mubr.msk.f32.mxu1 %vm9199_vm0, %v9198_v0 }
0x4a30   :  { %v7386_v2 = vpop.f32.mrf.mxu1 }
0x4a31   :  { %v7390_v4 = vpack.c.bf16 %v7386_v2, %v7386_v2  ;;  %v8107_v2 = vld [vmem:[%s10524_s18 + $0x1] ss:$0 sm:$0xff] }
0x4a32   :  { %v8912_v5 = vpop.f32.mrf.mxu1 }
0x4a33   :  { %8916 = vmatmul.mubr.msk.bf16.vlgmr.msra.gmra.mxu0 %vm196_vm2, %v7390_v4 }
0x4a34   :  { %v7509_v23 = vpop.f32.mrf.mxu1  ;;  %8930 = vmatpush3.bf16.msra.mxu0 %v10328_v49  ;;  %8931 = vmatprep.mubr.msk.bf16.mxu0 %vm9199_vm0, %v9198_v0 }
0x4a35   :  { %v7513_v18 = vmul.f32 0.35355338, %v7509_v23  ;;  %8943 = vmatprep.subr.bf16.mxu0 %v9198_v0  ;;  %v8108_v23 = vld [vmem:[%s10525_s19 + $0x1] ss:$0 sm:$0xff] }
0x4a36   :  { %v8923_v11 = vpop.f32.mrf.mxu1 }
0x4a37   :  { %v7514_v36 = vsel %vm196_vm2, %v7513_v18, -inf }
0x4a38   :  { %7515 = vmax.xlane.f32.xlu1 %v7514_v36 }
0x4a3c   :  { %7661 = vadd.xlane.f32.xlu1 %v7660_v6  ;;  %v8116_v6 = vld [vmem:[%s10520_s14 + $0x60] sm:$0xff] }
0x4ac1   :  { %v7516_v59 = vpop.xlane.xlu1 %7515 }
0x4ac2   :  { %v7517_v16 = vsub.f32 %v7513_v18, %v7516_v59  ;;  %v8117_v59 = vld [vmem:[%s10520_s14 + $0x68] sm:$0xff] }
0x4ac4   :  { %v7518_v19 = vmul.f32 1.442695, %v7517_v16  ;;  %v7778_v16 = vpack.c.bf16 %v8117_v59, %v8116_v6 }
0x4ac5   :  { %v7662_v30 = vpop.xlane.xlu1 %7661 }
0x4ac6   :  { %9113 = vpow2.f32 %v7518_v19  ;;  %v7666_v33 = vmul.f32 0.03125, %v7662_v30  ;;  %v8114_v19 = vld [vmem:[%s10520_s14 + $0x50] sm:$0xff] }
0x4ac8   :  { %v7668_v40 = vsub.f32 %v7654_v14, %v7666_v33 }
0x4aca   :  { %v7670_v44 = vmul.f32 %v7668_v40, %v7668_v40 }
0x4acc   :  { %v7672_v50 = vsel %vm143_vm1, %v7670_v44, 0.0 }
0x4ad3   :  { %v9114_v49 = vpop.eup %9113 }
0x4ad4   :  { %v7520_v22 = vsel %vm196_vm2, %v9114_v49, 0.0 }
0x4ad5   :  { %7521 = vadd.xlane.f32.xlu0 %v7520_v22 }
0x4aeb   :  { %7525 = vrot.lane.b32.xlu0 %v10233_v10, %s10584_s10 }
0x4af3   :  { %v7428_v52 = vpop.f32.mrf.mxu0 }
0x4af4   :  { %v7434_v25 = vadd.f32 %v7428_v52, %v7219_v24  ;;  %v8112_v24 = vld [vmem:[%s10520_s14 + $0x40] sm:$0xff]  ;;  %v8113_v52 = vld [vmem:[%s10520_s14 + $0x48] sm:$0xff] }
0x4af5   :  { %v8917_v3 = vpop.f32.mrf.mxu0 }
0x4af6   :  { %v8110_v3 = vld [vmem:[%s10519_s13 + $0x1] ss:$0 sm:$0xff] }
0x4af7   :  { %v7431_v26 = vpop.f32.mrf.mxu0 }
0x4af9   :  { %v8918_v58 = vpop.f32.mrf.mxu0 }
0x4b5e   :  { %v7522_v27 = vpop.xlane.xlu0 %7521 }
0x4b5f   :  { %9115 = vrcp.f32 %v7522_v27 }
0x4b62   :  { %v7526_v13 = vpop.permute.xlu0 %7525 }
0x4b63   :  { %8925 = vmatpush3.msra.mxu1 %v7526_v13 }
0x4b64   :  { %8935 = vmatprep.subr.bf16.mxu1 %v9198_v0 }
0x4b6c   :  { %v9116_v39 = vpop.eup %9115 }
0x4b6d   :  { %v7524_v12 = vmul.f32 %v9116_v39, %v9114_v49  ;;  %v8115_v49 = vld [vmem:[%s10520_s14 + $0x58] sm:$0xff] }
0x4b6e   :  { %v7777_v22 = vpack.c.bf16 %v8115_v49, %v8114_v19 }
0x4b6f   :  { %8927 = vmatmul.mubr.msk.f32.vlgmr.msra.gmra.mxu1 %vm196_vm2, %v7524_v12 }
0x4b70   :  { %8939 = vmatprep.mubr.msk.bf16.mxu1 %vm9199_vm0, %v9198_v0  ;;  %8936 = vmatpush3.bf16.msra.mxu1 %v7711_v55 }
0x4b71   :  { %8937 = vmatprep.subr.bf16.mxu1 %v9198_v0 }
0x4c2f   :  { %v7597_v10 = vpop.f32.mrf.mxu1 }
0x4c30   :  { %v7601_v32 = vpack.c.bf16 %v7597_v10, %v7597_v10 }
0x4c31   :  { %v8928_v29 = vpop.f32.mrf.mxu1 }
0x4c32   :  { %8932 = vmatmul.mubr.msk.bf16.vlgmr.msra.gmra.mxu0 %vm196_vm2, %v7601_v32  ;;  %v8121_v29 = vld [vmem:[%s10521_s15 + $0x1] ss:$0 sm:$0xff] }
0x4c33   :  { %8951 = vmatprep.mubr.msk.bf16.mxu0 %vm9199_vm0, %v9198_v0  ;;  %8944 = vmatpush3.bf16.msra.mxu0 %v7779_v61 }
0x4c34   :  { %8945 = vmatprep.subr.bf16.mxu0 %v9198_v0 }
0x4c37   :  { %8946 = vmatpush3.bf16.msra.mxu0 %v7778_v16 }
0x4c38   :  { %8947 = vmatprep.subr.bf16.mxu0 %v9198_v0 }
0x4c3b   :  { %8948 = vmatpush3.bf16.msra.mxu0 %v7777_v22 }
0x4c3c   :  { %8949 = vmatprep.subr.bf16.mxu0 %v9198_v0 }
0x4cf2   :  { %v7639_v45 = vpop.f32.mrf.mxu0 }
0x4cf3   :  { %v7645_v37 = vadd.f32 %v7639_v45, %v7434_v25  ;;  %v7776_v25 = vpack.c.bf16 %v8113_v52, %v8112_v24 }
0x4cf4   :  { %v8933_v38 = vpop.f32.mrf.mxu0 }
0x4cf5   :  { %v7653_v41 = vadd.f32 %v8104_v8, %v7645_v37  ;;  %8950 = vmatpush3.bf16.msra.mxu0 %v7776_v25 }
0x4cf6   :  { %v7642_v20 = vpop.f32.mrf.mxu0 }
0x4cf7   :  { %v7655_v43 = vadd.f32 %v7653_v41, %v10216_v35  ;;  %v7703_v35 = vld [vmem:[#allocation6 + $0x20] sm:$0xff] }
0x4cf8   :  { %v8934_v53 = vpop.f32.mrf.mxu0  ;;  %v7710_v28 = vpack.c.bf16 %v7704_v62, %v7703_v35 }
0x4cf9   :  { %v7663_v17 = vsel %vm143_vm1, %v7655_v43, 0.0 }
0x4cfa   :  { %7664 = vadd.xlane.f32.xlu1 %v7663_v17  ;;  %8938 = vmatpush3.bf16.msra.mxu1 %v7710_v28 }
0x4cfe   :  { %7673 = vadd.xlane.f32.xlu1 %v7672_v50 }
0x4d83   :  { %v7665_v46 = vpop.xlane.xlu1 %7664 }
0x4d84   :  { %v7667_v47 = vmul.f32 0.03125, %v7665_v46 }
0x4d86   :  { %v7669_v48 = vsub.f32 %v7655_v43, %v7667_v47 }
0x4d87   :  { %v7674_v63 = vpop.xlane.xlu1 %7673 }
0x4d88   :  { %v7671_v21 = vmul.f32 %v7669_v48, %v7669_v48  ;;  %v7678_v42 = vmul.f32 0.03125, %v7674_v63  ;;  %v8125_v63 = vld [vmem:[%s10526_s20 + $0x1] ss:$0 sm:$0xff] }
0x4d8a   :  { %v7675_v51 = vsel %vm143_vm1, %v7671_v21, 0.0  ;;  %v7680_v31 = vadd.f32 1e-05, %v7678_v42 }
0x4d8b   :  { %7676 = vadd.xlane.f32.xlu1 %v7675_v51 }
0x4d8c   :  { %9117 = vrsqrt.f32 %v7680_v31  ;;  %v8126_v31 = vld [vmem:[%s10527_s21 + $0x1] ss:$0 sm:$0xff] }
0x4d99   :  { %v9118_v1 = vpop.eup %9117 }
0x4d9a   :  { %v7684_v8 = vmul.f32 %v9118_v1, %v7668_v40 }
0x4d9c   :  { %v7692_v5 = vmul.f32 %v8107_v2, %v7684_v8 }
0x4d9e   :  { %v7700_v11 = vadd.f32 %v8108_v23, %v7692_v5 }
0x4e14   :  { %v7677_v15 = vpop.xlane.xlu1 %7676 }
0x4e15   :  { %v7679_v34 = vmul.f32 0.03125, %v7677_v15 }
0x4e17   :  { %v7681_v56 = vadd.f32 1e-05, %v7679_v34 }
0x4e19   :  { %9119 = vrsqrt.f32 %v7681_v56 }
0x4e26   :  { %v9120_v4 = vpop.eup %9119 }
0x4e27   :  { %v7685_v9 = vmul.f32 %v9120_v4, %v7669_v48 }
0x4e29   :  { %v7693_v18 = vmul.f32 %v8107_v2, %v7685_v9 }
0x4e2b   :  { %v7701_v36 = vadd.f32 %v8108_v23, %v7693_v18 }
0x4e2d   :  { %v7709_v14 = vpack.c.bf16 %v7701_v36, %v7700_v11 }
0x4e2f   :  { %8940 = vmatmul.mubr.msk.bf16.vlgmr.msra.gmra.mxu1 %vm143_vm1, %v7709_v14 }
0x4eef   :  { %v7755_v26 = vpop.f32.mrf.mxu1 }
0x4ef0   :  { %v7756_v27 = vadd.f32 %v8110_v3, %v7755_v26 }
0x4ef1   :  { %v8941_v58 = vpop.f32.mrf.mxu1 }
0x4ef2   :  { %v7762_v12 = vmax.f32 %v7756_v27, 0.0  ;;  %v8127_v58 = vld [vmem:[%s10528_s22] ss:$0 sm:$0xff] }
0x4ef3   :  { %v7758_v13 = vpop.f32.mrf.mxu1 }
0x4ef4   :  { %v7759_v39 = vadd.f32 %v8110_v3, %v7758_v13  ;;  %v8128_v13 = vld [vmem:[%s10529_s23] ss:$0 sm:$0xff] }
0x4ef5   :  { %v8942_v0 = vpop.f32.mrf.mxu1 }
0x4ef6   :  { %v7763_v10 = vmax.f32 %v7759_v39, 0.0 }
0x4ef8   :  { %v7775_v32 = vpack.c.bf16 %v7763_v10, %v7762_v12 }
0x4efa   :  { %8952 = vmatmul.mubr.msk.bf16.vlgmr.msra.gmra.mxu0 %vm3907_vm5, %v7775_v32 }
0x4fba   :  { %v7823_v30 = vpop.f32.mrf.mxu0 }
0x4fbb   :  { %v7824_v33 = vadd.f32 %v8121_v29, %v7823_v30 }
0x4fbc   :  { %v8953_v45 = vpop.f32.mrf.mxu0 }
0x4fbd   :  { %v7830_v37 = vadd.f32 %v7824_v33, %v7700_v11 }
0x4fbe   :  { %v7826_v38 = vpop.f32.mrf.mxu0 }
0x4fbf   :  { %v7827_v40 = vadd.f32 %v8121_v29, %v7826_v38  ;;  %v7836_v41 = vsel %vm143_vm1, %v7830_v37, 0.0 }
0x4fc0   :  { %7837 = vadd.xlane.f32.xlu1 %v7836_v41  ;;  %v8954_v20 = vpop.f32.mrf.mxu0 }
0x4fc1   :  { %v7831_v43 = vadd.f32 %v7827_v40, %v7701_v36 }
0x4fc3   :  { %v7839_v53 = vsel %vm143_vm1, %v7831_v43, 0.0 }
0x4fc4   :  { %7840 = vadd.xlane.f32.xlu1 %v7839_v53 }
0x5049   :  { %v7838_v17 = vpop.xlane.xlu1 %7837 }
0x504a   :  { %v7842_v44 = vmul.f32 0.03125, %v7838_v17 }
0x504c   :  { %v7844_v50 = vsub.f32 %v7830_v37, %v7842_v44 }
0x504d   :  { %v7841_v46 = vpop.xlane.xlu1 %7840 }
0x504e   :  { %v7843_v47 = vmul.f32 0.03125, %v7841_v46  ;;  %v7846_v48 = vmul.f32 %v7844_v50, %v7844_v50 }
0x5050   :  { %v7845_v21 = vsub.f32 %v7831_v43, %v7843_v47  ;;  %v7848_v51 = vsel %vm143_vm1, %v7846_v48, 0.0 }
0x5051   :  { %7849 = vadd.xlane.f32.xlu0 %v7848_v51 }
0x5052   :  { %v7847_v54 = vmul.f32 %v7845_v21, %v7845_v21 }
0x5054   :  { %v7851_v7 = vsel %vm143_vm1, %v7847_v54, 0.0 }
0x5055   :  { %7852 = vadd.xlane.f32.xlu1 %v7851_v7 }
0x50da   :  { %v7850_v55 = vpop.xlane.xlu0 %7849 }
0x50db   :  { %v7854_v35 = vmul.f32 0.03125, %v7850_v55 }
0x50dd   :  { %v7856_v62 = vadd.f32 1e-05, %v7854_v35 }
0x50de   :  { %v7853_v28 = vpop.xlane.xlu1 %7852 }
0x50df   :  { %9121 = vrsqrt.f32 %v7856_v62  ;;  %v7855_v57 = vmul.f32 0.03125, %v7853_v28 }
0x50e1   :  { %v7857_v60 = vadd.f32 1e-05, %v7855_v57 }
0x50e3   :  { %9123 = vrsqrt.f32 %v7857_v60 }
0x50ec   :  { %v9122_v61 = vpop.eup %9121 }
0x50ed   :  { %v7860_v42 = vmul.f32 %v9122_v61, %v7844_v50 }
0x50ef   :  { %v7868_v15 = vmul.f32 %v8125_v63, %v7860_v42 }
0x50f0   :  { %v9124_v34 = vpop.eup %9123 }
0x50f1   :  { %v7876_v56 = vadd.f32 %v8126_v31, %v7868_v15  ;;  %v7861_v1 = vmul.f32 %v9124_v34, %v7845_v21 }
0x50f3   :  { %v7880_v8 = vsel %vm143_vm1, %v7876_v56, 0.0  ;;  %v7869_v2 = vmul.f32 %v8125_v63, %v7861_v1 }
0x50f4   :  { %7881 = vadd.xlane.f32.xlu1 %v7880_v8 }
0x50f5   :  { %v7877_v4 = vadd.f32 %v8126_v31, %v7869_v2 }
0x50f7   :  { %v7883_v5 = vsel %vm143_vm1, %v7877_v4, 0.0 }
0x50f8   :  { %7884 = vadd.xlane.f32.xlu1 %v7883_v5 }
0x517d   :  { %v7882_v9 = vpop.xlane.xlu1 %7881 }
0x517e   :  { %v7886_v23 = vmul.f32 0.03125, %v7882_v9 }
0x5180   :  { %v7888_v18 = vsub.f32 %v7876_v56, %v7886_v23 }
0x5181   :  { %v7885_v11 = vpop.xlane.xlu1 %7884 }
0x5182   :  { %v7887_v36 = vmul.f32 0.03125, %v7885_v11  ;;  %v7890_v14 = vmul.f32 %v7888_v18, %v7888_v18 }
0x5184   :  { %v7889_v6 = vsub.f32 %v7877_v4, %v7887_v36  ;;  %v7892_v59 = vsel %vm143_vm1, %v7890_v14, 0.0 }
0x5185   :  { %7893 = vadd.xlane.f32.xlu1 %v7892_v59 }
0x5186   :  { %v7891_v16 = vmul.f32 %v7889_v6, %v7889_v6 }
0x5188   :  { %v7895_v19 = vsel %vm143_vm1, %v7891_v16, 0.0 }
0x5189   :  { %7896 = vadd.xlane.f32.xlu1 %v7895_v19 }
0x520e   :  { %v7894_v49 = vpop.xlane.xlu1 %7893 }
0x520f   :  { %v7898_v22 = vmul.f32 0.03125, %v7894_v49 }
0x5211   :  { %v7900_v24 = vadd.f32 1e-05, %v7898_v22 }
0x5212   :  { %v7897_v52 = vpop.xlane.xlu1 %7896 }
0x5213   :  { %9125 = vrsqrt.f32 %v7900_v24  ;;  %v7899_v25 = vmul.f32 0.03125, %v7897_v52 }
0x5215   :  { %v7901_v3 = vadd.f32 1e-05, %v7899_v25 }
0x5217   :  { %9127 = vrsqrt.f32 %v7901_v3 }
0x5220   :  { %v9126_v26 = vpop.eup %9125 }
0x5221   :  { %v7904_v27 = vmul.f32 %v9126_v26, %v7888_v18 }
0x5223   :  { %v7912_v39 = vmul.f32 %v8127_v58, %v7904_v27 }
0x5224   :  { %v9128_v0 = vpop.eup %9127 }
0x5225   :  { %v7920_v12 = vadd.f32 %v8128_v13, %v7912_v39  ;;  %v7905_v10 = vmul.f32 %v9128_v0, %v7889_v6 }
0x5227   :  { %7922 = vst.msk [vmem:[%s10592_s3] sm:$0xff] %vm143_vm1, %v7920_v12  ;;  %v7913_v32 = vmul.f32 %v8127_v58, %v7905_v10 }
0x5229   :  { %v7921_v29 = vadd.f32 %v8128_v13, %v7913_v32 }
0x522b   :  { %7923 = vst.msk [vmem:[%s10592_s3 + $0x8] sm:$0xff] %vm143_vm1, %v7921_v29 }
0x522c   :  { %7928 = vsyncpa [#allocation3], 1 }
0x522d   :  { %7929 = vsyncpa [#allocation5], 1 }

</bundles_post_ra>
